<compile_context>
chip_gen: v7x
topology: tpu7x:2x2x1
jax: 0.10.0
libtpu: 0.0.40
codegen_flags: <defaults>
</compile_context>

<pallas_src>
import functools

import numpy as np
import jax
import jax.numpy as jnp
from jax.experimental import pallas as pl
from jax.experimental.pallas import tpu as pltpu

LANES = 128          # lane width of every matmul / store
GROUP = 4            # batch elements packed into the lane dim (4 x 32 ch)
CH = 32              # conv channel count (fixed by the DQN module)
KSIZE = 5
STRIDE = 2
TAPS = KSIZE * KSIZE
TAPS_PAD = 32        # per-sample K block for layer 1 (25 real taps, padded)
UNROLL = 5           # manual unroll factor of the tap loops (25 = 5 * 5)

assert GROUP * TAPS_PAD == LANES
assert GROUP * CH == LANES


def conv_out(s):
    return (s - (KSIZE - 1) - 1) // STRIDE + 1


def _round_up(x, m):
    return ((x + m - 1) // m) * m


# ---------------------------------------------------------------------------
# Fused forward kernel: one grid step == one group of GROUP batch elements.
# ---------------------------------------------------------------------------
def dqn_kernel(xc_ref, w1_ref, sh1_ref, s2_ref, w2_ref, sh2_ref,
               s3_ref, w3_ref, sh3_ref, wh_ref, bh_ref, o_ref,
               g2_ref, g3_ref, *, m2_pad, m3_pad, m3):
    f32 = jnp.float32
    bf16 = jnp.bfloat16

    # ---- layer 1: (m1_pad, 128) @ (128, 128); 4 samples block-diag packed ---
    y1 = jnp.dot(xc_ref[0], w1_ref[...], preferred_element_type=f32)
    y1b = jnp.maximum(y1 + sh1_ref[...], 0.0).astype(bf16)      # stays a value

    def taps_matmul(g_ref, w_ref, m_pad):
        # g_ref holds all 25 gathered taps stacked along rows (tap-major).
        # Accumulate sum_t g[t] @ W[t]; fori_loop bounds live ranges, body is
        # manually unrolled x5 for scheduler visibility.
        def body(step, acc):
            for j in range(UNROLL):
                t = step * UNROLL + j
                off = pl.multiple_of(t * m_pad, 8)
                chunk = g_ref[pl.ds(off, m_pad), :].astype(bf16)
                acc = acc + jnp.dot(chunk, w_ref[t],
                                    preferred_element_type=f32)
            return acc
        return jax.lax.fori_loop(0, TAPS // UNROLL, body,
                                 jnp.zeros((m_pad, LANES), f32))

    # ---- layer 2: one tall gather matmul + 25 per-tap weight matmuls --------
    g2_ref[...] = jnp.dot(s2_ref[...], y1b, preferred_element_type=f32)
    y2b = jnp.maximum(taps_matmul(g2_ref, w2_ref, m2_pad) + sh2_ref[...],
                      0.0).astype(bf16)

    # ---- layer 3 -------------------------------------------------------------
    g3_ref[...] = jnp.dot(s3_ref[...], y2b, preferred_element_type=f32)
    y3 = jnp.maximum(taps_matmul(g3_ref, w3_ref, m3_pad) + sh3_ref[...], 0.0)

    # ---- linear head: m3 (=4) tiny matmuls over block-diag per-sample weights
    # (f32 row slices avoid bf16 packed-row relayouts; cost is negligible).
    acc_h = bh_ref[...]                                          # (1, 128) f32
    for r in range(m3):
        acc_h = acc_h + jnp.dot(y3[r:r + 1].astype(bf16), wh_ref[r],
                                preferred_element_type=f32)
    # lane-dense (8,128) store; row 0 holds the packed per-sample Q-values.
    o_ref[0] = jnp.broadcast_to(acc_h, (8, LANES))


# ---------------------------------------------------------------------------
# Wrapper / pallas_call
# ---------------------------------------------------------------------------
def make_dqn_forward(h, w, outputs):
    h1, w1 = conv_out(h), conv_out(w)
    h2, w2 = conv_out(h1), conv_out(w1)
    h3, w3 = conv_out(h2), conv_out(w2)
    m1, m2, m3 = h1 * w1, h2 * w2, h3 * w3
    m1_pad = _round_up(m1, LANES)
    m2_pad = _round_up(m2, 8)
    m3_pad = _round_up(m3, 8)

    kernel = functools.partial(dqn_kernel, m2_pad=m2_pad, m3_pad=m3_pad, m3=m3)

    flops_per_group = 2 * (m1_pad * LANES * LANES
                           + TAPS * m2_pad * m1_pad * LANES
                           + TAPS * m2_pad * LANES * LANES
                           + TAPS * m3_pad * m2_pad * LANES
                           + TAPS * m3_pad * LANES * LANES
                           + m3 * LANES * LANES)

    def im2col_l1(x):
        # x: (N, 1, H, W) -> (N, m1, 25); rows = oy*w1+ox, column t = dy*5+dx.
        patches = [x[:, 0, dy:dy + STRIDE * (h1 - 1) + 1:STRIDE,
                           dx:dx + STRIDE * (w1 - 1) + 1:STRIDE]
                   for dy in range(KSIZE) for dx in range(KSIZE)]
        return jnp.stack(patches, axis=-1).reshape(x.shape[0], m1, TAPS)

    @jax.jit
    def forward(x, wts):
        n = x.shape[0]
        n_pad = _round_up(max(n, 1), GROUP)
        ng = n_pad // GROUP

        xp = jnp.pad(x.astype(jnp.float32),
                     ((0, n_pad - n), (0, 0), (0, 0), (0, 0)))
        cols = im2col_l1(xp)                                  # (n_pad, m1, 25)
        cols = cols.reshape(ng, GROUP, m1, TAPS)
        cols = jnp.pad(cols, ((0, 0), (0, 0),
                              (0, m1_pad - m1), (0, TAPS_PAD - TAPS)))
        # lane index = g*32 + tap  -> matches block-diagonal w1.
        xcols = cols.transpose(0, 2, 1, 3).reshape(ng, m1_pad, LANES)
        xcols = xcols.astype(jnp.bfloat16)

        weight_bytes = sum(int(v.size) * v.dtype.itemsize for v in wts.values())
        cost = pl.CostEstimate(
            flops=flops_per_group * ng,
            transcendentals=0,
            bytes_accessed=int(weight_bytes + xcols.size * 2 + ng * 8 * LANES * 4))

        out = pl.pallas_call(
            kernel,
            out_shape=jax.ShapeDtypeStruct((ng, 8, LANES), jnp.float32),
            grid=(ng,),
            in_specs=[
                pl.BlockSpec((1, m1_pad, LANES), lambda i: (i, 0, 0)),    # x cols
                pl.BlockSpec((LANES, LANES), lambda i: (0, 0)),           # w1
                pl.BlockSpec((1, LANES), lambda i: (0, 0)),               # shift1
                pl.BlockSpec((TAPS * m2_pad, m1_pad), lambda i: (0, 0)),  # S2
                pl.BlockSpec((TAPS, LANES, LANES), lambda i: (0, 0, 0)),  # w2
                pl.BlockSpec((1, LANES), lambda i: (0, 0)),               # shift2
                pl.BlockSpec((TAPS * m3_pad, m2_pad), lambda i: (0, 0)),  # S3
                pl.BlockSpec((TAPS, LANES, LANES), lambda i: (0, 0, 0)),  # w3
                pl.BlockSpec((1, LANES), lambda i: (0, 0)),               # shift3
                pl.BlockSpec((m3, LANES, LANES), lambda i: (0, 0, 0)),    # head W
                pl.BlockSpec((1, LANES), lambda i: (0, 0)),               # head b
            ],
            out_specs=pl.BlockSpec((1, 8, LANES), lambda i: (i, 0, 0)),
            scratch_shapes=[
                pltpu.VMEM((TAPS * m2_pad, LANES), jnp.float32),   # gathered taps L2
                pltpu.VMEM((TAPS * m3_pad, LANES), jnp.float32),   # gathered taps L3
            ],
            compiler_params=pltpu.CompilerParams(
                dimension_semantics=("parallel",)),
            cost_estimate=cost,
        )(xcols, wts["w1"], wts["sh1"], wts["s2"], wts["w2"], wts["sh2"],
          wts["s3"], wts["w3"], wts["sh3"], wts["wh"], wts["bh"])

        # lanes [g*32 + o] of row 0 hold sample (group*4 + g), action o.
        q = out[:, 0, :].reshape(ng * GROUP, CH)
        return q[:n, :outputs]

    return forward


# ---------------------------------------------------------------------------
# One-time weight preparation: BN fold, block-diagonal lane packing, padding,
# stacked 0/1 spatial-selection (gather) matrices.
# ---------------------------------------------------------------------------
def _selection_stacked(hi, wi, ho, wo, mo_pad, mi_pad):
    """(TAPS*mo_pad, mi_pad) 0/1 matrix; row t*mo_pad + (oy*wo+ox) of tap
    t=dy*5+dx selects input spatial index (2*oy+dy)*wi + (2*ox+dx)."""
    s = np.zeros((TAPS * mo_pad, mi_pad), np.float32)
    for dy in range(KSIZE):
        for dx in range(KSIZE):
            t = dy * KSIZE + dx
            for oy in range(ho):
                for ox in range(wo):
                    s[t * mo_pad + oy * wo + ox,
                      (STRIDE * oy + dy) * wi + STRIDE * ox + dx] = 1.0
    return jnp.asarray(s, jnp.bfloat16)


def prepare_params(p, h, w, outputs, eps=1e-5):
    """Fold BatchNorm(eval) into conv weights, pack GROUP samples per 128 lanes
    via block-diagonal weights, pad shapes, build constant gather matrices."""
    assert outputs <= CH, "head outputs must fit a 32-lane per-sample block"
    h1, w1 = conv_out(h), conv_out(w)
    h2, w2 = conv_out(h1), conv_out(w1)
    h3, w3 = conv_out(h2), conv_out(w2)
    m1, m2, m3 = h1 * w1, h2 * w2, h3 * w3
    m1_pad = _round_up(m1, LANES)
    m2_pad = _round_up(m2, 8)
    m3_pad = _round_up(m3, 8)

    p = {k: np.asarray(v, np.float32) for k, v in p.items()}

    def bn_fold(b, g, be, m, v):
        scale = g / np.sqrt(v + eps)
        shift = (b - m) * scale + be
        return scale, shift

    wts = {}

    # layer 1: (25, 32) BN-folded weight, replicated block-diagonally per group.
    sc, sh = bn_fold(p["b1"], p["g1"], p["be1"], p["m1"], p["v1"])
    w1f = p["w1"].reshape(CH, TAPS).T * sc[None, :]              # (25, 32)
    w1p = np.zeros((LANES, LANES), np.float32)
    sh1p = np.zeros((1, LANES), np.float32)
    for g in range(GROUP):
        w1p[g * TAPS_PAD:g * TAPS_PAD + TAPS, g * CH:(g + 1) * CH] = w1f
        sh1p[0, g * CH:(g + 1) * CH] = sh
    wts["w1"] = jnp.asarray(w1p, jnp.bfloat16)
    wts["sh1"] = jnp.asarray(sh1p, jnp.float32)

    # layers 2 / 3: per-tap (32,32) blocks, replicated block-diagonally.
    for li in (2, 3):
        wt = p[f"w{li}"]                                         # (32, 32, 5, 5)
        sc, sh = bn_fold(p[f"b{li}"], p[f"g{li}"], p[f"be{li}"],
                         p[f"m{li}"], p[f"v{li}"])
        taps = wt.transpose(2, 3, 1, 0).reshape(TAPS, CH, CH) * sc[None, None, :]
        wp = np.zeros((TAPS, LANES, LANES), np.float32)
        shp = np.zeros((1, LANES), np.float32)
        for g in range(GROUP):
            wp[:, g * CH:(g + 1) * CH, g * CH:(g + 1) * CH] = taps
            shp[0, g * CH:(g + 1) * CH] = sh
        wts[f"w{li}"] = jnp.asarray(wp, jnp.bfloat16)
        wts[f"sh{li}"] = jnp.asarray(shp, jnp.float32)

    # stacked (fused) spatial gather matrices.
    wts["s2"] = _selection_stacked(h1, w1, h2, w2, m2_pad, m1_pad)
    wts["s3"] = _selection_stacked(h2, w2, h3, w3, m3_pad, m2_pad)

    # head: PyTorch flattens NCHW -> feature f = c*m3 + r; kernel contracts
    # spatial row r (loop) and channel lanes (matmul), block-diag per sample.
    whr = p["wh"].reshape(outputs, CH, m3).transpose(2, 1, 0)    # (r, c, o)
    whp = np.zeros((m3, LANES, LANES), np.float32)
    bhp = np.zeros((1, LANES), np.float32)
    for g in range(GROUP):
        whp[:, g * CH:(g + 1) * CH, g * CH:g * CH + outputs] = whr
        bhp[0, g * CH:g * CH + outputs] = p["bh"]
    wts["wh"] = jnp.asarray(whp, jnp.bfloat16)
    wts["bh"] = jnp.asarray(bhp, jnp.float32)
    return wts


# ---------------------------------------------------------------------------
# Pure-JAX f32 reference (lax.conv) for the correctness check.
# ---------------------------------------------------------------------------
def ref_forward(x, p, eps=1e-5):
    def block(x, w, b, g, be, m, v):
        y = jax.lax.conv_general_dilated(
            x, w, (STRIDE, STRIDE), "VALID",
            dimension_numbers=("NCHW", "OIHW", "NCHW"))
        y = y + b[None, :, None, None]
        y = (y - m[None, :, None, None]) / jnp.sqrt(v[None, :, None, None] + eps)
        y = y * g[None, :, None, None] + be[None, :, None, None]
        return jnp.maximum(y, 0.0)

    y = block(x, p["w1"], p["b1"], p["g1"], p["be1"], p["m1"], p["v1"])
    y = block(y, p["w2"], p["b2"], p["g2"], p["be2"], p["m2"], p["v2"])
    y = block(y, p["w3"], p["b3"], p["g3"], p["be3"], p["m3"], p["v3"])
    flat = y.reshape(y.shape[0], -1)                 # NCHW flatten = PyTorch .view
    return flat @ p["wh"].T + p["bh"]


# ---------------------------------------------------------------------------
# Deterministic synthetic parameters (BatchNorm in eval / running-stats mode).
# ---------------------------------------------------------------------------
def init_params(key, h, w, outputs):
    convw = conv_out(conv_out(conv_out(w)))
    convh = conv_out(conv_out(conv_out(h)))
    lin_in = convw * convh * 32

    ks = jax.random.split(key, 16)
    p = {}
    p["w1"] = 0.1 * jax.random.normal(ks[0], (32, 1, 5, 5), jnp.float32)
    p["b1"] = 0.05 * jax.random.normal(ks[1], (32,), jnp.float32)
    p["w2"] = 0.05 * jax.random.normal(ks[2], (32, 32, 5, 5), jnp.float32)
    p["b2"] = 0.05 * jax.random.normal(ks[3], (32,), jnp.float32)
    p["w3"] = 0.05 * jax.random.normal(ks[4], (32, 32, 5, 5), jnp.float32)
    p["b3"] = 0.05 * jax.random.normal(ks[5], (32,), jnp.float32)
    for i, kk in zip((1, 2, 3), (ks[6], ks[7], ks[8])):
        k1, k2, k3, k4 = jax.random.split(kk, 4)
        p[f"g{i}"] = 1.0 + 0.1 * jax.random.normal(k1, (32,), jnp.float32)
        p[f"be{i}"] = 0.1 * jax.random.normal(k2, (32,), jnp.float32)
        p[f"m{i}"] = 0.1 * jax.random.normal(k3, (32,), jnp.float32)
        p[f"v{i}"] = 1.0 + 0.2 * jax.random.uniform(k4, (32,), jnp.float32)
    p["wh"] = 0.05 * jax.random.normal(ks[9], (outputs, lin_in), jnp.float32)
    p["bh"] = 0.05 * jax.random.normal(ks[10], (outputs,), jnp.float32)
    return p


if __name__ == "__main__":
    # 40x40 screen -> 18 -> 7 -> 2  => head input 2*2*32 = 128 features.
    B, H, W, OUT = 2, 40, 40, 4
    key = jax.random.PRNGKey(0)
    kx, kp = jax.random.split(key)
    x = jax.random.normal(kx, (B, 1, H, W), jnp.float32)
    params = init_params(kp, H, W, OUT)

    wts = prepare_params(params, H, W, OUT)          # one-time weight prep
    forward = make_dqn_forward(H, W, OUT)

    out = jax.block_until_ready(forward(x, wts))
    ref = jax.block_until_ready(ref_forward(x, params))

    assert out.shape == (B, OUT), out.shape
    max_err = float(jnp.max(jnp.abs(out - ref)))
    # bf16 operands with f32 accumulation: loosen tolerance accordingly.
    assert jnp.allclose(out, ref, rtol=2e-2, atol=2e-2), max_err
    print("KERNEL_OK")
</pallas_src>

<mosaic_0001>
module attributes {stable_mosaic.version = 11 : i64} {
  func.func @dqn_kernel(%arg0: i32, %arg1: memref<1x384x128xbf16, #tpu.memory_space<vmem>>, %arg2: memref<128x128xbf16, #tpu.memory_space<vmem>>, %arg3: memref<1x128xf32, #tpu.memory_space<vmem>>, %arg4: memref<1400x384xbf16, #tpu.memory_space<vmem>>, %arg5: memref<25x128x128xbf16, #tpu.memory_space<vmem>>, %arg6: memref<1x128xf32, #tpu.memory_space<vmem>>, %arg7: memref<200x56xbf16, #tpu.memory_space<vmem>>, %arg8: memref<25x128x128xbf16, #tpu.memory_space<vmem>>, %arg9: memref<1x128xf32, #tpu.memory_space<vmem>>, %arg10: memref<4x128x128xbf16, #tpu.memory_space<vmem>>, %arg11: memref<1x128xf32, #tpu.memory_space<vmem>>, %arg12: memref<1x8x128xf32, #tpu.memory_space<vmem>>, %arg13: memref<1400x128xf32, #tpu.memory_space<vmem>>, %arg14: memref<200x128xf32, #tpu.memory_space<vmem>>) attributes {dimension_semantics = [#tpu.dimension_semantics<parallel>], iteration_bounds = array<i64: 1>, scalar_prefetch = 0 : i64, scratch_operands = 2 : i64, tpu.core_type = #tpu.core_type<tc>, window_params = [{transform_indices = @transform_0, window_bounds = array<i64: 1, 384, 128>}, {pipeline_mode = #tpu.pipeline_mode<synchronous>, transform_indices = @transform_1, window_bounds = array<i64: 128, 128>}, {pipeline_mode = #tpu.pipeline_mode<synchronous>, transform_indices = @transform_2, window_bounds = array<i64: 1, 128>}, {pipeline_mode = #tpu.pipeline_mode<synchronous>, transform_indices = @transform_3, window_bounds = array<i64: 1400, 384>}, {pipeline_mode = #tpu.pipeline_mode<synchronous>, transform_indices = @transform_4, window_bounds = array<i64: 25, 128, 128>}, {pipeline_mode = #tpu.pipeline_mode<synchronous>, transform_indices = @transform_5, window_bounds = array<i64: 1, 128>}, {pipeline_mode = #tpu.pipeline_mode<synchronous>, transform_indices = @transform_6, window_bounds = array<i64: 200, 56>}, {pipeline_mode = #tpu.pipeline_mode<synchronous>, transform_indices = @transform_7, window_bounds = array<i64: 25, 128, 128>}, {pipeline_mode = #tpu.pipeline_mode<synchronous>, transform_indices = @transform_8, window_bounds = array<i64: 1, 128>}, {pipeline_mode = #tpu.pipeline_mode<synchronous>, transform_indices = @transform_9, window_bounds = array<i64: 4, 128, 128>}, {pipeline_mode = #tpu.pipeline_mode<synchronous>, transform_indices = @transform_10, window_bounds = array<i64: 1, 128>}, {transform_indices = @transform_11, window_bounds = array<i64: 1, 8, 128>}]} {
    %c0 = arith.constant 0 : index
    %c0_0 = arith.constant 0 : index
    %c0_1 = arith.constant 0 : index
    %0 = vector.load %arg1[%c0, %c0_0, %c0_1] : memref<1x384x128xbf16, #tpu.memory_space<vmem>>, vector<1x384x128xbf16>
    %1 = vector.shape_cast %0 : vector<1x384x128xbf16> to vector<384x128xbf16>
    %c0_2 = arith.constant 0 : index
    %c0_3 = arith.constant 0 : index
    %2 = vector.load %arg2[%c0_2, %c0_3] : memref<128x128xbf16, #tpu.memory_space<vmem>>, vector<128x128xbf16>
    %cst = arith.constant dense<0.000000e+00> : vector<384x128xf32>
    %3 = tpu.matmul %1, %2, %cst {dimension_numbers = #tpu.dot_dimension_numbers<[1], [0], [0], [1], [0, 0, 1, 1], [], []>} : vector<384x128xbf16>, vector<128x128xbf16>, vector<384x128xf32> -> vector<384x128xf32>
    %c0_4 = arith.constant 0 : index
    %c0_5 = arith.constant 0 : index
    %4 = vector.load %arg3[%c0_4, %c0_5] : memref<1x128xf32, #tpu.memory_space<vmem>>, vector<1x128xf32>
    %5 = vector.broadcast %4 : vector<1x128xf32> to vector<384x128xf32>
    %6 = arith.addf %3, %5 : vector<384x128xf32>
    %cst_6 = arith.constant 0.000000e+00 : f32
    %7 = vector.broadcast %cst_6 : f32 to vector<384x128xf32>
    %8 = arith.maximumf %6, %7 : vector<384x128xf32>
    %9 = arith.truncf %8 : vector<384x128xf32> to vector<384x128xbf16>
    %c0_7 = arith.constant 0 : index
    %c0_8 = arith.constant 0 : index
    %10 = vector.load %arg4[%c0_7, %c0_8] : memref<1400x384xbf16, #tpu.memory_space<vmem>>, vector<1400x384xbf16>
    %cst_9 = arith.constant dense<0.000000e+00> : vector<1400x128xf32>
    %11 = tpu.matmul %10, %9, %cst_9 {dimension_numbers = #tpu.dot_dimension_numbers<[1], [0], [0], [1], [0, 0, 1, 1], [], []>} : vector<1400x384xbf16>, vector<384x128xbf16>, vector<1400x128xf32> -> vector<1400x128xf32>
    %c0_10 = arith.constant 0 : index
    %c0_11 = arith.constant 0 : index
    %12 = vector.load %arg13[%c0_10, %c0_11] : memref<1400x128xf32, #tpu.memory_space<vmem>>, vector<1400x128xf32>
    tpu.vector_store %arg13[%c0_10, %c0_11], %11 {strides = array<i32>} : memref<1400x128xf32, #tpu.memory_space<vmem>>, vector<1400x128xf32>,
    %cst_12 = arith.constant 0.000000e+00 : f32
    %13 = vector.broadcast %cst_12 : f32 to vector<56x128xf32>
    %c0_i32 = arith.constant 0 : i32
    %c5_i32 = arith.constant 5 : i32
    %14 = arith.addi %c0_i32, %c5_i32 : i32
    %c1_i32 = arith.constant 1 : i32
    %15 = scf.for %arg15 = %c0_i32 to %14 step %c1_i32 iter_args(%arg16 = %13) -> (vector<56x128xf32>)  : i32 {
      %c5_i32_48 = arith.constant 5 : i32
      %63 = arith.muli %arg15, %c5_i32_48 : i32
      %c0_i32_49 = arith.constant 0 : i32
      %64 = arith.addi %63, %c0_i32_49 : i32
      %c56_i32 = arith.constant 56 : i32
      %65 = arith.muli %64, %c56_i32 : i32
      %66 = tpu.assume_multiple %65, 8 : i32
      %67 = arith.index_cast %66 : i32 to index
      %c0_50 = arith.constant 0 : index
      %68 = vector.load %arg13[%67, %c0_50] : memref<1400x128xf32, #tpu.memory_space<vmem>>, vector<56x128xf32>
      %69 = arith.truncf %68 : vector<56x128xf32> to vector<56x128xbf16>
      %70 = arith.index_cast %64 : i32 to index
      %c0_51 = arith.constant 0 : index
      %c0_52 = arith.constant 0 : index
      %71 = vector.load %arg5[%70, %c0_51, %c0_52] : memref<25x128x128xbf16, #tpu.memory_space<vmem>>, vector<1x128x128xbf16>
      %72 = vector.shape_cast %71 : vector<1x128x128xbf16> to vector<128x128xbf16>
      %cst_53 = arith.constant dense<0.000000e+00> : vector<56x128xf32>
      %73 = tpu.matmul %69, %72, %cst_53 {dimension_numbers = #tpu.dot_dimension_numbers<[1], [0], [0], [1], [0, 0, 1, 1], [], []>} : vector<56x128xbf16>, vector<128x128xbf16>, vector<56x128xf32> -> vector<56x128xf32>
      %74 = arith.addf %arg16, %73 : vector<56x128xf32>
      %c5_i32_54 = arith.constant 5 : i32
      %75 = arith.muli %arg15, %c5_i32_54 : i32
      %c1_i32_55 = arith.constant 1 : i32
      %76 = arith.addi %75, %c1_i32_55 : i32
      %c56_i32_56 = arith.constant 56 : i32
      %77 = arith.muli %76, %c56_i32_56 : i32
      %78 = tpu.assume_multiple %77, 8 : i32
      %79 = arith.index_cast %78 : i32 to index
      %c0_57 = arith.constant 0 : index
      %80 = vector.load %arg13[%79, %c0_57] : memref<1400x128xf32, #tpu.memory_space<vmem>>, vector<56x128xf32>
      %81 = arith.truncf %80 : vector<56x128xf32> to vector<56x128xbf16>
      %82 = arith.index_cast %76 : i32 to index
      %c0_58 = arith.constant 0 : index
      %c0_59 = arith.constant 0 : index
      %83 = vector.load %arg5[%82, %c0_58, %c0_59] : memref<25x128x128xbf16, #tpu.memory_space<vmem>>, vector<1x128x128xbf16>
      %84 = vector.shape_cast %83 : vector<1x128x128xbf16> to vector<128x128xbf16>
      %cst_60 = arith.constant dense<0.000000e+00> : vector<56x128xf32>
      %85 = tpu.matmul %81, %84, %cst_60 {dimension_numbers = #tpu.dot_dimension_numbers<[1], [0], [0], [1], [0, 0, 1, 1], [], []>} : vector<56x128xbf16>, vector<128x128xbf16>, vector<56x128xf32> -> vector<56x128xf32>
      %86 = arith.addf %74, %85 : vector<56x128xf32>
      %c5_i32_61 = arith.constant 5 : i32
      %87 = arith.muli %arg15, %c5_i32_61 : i32
      %c2_i32 = arith.constant 2 : i32
      %88 = arith.addi %87, %c2_i32 : i32
      %c56_i32_62 = arith.constant 56 : i32
      %89 = arith.muli %88, %c56_i32_62 : i32
      %90 = tpu.assume_multiple %89, 8 : i32
      %91 = arith.index_cast %90 : i32 to index
      %c0_63 = arith.constant 0 : index
      %92 = vector.load %arg13[%91, %c0_63] : memref<1400x128xf32, #tpu.memory_space<vmem>>, vector<56x128xf32>
      %93 = arith.truncf %92 : vector<56x128xf32> to vector<56x128xbf16>
      %94 = arith.index_cast %88 : i32 to index
      %c0_64 = arith.constant 0 : index
      %c0_65 = arith.constant 0 : index
      %95 = vector.load %arg5[%94, %c0_64, %c0_65] : memref<25x128x128xbf16, #tpu.memory_space<vmem>>, vector<1x128x128xbf16>
      %96 = vector.shape_cast %95 : vector<1x128x128xbf16> to vector<128x128xbf16>
      %cst_66 = arith.constant dense<0.000000e+00> : vector<56x128xf32>
      %97 = tpu.matmul %93, %96, %cst_66 {dimension_numbers = #tpu.dot_dimension_numbers<[1], [0], [0], [1], [0, 0, 1, 1], [], []>} : vector<56x128xbf16>, vector<128x128xbf16>, vector<56x128xf32> -> vector<56x128xf32>
      %98 = arith.addf %86, %97 : vector<56x128xf32>
      %c5_i32_67 = arith.constant 5 : i32
      %99 = arith.muli %arg15, %c5_i32_67 : i32
      %c3_i32 = arith.constant 3 : i32
      %100 = arith.addi %99, %c3_i32 : i32
      %c56_i32_68 = arith.constant 56 : i32
      %101 = arith.muli %100, %c56_i32_68 : i32
      %102 = tpu.assume_multiple %101, 8 : i32
      %103 = arith.index_cast %102 : i32 to index
      %c0_69 = arith.constant 0 : index
      %104 = vector.load %arg13[%103, %c0_69] : memref<1400x128xf32, #tpu.memory_space<vmem>>, vector<56x128xf32>
      %105 = arith.truncf %104 : vector<56x128xf32> to vector<56x128xbf16>
      %106 = arith.index_cast %100 : i32 to index
      %c0_70 = arith.constant 0 : index
      %c0_71 = arith.constant 0 : index
      %107 = vector.load %arg5[%106, %c0_70, %c0_71] : memref<25x128x128xbf16, #tpu.memory_space<vmem>>, vector<1x128x128xbf16>
      %108 = vector.shape_cast %107 : vector<1x128x128xbf16> to vector<128x128xbf16>
      %cst_72 = arith.constant dense<0.000000e+00> : vector<56x128xf32>
      %109 = tpu.matmul %105, %108, %cst_72 {dimension_numbers = #tpu.dot_dimension_numbers<[1], [0], [0], [1], [0, 0, 1, 1], [], []>} : vector<56x128xbf16>, vector<128x128xbf16>, vector<56x128xf32> -> vector<56x128xf32>
      %110 = arith.addf %98, %109 : vector<56x128xf32>
      %c5_i32_73 = arith.constant 5 : i32
      %111 = arith.muli %arg15, %c5_i32_73 : i32
      %c4_i32 = arith.constant 4 : i32
      %112 = arith.addi %111, %c4_i32 : i32
      %c56_i32_74 = arith.constant 56 : i32
      %113 = arith.muli %112, %c56_i32_74 : i32
      %114 = tpu.assume_multiple %113, 8 : i32
      %115 = arith.index_cast %114 : i32 to index
      %c0_75 = arith.constant 0 : index
      %116 = vector.load %arg13[%115, %c0_75] : memref<1400x128xf32, #tpu.memory_space<vmem>>, vector<56x128xf32>
      %117 = arith.truncf %116 : vector<56x128xf32> to vector<56x128xbf16>
      %118 = arith.index_cast %112 : i32 to index
      %c0_76 = arith.constant 0 : index
      %c0_77 = arith.constant 0 : index
      %119 = vector.load %arg5[%118, %c0_76, %c0_77] : memref<25x128x128xbf16, #tpu.memory_space<vmem>>, vector<1x128x128xbf16>
      %120 = vector.shape_cast %119 : vector<1x128x128xbf16> to vector<128x128xbf16>
      %cst_78 = arith.constant dense<0.000000e+00> : vector<56x128xf32>
      %121 = tpu.matmul %117, %120, %cst_78 {dimension_numbers = #tpu.dot_dimension_numbers<[1], [0], [0], [1], [0, 0, 1, 1], [], []>} : vector<56x128xbf16>, vector<128x128xbf16>, vector<56x128xf32> -> vector<56x128xf32>
      %122 = arith.addf %110, %121 : vector<56x128xf32>
      scf.yield %122 : vector<56x128xf32>
    }
    %c5_i32_13 = arith.constant 5 : i32
    %c0_14 = arith.constant 0 : index
    %c0_15 = arith.constant 0 : index
    %16 = vector.load %arg6[%c0_14, %c0_15] : memref<1x128xf32, #tpu.memory_space<vmem>>, vector<1x128xf32>
    %17 = vector.broadcast %16 : vector<1x128xf32> to vector<56x128xf32>
    %18 = arith.addf %15, %17 : vector<56x128xf32>
    %cst_16 = arith.constant 0.000000e+00 : f32
    %19 = vector.broadcast %cst_16 : f32 to vector<56x128xf32>
    %20 = arith.maximumf %18, %19 : vector<56x128xf32>
    %21 = arith.truncf %20 : vector<56x128xf32> to vector<56x128xbf16>
    %c0_17 = arith.constant 0 : index
    %c0_18 = arith.constant 0 : index
    %22 = vector.load %arg7[%c0_17, %c0_18] : memref<200x56xbf16, #tpu.memory_space<vmem>>, vector<200x56xbf16>
    %cst_19 = arith.constant dense<0.000000e+00> : vector<200x128xf32>
    %23 = tpu.matmul %22, %21, %cst_19 {dimension_numbers = #tpu.dot_dimension_numbers<[1], [0], [0], [1], [0, 0, 1, 1], [], []>} : vector<200x56xbf16>, vector<56x128xbf16>, vector<200x128xf32> -> vector<200x128xf32>
    %c0_20 = arith.constant 0 : index
    %c0_21 = arith.constant 0 : index
    %24 = vector.load %arg14[%c0_20, %c0_21] : memref<200x128xf32, #tpu.memory_space<vmem>>, vector<200x128xf32>
    tpu.vector_store %arg14[%c0_20, %c0_21], %23 {strides = array<i32>} : memref<200x128xf32, #tpu.memory_space<vmem>>, vector<200x128xf32>,
    %cst_22 = arith.constant 0.000000e+00 : f32
    %25 = vector.broadcast %cst_22 : f32 to vector<8x128xf32>
    %c0_i32_23 = arith.constant 0 : i32
    %c5_i32_24 = arith.constant 5 : i32
    %26 = arith.addi %c0_i32_23, %c5_i32_24 : i32
    %c1_i32_25 = arith.constant 1 : i32
    %27 = scf.for %arg15 = %c0_i32_23 to %26 step %c1_i32_25 iter_args(%arg16 = %25) -> (vector<8x128xf32>)  : i32 {
      %c5_i32_48 = arith.constant 5 : i32
      %63 = arith.muli %arg15, %c5_i32_48 : i32
      %c0_i32_49 = arith.constant 0 : i32
      %64 = arith.addi %63, %c0_i32_49 : i32
      %c8_i32 = arith.constant 8 : i32
      %65 = arith.muli %64, %c8_i32 : i32
      %66 = tpu.assume_multiple %65, 8 : i32
      %67 = arith.index_cast %66 : i32 to index
      %c0_50 = arith.constant 0 : index
      %68 = vector.load %arg14[%67, %c0_50] : memref<200x128xf32, #tpu.memory_space<vmem>>, vector<8x128xf32>
      %69 = arith.truncf %68 : vector<8x128xf32> to vector<8x128xbf16>
      %70 = arith.index_cast %64 : i32 to index
      %c0_51 = arith.constant 0 : index
      %c0_52 = arith.constant 0 : index
      %71 = vector.load %arg8[%70, %c0_51, %c0_52] : memref<25x128x128xbf16, #tpu.memory_space<vmem>>, vector<1x128x128xbf16>
      %72 = vector.shape_cast %71 : vector<1x128x128xbf16> to vector<128x128xbf16>
      %cst_53 = arith.constant dense<0.000000e+00> : vector<8x128xf32>
      %73 = tpu.matmul %69, %72, %cst_53 {dimension_numbers = #tpu.dot_dimension_numbers<[1], [0], [0], [1], [0, 0, 1, 1], [], []>} : vector<8x128xbf16>, vector<128x128xbf16>, vector<8x128xf32> -> vector<8x128xf32>
      %74 = arith.addf %arg16, %73 : vector<8x128xf32>
      %c5_i32_54 = arith.constant 5 : i32
      %75 = arith.muli %arg15, %c5_i32_54 : i32
      %c1_i32_55 = arith.constant 1 : i32
      %76 = arith.addi %75, %c1_i32_55 : i32
      %c8_i32_56 = arith.constant 8 : i32
      %77 = arith.muli %76, %c8_i32_56 : i32
      %78 = tpu.assume_multiple %77, 8 : i32
      %79 = arith.index_cast %78 : i32 to index
      %c0_57 = arith.constant 0 : index
      %80 = vector.load %arg14[%79, %c0_57] : memref<200x128xf32, #tpu.memory_space<vmem>>, vector<8x128xf32>
      %81 = arith.truncf %80 : vector<8x128xf32> to vector<8x128xbf16>
      %82 = arith.index_cast %76 : i32 to index
      %c0_58 = arith.constant 0 : index
      %c0_59 = arith.constant 0 : index
      %83 = vector.load %arg8[%82, %c0_58, %c0_59] : memref<25x128x128xbf16, #tpu.memory_space<vmem>>, vector<1x128x128xbf16>
      %84 = vector.shape_cast %83 : vector<1x128x128xbf16> to vector<128x128xbf16>
      %cst_60 = arith.constant dense<0.000000e+00> : vector<8x128xf32>
      %85 = tpu.matmul %81, %84, %cst_60 {dimension_numbers = #tpu.dot_dimension_numbers<[1], [0], [0], [1], [0, 0, 1, 1], [], []>} : vector<8x128xbf16>, vector<128x128xbf16>, vector<8x128xf32> -> vector<8x128xf32>
      %86 = arith.addf %74, %85 : vector<8x128xf32>
      %c5_i32_61 = arith.constant 5 : i32
      %87 = arith.muli %arg15, %c5_i32_61 : i32
      %c2_i32 = arith.constant 2 : i32
      %88 = arith.addi %87, %c2_i32 : i32
      %c8_i32_62 = arith.constant 8 : i32
      %89 = arith.muli %88, %c8_i32_62 : i32
      %90 = tpu.assume_multiple %89, 8 : i32
      %91 = arith.index_cast %90 : i32 to index
      %c0_63 = arith.constant 0 : index
      %92 = vector.load %arg14[%91, %c0_63] : memref<200x128xf32, #tpu.memory_space<vmem>>, vector<8x128xf32>
      %93 = arith.truncf %92 : vector<8x128xf32> to vector<8x128xbf16>
      %94 = arith.index_cast %88 : i32 to index
      %c0_64 = arith.constant 0 : index
      %c0_65 = arith.constant 0 : index
      %95 = vector.load %arg8[%94, %c0_64, %c0_65] : memref<25x128x128xbf16, #tpu.memory_space<vmem>>, vector<1x128x128xbf16>
      %96 = vector.shape_cast %95 : vector<1x128x128xbf16> to vector<128x128xbf16>
      %cst_66 = arith.constant dense<0.000000e+00> : vector<8x128xf32>
      %97 = tpu.matmul %93, %96, %cst_66 {dimension_numbers = #tpu.dot_dimension_numbers<[1], [0], [0], [1], [0, 0, 1, 1], [], []>} : vector<8x128xbf16>, vector<128x128xbf16>, vector<8x128xf32> -> vector<8x128xf32>
      %98 = arith.addf %86, %97 : vector<8x128xf32>
      %c5_i32_67 = arith.constant 5 : i32
      %99 = arith.muli %arg15, %c5_i32_67 : i32
      %c3_i32 = arith.constant 3 : i32
      %100 = arith.addi %99, %c3_i32 : i32
      %c8_i32_68 = arith.constant 8 : i32
      %101 = arith.muli %100, %c8_i32_68 : i32
      %102 = tpu.assume_multiple %101, 8 : i32
      %103 = arith.index_cast %102 : i32 to index
      %c0_69 = arith.constant 0 : index
      %104 = vector.load %arg14[%103, %c0_69] : memref<200x128xf32, #tpu.memory_space<vmem>>, vector<8x128xf32>
      %105 = arith.truncf %104 : vector<8x128xf32> to vector<8x128xbf16>
      %106 = arith.index_cast %100 : i32 to index
      %c0_70 = arith.constant 0 : index
      %c0_71 = arith.constant 0 : index
      %107 = vector.load %arg8[%106, %c0_70, %c0_71] : memref<25x128x128xbf16, #tpu.memory_space<vmem>>, vector<1x128x128xbf16>
      %108 = vector.shape_cast %107 : vector<1x128x128xbf16> to vector<128x128xbf16>
      %cst_72 = arith.constant dense<0.000000e+00> : vector<8x128xf32>
      %109 = tpu.matmul %105, %108, %cst_72 {dimension_numbers = #tpu.dot_dimension_numbers<[1], [0], [0], [1], [0, 0, 1, 1], [], []>} : vector<8x128xbf16>, vector<128x128xbf16>, vector<8x128xf32> -> vector<8x128xf32>
      %110 = arith.addf %98, %109 : vector<8x128xf32>
      %c5_i32_73 = arith.constant 5 : i32
      %111 = arith.muli %arg15, %c5_i32_73 : i32
      %c4_i32 = arith.constant 4 : i32
      %112 = arith.addi %111, %c4_i32 : i32
      %c8_i32_74 = arith.constant 8 : i32
      %113 = arith.muli %112, %c8_i32_74 : i32
      %114 = tpu.assume_multiple %113, 8 : i32
      %115 = arith.index_cast %114 : i32 to index
      %c0_75 = arith.constant 0 : index
      %116 = vector.load %arg14[%115, %c0_75] : memref<200x128xf32, #tpu.memory_space<vmem>>, vector<8x128xf32>
      %117 = arith.truncf %116 : vector<8x128xf32> to vector<8x128xbf16>
      %118 = arith.index_cast %112 : i32 to index
      %c0_76 = arith.constant 0 : index
      %c0_77 = arith.constant 0 : index
      %119 = vector.load %arg8[%118, %c0_76, %c0_77] : memref<25x128x128xbf16, #tpu.memory_space<vmem>>, vector<1x128x128xbf16>
      %120 = vector.shape_cast %119 : vector<1x128x128xbf16> to vector<128x128xbf16>
      %cst_78 = arith.constant dense<0.000000e+00> : vector<8x128xf32>
      %121 = tpu.matmul %117, %120, %cst_78 {dimension_numbers = #tpu.dot_dimension_numbers<[1], [0], [0], [1], [0, 0, 1, 1], [], []>} : vector<8x128xbf16>, vector<128x128xbf16>, vector<8x128xf32> -> vector<8x128xf32>
      %122 = arith.addf %110, %121 : vector<8x128xf32>
      scf.yield %122 : vector<8x128xf32>
    }
    %c5_i32_26 = arith.constant 5 : i32
    %c0_27 = arith.constant 0 : index
    %c0_28 = arith.constant 0 : index
    %28 = vector.load %arg9[%c0_27, %c0_28] : memref<1x128xf32, #tpu.memory_space<vmem>>, vector<1x128xf32>
    %29 = vector.broadcast %28 : vector<1x128xf32> to vector<8x128xf32>
    %30 = arith.addf %27, %29 : vector<8x128xf32>
    %cst_29 = arith.constant 0.000000e+00 : f32
    %31 = vector.broadcast %cst_29 : f32 to vector<8x128xf32>
    %32 = arith.maximumf %30, %31 : vector<8x128xf32>
    %c0_30 = arith.constant 0 : index
    %c0_31 = arith.constant 0 : index
    %33 = vector.load %arg11[%c0_30, %c0_31] : memref<1x128xf32, #tpu.memory_space<vmem>>, vector<1x128xf32>
    %34 = vector.extract_strided_slice %32 {offsets = [0, 0], sizes = [1, 128], strides = [1, 1]} : vector<8x128xf32> to vector<1x128xf32>
    %35 = arith.truncf %34 : vector<1x128xf32> to vector<1x128xbf16>
    %c0_32 = arith.constant 0 : index
    %c0_33 = arith.constant 0 : index
    %c0_34 = arith.constant 0 : index
    %36 = vector.load %arg10[%c0_32, %c0_33, %c0_34] : memref<4x128x128xbf16, #tpu.memory_space<vmem>>, vector<1x128x128xbf16>
    %37 = vector.shape_cast %36 : vector<1x128x128xbf16> to vector<128x128xbf16>
    %cst_35 = arith.constant dense<0.000000e+00> : vector<1x128xf32>
    %38 = tpu.matmul %35, %37, %cst_35 {dimension_numbers = #tpu.dot_dimension_numbers<[1], [0], [0], [1], [0, 0, 1, 1], [], []>} : vector<1x128xbf16>, vector<128x128xbf16>, vector<1x128xf32> -> vector<1x128xf32>
    %39 = arith.addf %33, %38 : vector<1x128xf32>
    %40 = vector.extract_strided_slice %32 {offsets = [1, 0], sizes = [1, 128], strides = [1, 1]} : vector<8x128xf32> to vector<1x128xf32>
    %41 = arith.truncf %40 : vector<1x128xf32> to vector<1x128xbf16>
    %c1 = arith.constant 1 : index
    %c0_36 = arith.constant 0 : index
    %c0_37 = arith.constant 0 : index
    %42 = vector.load %arg10[%c1, %c0_36, %c0_37] : memref<4x128x128xbf16, #tpu.memory_space<vmem>>, vector<1x128x128xbf16>
    %43 = vector.shape_cast %42 : vector<1x128x128xbf16> to vector<128x128xbf16>
    %cst_38 = arith.constant dense<0.000000e+00> : vector<1x128xf32>
    %44 = tpu.matmul %41, %43, %cst_38 {dimension_numbers = #tpu.dot_dimension_numbers<[1], [0], [0], [1], [0, 0, 1, 1], [], []>} : vector<1x128xbf16>, vector<128x128xbf16>, vector<1x128xf32> -> vector<1x128xf32>
    %45 = arith.addf %39, %44 : vector<1x128xf32>
    %46 = vector.extract_strided_slice %32 {offsets = [2, 0], sizes = [1, 128], strides = [1, 1]} : vector<8x128xf32> to vector<1x128xf32>
    %47 = arith.truncf %46 : vector<1x128xf32> to vector<1x128xbf16>
    %c2 = arith.constant 2 : index
    %c0_39 = arith.constant 0 : index
    %c0_40 = arith.constant 0 : index
    %48 = vector.load %arg10[%c2, %c0_39, %c0_40] : memref<4x128x128xbf16, #tpu.memory_space<vmem>>, vector<1x128x128xbf16>
    %49 = vector.shape_cast %48 : vector<1x128x128xbf16> to vector<128x128xbf16>
    %cst_41 = arith.constant dense<0.000000e+00> : vector<1x128xf32>
    %50 = tpu.matmul %47, %49, %cst_41 {dimension_numbers = #tpu.dot_dimension_numbers<[1], [0], [0], [1], [0, 0, 1, 1], [], []>} : vector<1x128xbf16>, vector<128x128xbf16>, vector<1x128xf32> -> vector<1x128xf32>
    %51 = arith.addf %45, %50 : vector<1x128xf32>
    %52 = vector.extract_strided_slice %32 {offsets = [3, 0], sizes = [1, 128], strides = [1, 1]} : vector<8x128xf32> to vector<1x128xf32>
    %53 = arith.truncf %52 : vector<1x128xf32> to vector<1x128xbf16>
    %c3 = arith.constant 3 : index
    %c0_42 = arith.constant 0 : index
    %c0_43 = arith.constant 0 : index
    %54 = vector.load %arg10[%c3, %c0_42, %c0_43] : memref<4x128x128xbf16, #tpu.memory_space<vmem>>, vector<1x128x128xbf16>
    %55 = vector.shape_cast %54 : vector<1x128x128xbf16> to vector<128x128xbf16>
    %cst_44 = arith.constant dense<0.000000e+00> : vector<1x128xf32>
    %56 = tpu.matmul %53, %55, %cst_44 {dimension_numbers = #tpu.dot_dimension_numbers<[1], [0], [0], [1], [0, 0, 1, 1], [], []>} : vector<1x128xbf16>, vector<128x128xbf16>, vector<1x128xf32> -> vector<1x128xf32>
    %57 = arith.addf %51, %56 : vector<1x128xf32>
    %58 = vector.shape_cast %57 : vector<1x128xf32> to vector<1x128xf32>
    %59 = vector.broadcast %58 : vector<1x128xf32> to vector<8x128xf32>
    %c0_45 = arith.constant 0 : index
    %c0_46 = arith.constant 0 : index
    %c0_47 = arith.constant 0 : index
    %60 = vector.load %arg12[%c0_45, %c0_46, %c0_47] : memref<1x8x128xf32, #tpu.memory_space<vmem>>, vector<1x8x128xf32>
    %61 = vector.shape_cast %60 : vector<1x8x128xf32> to vector<8x128xf32>
    %62 = vector.shape_cast %59 : vector<8x128xf32> to vector<1x8x128xf32>
    tpu.vector_store %arg12[%c0_45, %c0_46, %c0_47], %62 {strides = array<i32>} : memref<1x8x128xf32, #tpu.memory_space<vmem>>, vector<1x8x128xf32>,
    return
  }
  func.func @transform_0(%arg0: i32) -> (i32, i32, i32) {
    %c0_i32 = arith.constant 0 : i32
    %c0_i32_0 = arith.constant 0 : i32
    %c0_i32_1 = arith.constant 0 : i32
    return %arg0, %c0_i32, %c0_i32_0 : i32, i32, i32
  }
  func.func @transform_1(%arg0: i32) -> (i32, i32) {
    %c0_i32 = arith.constant 0 : i32
    %c0_i32_0 = arith.constant 0 : i32
    %c0_i32_1 = arith.constant 0 : i32
    return %c0_i32, %c0_i32_0 : i32, i32
  }
  func.func @transform_2(%arg0: i32) -> (i32, i32) {
    %c0_i32 = arith.constant 0 : i32
    %c0_i32_0 = arith.constant 0 : i32
    %c0_i32_1 = arith.constant 0 : i32
    return %c0_i32, %c0_i32_0 : i32, i32
  }
  func.func @transform_3(%arg0: i32) -> (i32, i32) {
    %c0_i32 = arith.constant 0 : i32
    %c0_i32_0 = arith.constant 0 : i32
    %c0_i32_1 = arith.constant 0 : i32
    return %c0_i32, %c0_i32_0 : i32, i32
  }
  func.func @transform_4(%arg0: i32) -> (i32, i32, i32) {
    %c0_i32 = arith.constant 0 : i32
    %c0_i32_0 = arith.constant 0 : i32
    %c0_i32_1 = arith.constant 0 : i32
    %c0_i32_2 = arith.constant 0 : i32
    return %c0_i32, %c0_i32_0, %c0_i32_1 : i32, i32, i32
  }
  func.func @transform_5(%arg0: i32) -> (i32, i32) {
    %c0_i32 = arith.constant 0 : i32
    %c0_i32_0 = arith.constant 0 : i32
    %c0_i32_1 = arith.constant 0 : i32
    return %c0_i32, %c0_i32_0 : i32, i32
  }
  func.func @transform_6(%arg0: i32) -> (i32, i32) {
    %c0_i32 = arith.constant 0 : i32
    %c0_i32_0 = arith.constant 0 : i32
    %c0_i32_1 = arith.constant 0 : i32
    return %c0_i32, %c0_i32_0 : i32, i32
  }
  func.func @transform_7(%arg0: i32) -> (i32, i32, i32) {
    %c0_i32 = arith.constant 0 : i32
    %c0_i32_0 = arith.constant 0 : i32
    %c0_i32_1 = arith.constant 0 : i32
    %c0_i32_2 = arith.constant 0 : i32
    return %c0_i32, %c0_i32_0, %c0_i32_1 : i32, i32, i32
  }
  func.func @transform_8(%arg0: i32) -> (i32, i32) {
    %c0_i32 = arith.constant 0 : i32
    %c0_i32_0 = arith.constant 0 : i32
    %c0_i32_1 = arith.constant 0 : i32
    return %c0_i32, %c0_i32_0 : i32, i32
  }
  func.func @transform_9(%arg0: i32) -> (i32, i32, i32) {
    %c0_i32 = arith.constant 0 : i32
    %c0_i32_0 = arith.constant 0 : i32
    %c0_i32_1 = arith.constant 0 : i32
    %c0_i32_2 = arith.constant 0 : i32
    return %c0_i32, %c0_i32_0, %c0_i32_1 : i32, i32, i32
  }
  func.func @transform_10(%arg0: i32) -> (i32, i32) {
    %c0_i32 = arith.constant 0 : i32
    %c0_i32_0 = arith.constant 0 : i32
    %c0_i32_1 = arith.constant 0 : i32
    return %c0_i32, %c0_i32_0 : i32, i32
  }
  func.func @transform_11(%arg0: i32) -> (i32, i32, i32) {
    %c0_i32 = arith.constant 0 : i32
    %c0_i32_0 = arith.constant 0 : i32
    %c0_i32_1 = arith.constant 0 : i32
    return %arg0, %c0_i32, %c0_i32_0 : i32, i32, i32
  }
}

</mosaic_0001>

<bundles_post_ra>
// kernel: squeeze.51
= control target key start
LH: loop header
LB: loop body
LE: loop exit
PB: predicated region body
PF: predicated region fallthrough
CT: control target
= control target key end

     0   :  { %s37_s8 = smov 32   ;;  %vm7_vm0 = vcmask 261120   ;;  %s38_s9 = smov 64   ;;  %s55_s0 = inlined_call_operand.vmem [shape: f32[128], index: 0, kind: input, shape index: {}]   ;;  %s56_s1 = inlined_call_operand.vmem [shape: f32[4,32], index: 1, kind: output, shape index: {}]  }
   0x1   :  { %v4_v0 = vld [vmem:[%s55_s0] sm:$0x1]  ;;  %s36_s0 = smov 96  }
   0x2   :  { %5 = vst [vmem:[#allocation1] sm:$0x1] %v4_v0 }
   0x9   :  { %v9_v1 = vld [vmem:[#allocation1] sm:$0x1]  }
   0xa   :  { %v21_v2 = vld [vmem:[#allocation1] sm:$0x1]   ;;  %10 = vrot.lane.b32.xlu0 %v9_v1, %s36_s0 }
   0xb   :  { %22 = vrot.lane.b32.xlu1 %v21_v2, %s37_s8  ;;  %v6_v3 = vld [vmem:[#allocation1] sm:$0x1]  }
   0xc   :  { %v15_v4 = vld [vmem:[#allocation1] sm:$0x1]   ;;  %8 = vst.msk [vmem:[#allocation0] sm:$0x1] %vm7_vm0, %v6_v3  }
   0xe   :  { %16 = vrot.lane.b32.xlu0 %v15_v4, %s38_s9 }
  0x7c   :  { %v11_v5 = vpop.permute.xlu0 %10  }
  0x7d   :  { %v23_v6 = vpop.permute.xlu1 %22   ;;  %14 = vst.msk [vmem:[#allocation0 + $0x1] sm:$0x1] %vm7_vm0, %v11_v5  }
  0x7e   :  { %26 = vst.msk [vmem:[#allocation0 + $0x3] sm:$0x1] %vm7_vm0, %v23_v6  }
  0x80   :  { %v17_v7 = vpop.permute.xlu0 %16  }
  0x81   :  { %20 = vst.msk [vmem:[#allocation0 + $0x2] sm:$0x1] %vm7_vm0, %v17_v7  }
  0x88   :  { %v30_v8 = vld [vmem:[#allocation0] sm:$0xf] }
  0x89   :  { %32 = vst [vmem:[%s56_s1] sm:$0xf] %v30_v8 }

// kernel: forward.1
= control target key start
LH: loop header
LB: loop body
LE: loop exit
PB: predicated region body
PF: predicated region fallthrough
CT: control target
= control target key end

     0   :  { %16 = vsyncpa [#allocation5], 0  ;;  %s8575_s17 = smov [#allocation4]   ;;  %s10430_s0 = inlined_call_operand.vmem [shape: bf16[1,384,128], index: 0, kind: input, shape index: {}]   ;;  %s10431_s1 = inlined_call_operand.vmem [shape: bf16[128,128], index: 1, kind: input, shape index: {}]   ;;  %s10432_s2 = inlined_call_operand.vmem [shape: f32[1,128], index: 2, kind: input, shape index: {}]   ;;  %s10433_s3 = inlined_call_operand.vmem [shape: bf16[1400,384], index: 3, kind: input, shape index: {}]   ;;  %s10434_s4 = inlined_call_operand.vmem [shape: bf16[25,128,128], index: 4, kind: input, shape index: {}]   ;;  %s10435_s5 = inlined_call_operand.vmem [shape: f32[1,128], index: 5, kind: input, shape index: {}]   ;;  %s10436_s6 = inlined_call_operand.vmem [shape: bf16[200,56], index: 6, kind: input, shape index: {}]   ;;  %s10437_s7 = inlined_call_operand.vmem [shape: bf16[25,128,128], index: 7, kind: input, shape index: {}]   ;;  %s10438_s8 = inlined_call_operand.vmem [shape: f32[1,128], index: 8, kind: input, shape index: {}]   ;;  %s10439_s9 = inlined_call_operand.hbm [shape: bf16[4,128,128], index: 9, kind: input, shape index: {}]   ;;  %s10440_s10 = inlined_call_operand.vmem [shape: f32[1,128], index: 10, kind: input, shape index: {}]   ;;  %s10441_s11 = inlined_call_operand.vmem [shape: f32[1,8,128], index: 11, kind: output, shape index: {}]  }
   0x1   :  { %s40_s18 = sshll.u32 %s8575_s17, 4  ;;  %s8471_s21 = scalar_lea.hbm %s10439_s9, 4096  ;;  %s41_s18 = int_to_ptr.vmem [resolvable:$true] %s40_s18 }
   0x2   :  { %p8472_p0 = scmp.ne.s32.totalorder %s10439_s9, %s8471_s21  ;;  %p8475_p1 = scmp.lt.u32.totalorder %s8471_s21, %s10439_s9 }
   0x4   :  { %p8477_p2 = pnand %p8475_p1, %p8472_p0 }
   0x6   :  { %8480 = shalt.err (!%p8477_p2)
}
   0x7   :  { %s8481_s26 = scalar_lea.vmem %s41_s18, 4096  ;;  %p8486_p4 = scmp.lt.s32.totalorder %s41_s18, %s41_s18 }
   0x8   :  { %p8482_p3 = scmp.ne.s32.totalorder %s41_s18, %s8481_s26  ;;  %p8487_p5 = scmp.lt.s32.totalorder %s8481_s26, %s8481_s26 }
   0xa   :  { %p8488_p6 = por %p8487_p5, %p8486_p4 }
   0xc   :  { %p8489_p7 = pnand %p8488_p6, %p8482_p3 }
   0xe   :  { %8492 = shalt.err (!%p8489_p7)
}
   0xf   :  { %s8576_s27 = smov 64   ;;  %s8577_s28 = smov 4  }
  0x10   :  { %46 = dma.hbm_to_vmem [thread:$0]  %s10439_s9, 4096, %s41_s18, [#allocation5], %s8576_s27, %s8576_s27, %s8577_s28  }
  0x11   :  { %8533 = dma.done.wait [#allocation5], 4096  }
  0x12   :  { %8534 = vsyncadd [#allocation5], 4294963200  ;;  %v7963_v0 = vld [vmem:[%s10431_s1] sm:$0xff]   ;;  %v7964_v1 = vld [vmem:[%s10431_s1 + $0x8] sm:$0xff]   ;;  %v8578_v32 = vmov 0  }
  0x13   :  { %7142 = vmatprep.subr.bf16.mxu0 %v7963_v0  ;;  %v7965_v2 = vld [vmem:[%s10431_s1 + $0x10] sm:$0xff]   ;;  %v7966_v3 = vld [vmem:[%s10431_s1 + $0x18] sm:$0xff]   ;;  %v7971_v4 = vld [vmem:[%s10430_s0] sm:$0xff]   ;;  %7758 = vmatprep.subr.bf16.mxu1 %v8578_v32 }
  0x14   :  { %7143 = vmatpush3.bf16.msra.mxu0 %v7963_v0  ;;  %7158 = vmatprep.mubr.bf16.mxu0 %v7971_v4  ;;  %v7967_v5 = vld [vmem:[%s10431_s1 + $0x20] sm:$0xff]   ;;  %v7968_v6 = vld [vmem:[%s10431_s1 + $0x28] sm:$0xff]   ;;  %v7969_v7 = vld [vmem:[%s10431_s1 + $0x30] sm:$0xff]  }
  0x15   :  { %7144 = vmatprep.subr.bf16.mxu0 %v7964_v1  ;;  %v7970_v8 = vld [vmem:[%s10431_s1 + $0x38] sm:$0xff]   ;;  %v7972_v9 = vld [vmem:[%s10430_s0 + $0x8] sm:$0xff]   ;;  %v7973_v10 = vld [vmem:[%s10430_s0 + $0x10] sm:$0xff]  }
  0x16   :  { %v7974_v11 = vld [vmem:[%s10430_s0 + $0x18] sm:$0xff]   ;;  %v7975_v12 = vld [vmem:[%s10430_s0 + $0x20] sm:$0xff]   ;;  %v7976_v13 = vld [vmem:[%s10430_s0 + $0x28] sm:$0xff]  }
  0x17   :  { %v7977_v14 = vld [vmem:[%s10430_s0 + $0x30] sm:$0xff]   ;;  %v7978_v15 = vld [vmem:[%s10430_s0 + $0x38] sm:$0xff]   ;;  %v7979_v16 = vld [vmem:[%s10430_s0 + $0x40] sm:$0xff]  }
  0x18   :  { %7145 = vmatpush3.bf16.msra.mxu0 %v7964_v1  ;;  %v7980_v17 = vld [vmem:[%s10430_s0 + $0x48] sm:$0xff]   ;;  %v7981_v18 = vld [vmem:[%s10430_s0 + $0x50] sm:$0xff]   ;;  %v7982_v19 = vld [vmem:[%s10430_s0 + $0x58] sm:$0xff]  }
  0x19   :  { %7146 = vmatprep.subr.bf16.mxu0 %v7965_v2  ;;  %v7983_v20 = vld [vmem:[%s10430_s0 + $0x60] sm:$0xff]   ;;  %v7984_v21 = vld [vmem:[%s10430_s0 + $0x68] sm:$0xff]   ;;  %v7985_v22 = vld [vmem:[%s10430_s0 + $0x70] sm:$0xff]  }
  0x1a   :  { %v7986_v23 = vld [vmem:[%s10430_s0 + $0x78] sm:$0xff]   ;;  %v7987_v24 = vld [vmem:[%s10430_s0 + $0x80] sm:$0xff]   ;;  %v7988_v25 = vld [vmem:[%s10430_s0 + $0x88] sm:$0xff]  }
  0x1b   :  { %v7989_v26 = vld [vmem:[%s10430_s0 + $0x90] sm:$0xff]   ;;  %v7990_v27 = vld [vmem:[%s10430_s0 + $0x98] sm:$0xff]   ;;  %v7991_v28 = vld [vmem:[%s10430_s0 + $0xa0] sm:$0xff]  }
  0x1c   :  { %7147 = vmatpush3.bf16.msra.mxu0 %v7965_v2  ;;  %v7992_v29 = vld [vmem:[%s10430_s0 + $0xa8] sm:$0xff]   ;;  %v7993_v30 = vld [vmem:[%s10430_s0 + $0xb0] sm:$0xff]   ;;  %v7994_v31 = vld [vmem:[%s10430_s0 + $0xb8] sm:$0xff]  }
  0x1d   :  { %7148 = vmatprep.subr.bf16.mxu0 %v7966_v3  ;;  %v7997_v33 = vld [vmem:[%s10433_s3 + $0x4] ss:$12 sps:$4 sm:$0xff]   ;;  %v8000_v34 = vld [vmem:[%s10433_s3 + $0x1b4] ss:$12 sps:$4 sm:$0xff]  }
  0x1e   :  { %2542 = vmatprep.mubr.bf16.mxu1 %v8000_v34  ;;  %v8762_v35 = vld [vmem:[%s10432_s2] ss:$0 sm:$0xff] }
  0x20   :  { %7149 = vmatpush3.bf16.msra.mxu0 %v7966_v3 }
  0x21   :  { %7150 = vmatprep.subr.bf16.mxu0 %v7967_v5 }
  0x24   :  { %7151 = vmatpush3.bf16.msra.mxu0 %v7967_v5 }
  0x25   :  { %7152 = vmatprep.subr.bf16.mxu0 %v7968_v6 }
  0x28   :  { %7153 = vmatpush3.bf16.msra.mxu0 %v7968_v6 }
  0x29   :  { %7154 = vmatprep.subr.bf16.mxu0 %v7969_v7 }
  0x2c   :  { %7155 = vmatpush3.bf16.msra.mxu0 %v7969_v7 }
  0x2d   :  { %7156 = vmatprep.subr.bf16.mxu0 %v7970_v8 }
  0x30   :  { %7157 = vmatpush3.bf16.msra.mxu0 %v7970_v8 }
  0x31   :  { %2366 = vmatprep.subr.bf16.mxu0 %v8578_v32 }
  0x33   :  { %7159 = vmatmul.mubr.bf16.vlgmr.msra.gmra.mrb[0].mxu0 %v7972_v9 }
  0x34   :  { %7162 = vmatprep.mubr.bf16.mxu0 %v7973_v10 }
  0x3b   :  { %7163 = vmatmul.mubr.bf16.gmra.mrb[4].mxu0 %v7974_v11 }
  0x3c   :  { %7166 = vmatprep.mubr.bf16.mxu0 %v7975_v12 }
  0x43   :  { %7167 = vmatmul.mubr.bf16.gmra.mrb[8].mxu0 %v7976_v13 }
  0x44   :  { %7170 = vmatprep.mubr.bf16.mxu0 %v7977_v14 }
  0x4b   :  { %7171 = vmatmul.mubr.bf16.gmra.mrb[12].mxu0 %v7978_v15 }
  0x4c   :  { %7174 = vmatprep.mubr.bf16.mxu0 %v7979_v16 }
  0x53   :  { %7175 = vmatmul.mubr.bf16.gmra.mrb[16].mxu0 %v7980_v17 }
  0x54   :  { %7178 = vmatprep.mubr.bf16.mxu0 %v7981_v18 }
  0x5b   :  { %7179 = vmatmul.mubr.bf16.gmra.mrb[20].mxu0 %v7982_v19 }
  0x5c   :  { %7182 = vmatprep.mubr.bf16.mxu0 %v7983_v20 }
  0x63   :  { %7183 = vmatmul.mubr.bf16.gmra.mrb[24].mxu0 %v7984_v21 }
  0x64   :  { %7186 = vmatprep.mubr.bf16.mxu0 %v7985_v22 }
  0x6b   :  { %7187 = vmatmul.mubr.bf16.gmra.mrb[28].mxu0 %v7986_v23 }
  0x6c   :  { %7190 = vmatprep.mubr.bf16.mxu0 %v7987_v24 }
  0x73   :  { %7191 = vmatmul.mubr.bf16.gmra.mrb[32].mxu0 %v7988_v25 }
  0x74   :  { %7194 = vmatprep.mubr.bf16.mxu0 %v7989_v26 }
  0x7b   :  { %7195 = vmatmul.mubr.bf16.gmra.mrb[36].mxu0 %v7990_v27 }
  0x7c   :  { %7198 = vmatprep.mubr.bf16.mxu0 %v7991_v28 }
  0x83   :  { %7199 = vmatmul.mubr.bf16.gmra.mrb[40].mxu0 %v7992_v29 }
  0x84   :  { %7202 = vmatprep.mubr.bf16.mxu0 %v7993_v30 }
  0x8b   :  { %7203 = vmatmul.mubr.bf16.gmra.mrb[44].mxu0 %v7994_v31 }
  0x8c   :  { %2398 = vmatprep.mubr.bf16.mxu0 %v7997_v33 }
 0x106   :  { %v7160_v36 = vpop.f32.mrb[0].mxu0 }
 0x107   :  { %v359_v37 = vadd.f32 %v7160_v36, %v8762_v35  ;;  %v350_v38 = vpop.f32.mrb[1].mxu0 }
 0x108   :  { %v351_v39 = vadd.f32 %v8762_v35, %v350_v38  ;;  %v7161_v40 = vpop.f32.mrb[2].mxu0 }
 0x109   :  { %v362_v41 = vadd.f32 %v7161_v40, %v8762_v35  ;;  %v353_v42 = vpop.f32.mrb[3].mxu0  ;;  %v543_v44 = vmax.f32 %v359_v37, 0.0 }
 0x10a   :  { %v354_v43 = vadd.f32 %v8762_v35, %v353_v42  ;;  %v541_v46 = vmax.f32 %v351_v39, 0.0 }
 0x10b   :  { %v544_v45 = vmax.f32 %v362_v41, 0.0 }
 0x10c   :  { %v542_v47 = vmax.f32 %v354_v43, 0.0 }
 0x10d   :  { %v590_v48 = vpack.c.bf16 %v544_v45, %v543_v44 }
 0x10e   :  { %v589_v49 = vpack.c.bf16 %v542_v47, %v541_v46  ;;  %v7164_v50 = vpop.f32.mrb[4].mxu0 }
 0x10f   :  { %v375_v51 = vadd.f32 %v7164_v50, %v8762_v35  ;;  %v366_v52 = vpop.f32.mrb[5].mxu0 }
 0x110   :  { %v367_v53 = vadd.f32 %v8762_v35, %v366_v52  ;;  %v7165_v54 = vpop.f32.mrb[6].mxu0  ;;  %2367 = vmatpush1.bf16.msra.mxu0 %v589_v49  ;;  %7774 = vmatpush1.bf16.msra.mxu1 %v589_v49 }
 0x111   :  { %v378_v55 = vadd.f32 %v7165_v54, %v8762_v35  ;;  %v369_v56 = vpop.f32.mrb[7].mxu0  ;;  %2368 = vmatprep.subr.bf16.mxu0 %v8578_v32  ;;  %7759 = vmatprep.subr.bf16.mxu1 %v8578_v32  ;;  %v547_v58 = vmax.f32 %v375_v51, 0.0 }
 0x112   :  { %v370_v57 = vadd.f32 %v8762_v35, %v369_v56  ;;  %v545_v60 = vmax.f32 %v367_v53, 0.0 }
 0x113   :  { %v548_v59 = vmax.f32 %v378_v55, 0.0 }
 0x114   :  { %v546_v61 = vmax.f32 %v370_v57, 0.0  ;;  %2369 = vmatpush1.bf16.msra.mxu0 %v590_v48  ;;  %7775 = vmatpush1.bf16.msra.mxu1 %v590_v48 }
 0x115   :  { %v592_v62 = vpack.c.bf16 %v548_v59, %v547_v58  ;;  %2370 = vmatprep.subr.bf16.mxu0 %v8578_v32  ;;  %7760 = vmatprep.subr.bf16.mxu1 %v8578_v32 }
 0x116   :  { %v591_v63 = vpack.c.bf16 %v546_v61, %v545_v60  ;;  %v7168_v0 = vpop.f32.mrb[8].mxu0 }
 0x117   :  { %v391_v1 = vadd.f32 %v7168_v0, %v8762_v35  ;;  %v382_v2 = vpop.f32.mrb[9].mxu0 }
 0x118   :  { %v383_v3 = vadd.f32 %v8762_v35, %v382_v2  ;;  %v7169_v4 = vpop.f32.mrb[10].mxu0  ;;  %2371 = vmatpush1.bf16.msra.mxu0 %v591_v63  ;;  %7776 = vmatpush1.bf16.msra.mxu1 %v591_v63 }
 0x119   :  { %v394_v5 = vadd.f32 %v7169_v4, %v8762_v35  ;;  %v385_v6 = vpop.f32.mrb[11].mxu0  ;;  %2372 = vmatprep.subr.bf16.mxu0 %v8578_v32  ;;  %7761 = vmatprep.subr.bf16.mxu1 %v8578_v32  ;;  %v551_v8 = vmax.f32 %v391_v1, 0.0 }
 0x11a   :  { %v386_v7 = vadd.f32 %v8762_v35, %v385_v6  ;;  %v549_v10 = vmax.f32 %v383_v3, 0.0 }
 0x11b   :  { %v552_v9 = vmax.f32 %v394_v5, 0.0 }
 0x11c   :  { %v550_v11 = vmax.f32 %v386_v7, 0.0  ;;  %2373 = vmatpush1.bf16.msra.mxu0 %v592_v62  ;;  %7777 = vmatpush1.bf16.msra.mxu1 %v592_v62 }
 0x11d   :  { %v594_v12 = vpack.c.bf16 %v552_v9, %v551_v8  ;;  %2374 = vmatprep.subr.bf16.mxu0 %v8578_v32  ;;  %7762 = vmatprep.subr.bf16.mxu1 %v8578_v32 }
 0x11e   :  { %v593_v13 = vpack.c.bf16 %v550_v11, %v549_v10  ;;  %v7172_v14 = vpop.f32.mrb[12].mxu0 }
 0x11f   :  { %v407_v15 = vadd.f32 %v7172_v14, %v8762_v35  ;;  %v398_v16 = vpop.f32.mrb[13].mxu0 }
 0x120   :  { %v399_v17 = vadd.f32 %v8762_v35, %v398_v16  ;;  %v7173_v18 = vpop.f32.mrb[14].mxu0  ;;  %2375 = vmatpush1.bf16.msra.mxu0 %v593_v13  ;;  %7778 = vmatpush1.bf16.msra.mxu1 %v593_v13 }
 0x121   :  { %v410_v19 = vadd.f32 %v7173_v18, %v8762_v35  ;;  %v401_v20 = vpop.f32.mrb[15].mxu0  ;;  %2376 = vmatprep.subr.bf16.mxu0 %v8578_v32  ;;  %7763 = vmatprep.subr.bf16.mxu1 %v8578_v32  ;;  %v555_v22 = vmax.f32 %v407_v15, 0.0 }
 0x122   :  { %v402_v21 = vadd.f32 %v8762_v35, %v401_v20  ;;  %v553_v24 = vmax.f32 %v399_v17, 0.0 }
 0x123   :  { %v556_v23 = vmax.f32 %v410_v19, 0.0 }
 0x124   :  { %v554_v25 = vmax.f32 %v402_v21, 0.0  ;;  %2377 = vmatpush1.bf16.msra.mxu0 %v594_v12  ;;  %7779 = vmatpush1.bf16.msra.mxu1 %v594_v12 }
 0x125   :  { %v596_v26 = vpack.c.bf16 %v556_v23, %v555_v22  ;;  %2378 = vmatprep.subr.bf16.mxu0 %v8578_v32  ;;  %7764 = vmatprep.subr.bf16.mxu1 %v8578_v32 }
 0x126   :  { %v595_v27 = vpack.c.bf16 %v554_v25, %v553_v24  ;;  %v7176_v28 = vpop.f32.mrb[16].mxu0 }
 0x127   :  { %v423_v29 = vadd.f32 %v7176_v28, %v8762_v35  ;;  %v414_v30 = vpop.f32.mrb[17].mxu0 }
 0x128   :  { %v415_v31 = vadd.f32 %v8762_v35, %v414_v30  ;;  %v7177_v33 = vpop.f32.mrb[18].mxu0  ;;  %2379 = vmatpush1.bf16.msra.mxu0 %v595_v27  ;;  %7780 = vmatpush1.bf16.msra.mxu1 %v595_v27 }
 0x129   :  { %v426_v34 = vadd.f32 %v7177_v33, %v8762_v35  ;;  %v417_v36 = vpop.f32.mrb[19].mxu0  ;;  %2380 = vmatprep.subr.bf16.mxu0 %v8578_v32  ;;  %7765 = vmatprep.subr.bf16.mxu1 %v8578_v32  ;;  %v559_v38 = vmax.f32 %v423_v29, 0.0  ;;  %v7995_v33 = vld [vmem:[%s10433_s3] ss:$12 sps:$4 sm:$0xff]  }
 0x12a   :  { %v418_v37 = vadd.f32 %v8762_v35, %v417_v36  ;;  %v557_v40 = vmax.f32 %v415_v31, 0.0 }
 0x12b   :  { %v560_v39 = vmax.f32 %v426_v34, 0.0  ;;  %v7998_v34 = vld [vmem:[%s10433_s3 + $0x1b0] ss:$12 sps:$4 sm:$0xff]  }
 0x12c   :  { %v558_v41 = vmax.f32 %v418_v37, 0.0  ;;  %2381 = vmatpush1.bf16.msra.mxu0 %v596_v26  ;;  %7781 = vmatpush1.bf16.msra.mxu1 %v596_v26  ;;  %v8003_v37 = vld [vmem:[%s10433_s3 + $0x1cc] ss:$12 sps:$4 sm:$0xff]  }
 0x12d   :  { %v598_v42 = vpack.c.bf16 %v560_v39, %v559_v38  ;;  %2382 = vmatprep.subr.bf16.mxu0 %v8578_v32  ;;  %7766 = vmatprep.subr.bf16.mxu1 %v8578_v32 }
 0x12e   :  { %v597_v43 = vpack.c.bf16 %v558_v41, %v557_v40  ;;  %v7180_v44 = vpop.f32.mrb[20].mxu0 }
 0x12f   :  { %v439_v45 = vadd.f32 %v7180_v44, %v8762_v35  ;;  %v430_v46 = vpop.f32.mrb[21].mxu0 }
 0x130   :  { %v431_v47 = vadd.f32 %v8762_v35, %v430_v46  ;;  %v7181_v48 = vpop.f32.mrb[22].mxu0  ;;  %2383 = vmatpush1.bf16.msra.mxu0 %v597_v43  ;;  %7782 = vmatpush1.bf16.msra.mxu1 %v597_v43 }
 0x131   :  { %v442_v49 = vadd.f32 %v7181_v48, %v8762_v35  ;;  %v433_v50 = vpop.f32.mrb[23].mxu0  ;;  %2384 = vmatprep.subr.bf16.mxu0 %v8578_v32  ;;  %7767 = vmatprep.subr.bf16.mxu1 %v8578_v32  ;;  %v563_v52 = vmax.f32 %v439_v45, 0.0 }
 0x132   :  { %v434_v51 = vadd.f32 %v8762_v35, %v433_v50  ;;  %v561_v54 = vmax.f32 %v431_v47, 0.0 }
 0x133   :  { %v564_v53 = vmax.f32 %v442_v49, 0.0 }
 0x134   :  { %v562_v55 = vmax.f32 %v434_v51, 0.0  ;;  %2385 = vmatpush1.bf16.msra.mxu0 %v598_v42  ;;  %7783 = vmatpush1.bf16.msra.mxu1 %v598_v42  ;;  %v8005_v51 = vld [vmem:[%s10433_s3 + $0x18] ss:$12 sps:$4 sm:$0xff]  }
 0x135   :  { %v600_v56 = vpack.c.bf16 %v564_v53, %v563_v52  ;;  %2386 = vmatprep.subr.bf16.mxu0 %v8578_v32  ;;  %7768 = vmatprep.subr.bf16.mxu1 %v8578_v32  ;;  %v8006_v52 = vld [vmem:[%s10433_s3 + $0x1c8] ss:$12 sps:$4 sm:$0xff]  }
 0x136   :  { %v599_v57 = vpack.c.bf16 %v562_v55, %v561_v54  ;;  %v7184_v58 = vpop.f32.mrb[24].mxu0  ;;  %v8007_v54 = vld [vmem:[%s10433_s3 + $0x34] ss:$12 sps:$4 sm:$0xff]   ;;  %v8009_v55 = vld [vmem:[%s10433_s3 + $0x1e4] ss:$12 sps:$4 sm:$0xff]  }
 0x137   :  { %v455_v59 = vadd.f32 %v7184_v58, %v8762_v35  ;;  %v446_v60 = vpop.f32.mrb[25].mxu0 }
 0x138   :  { %v447_v61 = vadd.f32 %v8762_v35, %v446_v60  ;;  %v7185_v62 = vpop.f32.mrb[26].mxu0  ;;  %2387 = vmatpush1.bf16.msra.mxu0 %v599_v57  ;;  %7784 = vmatpush1.bf16.msra.mxu1 %v599_v57 }
 0x139   :  { %v458_v63 = vadd.f32 %v7185_v62, %v8762_v35  ;;  %v449_v0 = vpop.f32.mrb[27].mxu0  ;;  %2388 = vmatprep.subr.bf16.mxu0 %v8578_v32  ;;  %7769 = vmatprep.subr.bf16.mxu1 %v8578_v32  ;;  %v567_v2 = vmax.f32 %v455_v59, 0.0 }
 0x13a   :  { %v450_v1 = vadd.f32 %v8762_v35, %v449_v0  ;;  %v565_v4 = vmax.f32 %v447_v61, 0.0 }
 0x13b   :  { %v568_v3 = vmax.f32 %v458_v63, 0.0 }
 0x13c   :  { %v566_v5 = vmax.f32 %v450_v1, 0.0  ;;  %2389 = vmatpush1.bf16.msra.mxu0 %v600_v56  ;;  %7785 = vmatpush1.bf16.msra.mxu1 %v600_v56 }
 0x13d   :  { %v602_v6 = vpack.c.bf16 %v568_v3, %v567_v2  ;;  %2390 = vmatprep.subr.bf16.mxu0 %v8578_v32  ;;  %7770 = vmatprep.subr.bf16.mxu1 %v8578_v32 }
 0x13e   :  { %v601_v7 = vpack.c.bf16 %v566_v5, %v565_v4  ;;  %v7188_v8 = vpop.f32.mrb[28].mxu0  ;;  %v8011_v5 = vld [vmem:[%s10433_s3 + $0x30] ss:$12 sps:$4 sm:$0xff]  }
 0x13f   :  { %v471_v9 = vadd.f32 %v7188_v8, %v8762_v35  ;;  %v462_v10 = vpop.f32.mrb[29].mxu0  ;;  %v8013_v8 = vld [vmem:[%s10433_s3 + $0x4c] ss:$12 sps:$4 sm:$0xff]  }
 0x140   :  { %v463_v11 = vadd.f32 %v8762_v35, %v462_v10  ;;  %v7189_v12 = vpop.f32.mrb[30].mxu0  ;;  %2391 = vmatpush1.bf16.msra.mxu0 %v601_v7  ;;  %7786 = vmatpush1.bf16.msra.mxu1 %v601_v7 }
 0x141   :  { %v474_v13 = vadd.f32 %v7189_v12, %v8762_v35  ;;  %v465_v14 = vpop.f32.mrb[31].mxu0  ;;  %2392 = vmatprep.subr.bf16.mxu0 %v8578_v32  ;;  %7771 = vmatprep.subr.bf16.mxu1 %v8578_v32  ;;  %v571_v16 = vmax.f32 %v471_v9, 0.0  ;;  %v8015_v9 = vld [vmem:[%s10433_s3 + $0x1fc] ss:$12 sps:$4 sm:$0xff]  }
 0x142   :  { %v466_v15 = vadd.f32 %v8762_v35, %v465_v14  ;;  %v569_v18 = vmax.f32 %v463_v11, 0.0 }
 0x143   :  { %v572_v17 = vmax.f32 %v474_v13, 0.0 }
 0x144   :  { %v570_v19 = vmax.f32 %v466_v15, 0.0  ;;  %2393 = vmatpush1.bf16.msra.mxu0 %v602_v6  ;;  %7787 = vmatpush1.bf16.msra.mxu1 %v602_v6  ;;  %v8012_v6 = vld [vmem:[%s10433_s3 + $0x1e0] ss:$12 sps:$4 sm:$0xff]  }
 0x145   :  { %v604_v20 = vpack.c.bf16 %v572_v17, %v571_v16  ;;  %2394 = vmatprep.subr.bf16.mxu0 %v8578_v32  ;;  %7772 = vmatprep.subr.bf16.mxu1 %v8578_v32 }
 0x146   :  { %v603_v21 = vpack.c.bf16 %v570_v19, %v569_v18  ;;  %v7192_v22 = vpop.f32.mrb[32].mxu0 }
 0x147   :  { %v487_v23 = vadd.f32 %v7192_v22, %v8762_v35  ;;  %v478_v24 = vpop.f32.mrb[33].mxu0 }
 0x148   :  { %2395 = vmatpush1.bf16.msra.mxu0 %v603_v21  ;;  %7788 = vmatpush1.bf16.msra.mxu1 %v603_v21  ;;  %v479_v25 = vadd.f32 %v8762_v35, %v478_v24  ;;  %v7193_v26 = vpop.f32.mrb[34].mxu0  ;;  %v8018_v24 = vld [vmem:[%s10433_s3 + $0x1f8] ss:$12 sps:$4 sm:$0xff]  }
 0x149   :  { %2396 = vmatprep.subr.bf16.mxu0 %v8578_v32  ;;  %7773 = vmatprep.subr.bf16.mxu1 %v8578_v32  ;;  %v575_v27 = vmax.f32 %v487_v23, 0.0  ;;  %v490_v28 = vadd.f32 %v7193_v26, %v8762_v35  ;;  %v481_v29 = vpop.f32.mrb[35].mxu0  ;;  %v8001_v32 = vld [vmem:[%s10433_s3 + $0x1c] ss:$12 sps:$4 sm:$0xff]   ;;  %v8019_v26 = vld [vmem:[%s10433_s3 + $0x64] ss:$12 sps:$4 sm:$0xff]  }
 0x14a   :  { %v573_v30 = vmax.f32 %v479_v25, 0.0  ;;  %v482_v31 = vadd.f32 %v8762_v35, %v481_v29  ;;  %v8017_v23 = vld [vmem:[%s10433_s3 + $0x48] ss:$12 sps:$4 sm:$0xff]  }
 0x14b   :  { %v576_v36 = vmax.f32 %v490_v28, 0.0 }
 0x14c   :  { %2397 = vmatpush1.bf16.msra.mxu0 %v604_v20  ;;  %7789 = vmatpush1.bf16.msra.mxu1 %v604_v20  ;;  %v574_v38 = vmax.f32 %v482_v31, 0.0  ;;  %v8024_v31 = vld [vmem:[%s10433_s3 + $0x210] ss:$12 sps:$4 sm:$0xff]  }
 0x14d   :  { %v606_v39 = vpack.c.bf16 %v576_v36, %v575_v27  ;;  %v8021_v27 = vld [vmem:[%s10433_s3 + $0x214] ss:$12 sps:$4 sm:$0xff]   ;;  %v8029_v36 = vld [vmem:[%s10433_s3 + $0x78] ss:$12 sps:$4 sm:$0xff]  }
 0x14e   :  { %v605_v40 = vpack.c.bf16 %v574_v38, %v573_v30  ;;  %v7196_v41 = vpop.f32.mrb[36].mxu0  ;;  %v8023_v30 = vld [vmem:[%s10433_s3 + $0x60] ss:$12 sps:$4 sm:$0xff]   ;;  %v8033_v38 = vld [vmem:[%s10433_s3 + $0x244] ss:$12 sps:$4 sm:$0xff]  }
 0x14f   :  { %2399 = vmatmul.mubr.bf16.vlgmr.msra.gmra.mrb[48].mxu0 %v7995_v33  ;;  %2543 = vmatmul.mubr.bf16.vlgmr.msra.gmra.mrb[0].mxu1 %v7998_v34  ;;  %v503_v42 = vadd.f32 %v7196_v41, %v8762_v35  ;;  %v494_v43 = vpop.f32.mrb[37].mxu0  ;;  %v8025_v33 = vld [vmem:[%s10433_s3 + $0x7c] ss:$12 sps:$4 sm:$0xff]   ;;  %v8027_v34 = vld [vmem:[%s10433_s3 + $0x22c] ss:$12 sps:$4 sm:$0xff]  }
 0x150   :  { %2406 = vmatprep.mubr.bf16.mxu0 %v8001_v32  ;;  %2550 = vmatprep.mubr.bf16.mxu1 %v8003_v37  ;;  %v495_v44 = vadd.f32 %v8762_v35, %v494_v43  ;;  %v7197_v45 = vpop.f32.mrb[38].mxu0  ;;  %v8030_v32 = vld [vmem:[%s10433_s3 + $0x228] ss:$12 sps:$4 sm:$0xff]   ;;  %v8037_v41 = vld [vmem:[%s10433_s3 + $0xac] ss:$12 sps:$4 sm:$0xff]  }
 0x151   :  { %7206 = vmatprep.subr.bf16.mxu0 %v605_v40  ;;  %v579_v46 = vmax.f32 %v503_v42, 0.0  ;;  %v506_v47 = vadd.f32 %v7197_v45, %v8762_v35  ;;  %v497_v48 = vpop.f32.mrb[39].mxu0  ;;  %v8031_v37 = vld [vmem:[%s10433_s3 + $0x94] ss:$12 sps:$4 sm:$0xff]   ;;  %v8039_v42 = vld [vmem:[%s10433_s3 + $0x25c] ss:$12 sps:$4 sm:$0xff]  }
 0x152   :  { %7207 = vmatpush3.bf16.msra.mxu0 %v605_v40  ;;  %v577_v49 = vmax.f32 %v495_v44, 0.0  ;;  %v498_v50 = vadd.f32 %v8762_v35, %v497_v48  ;;  %v8036_v40 = vld [vmem:[%s10433_s3 + $0x240] ss:$12 sps:$4 sm:$0xff]   ;;  %v8041_v43 = vld [vmem:[%s10433_s3 + $0xa8] ss:$12 sps:$4 sm:$0xff]  }
 0x153   :  { %7208 = vmatprep.subr.bf16.mxu0 %v606_v39  ;;  %v580_v53 = vmax.f32 %v506_v47, 0.0  ;;  %v8042_v44 = vld [vmem:[%s10433_s3 + $0x258] ss:$12 sps:$4 sm:$0xff]   ;;  %v8047_v47 = vld [vmem:[%s10433_s3 + $0xc0] ss:$12 sps:$4 sm:$0xff]  }
 0x154   :  { %v578_v56 = vmax.f32 %v498_v50, 0.0  ;;  %v8043_v45 = vld [vmem:[%s10433_s3 + $0xc4] ss:$12 sps:$4 sm:$0xff]   ;;  %v8051_v50 = vld [vmem:[%s10433_s3 + $0x28c] ss:$12 sps:$4 sm:$0xff]  }
 0x155   :  { %v608_v57 = vpack.c.bf16 %v580_v53, %v579_v46  ;;  %v8045_v46 = vld [vmem:[%s10433_s3 + $0x274] ss:$12 sps:$4 sm:$0xff]   ;;  %v8048_v48 = vld [vmem:[%s10433_s3 + $0x270] ss:$12 sps:$4 sm:$0xff]  }
 0x156   :  { %7209 = vmatpush3.bf16.msra.mxu0 %v606_v39  ;;  %v607_v58 = vpack.c.bf16 %v578_v56, %v577_v49  ;;  %v7200_v59 = vpop.f32.mrb[40].mxu0  ;;  %v8035_v39 = vld [vmem:[%s10433_s3 + $0x90] ss:$12 sps:$4 sm:$0xff]   ;;  %v8055_v53 = vld [vmem:[%s10433_s3 + $0xf4] ss:$12 sps:$4 sm:$0xff]  }
 0x157   :  { %2407 = vmatmul.mubr.bf16.gmra.mrb[52].mxu0 %v8005_v51  ;;  %2551 = vmatmul.mubr.bf16.gmra.mrb[4].mxu1 %v8006_v52  ;;  %v519_v60 = vadd.f32 %v7200_v59, %v8762_v35  ;;  %v510_v61 = vpop.f32.mrb[41].mxu0  ;;  %v8049_v49 = vld [vmem:[%s10433_s3 + $0xdc] ss:$12 sps:$4 sm:$0xff]   ;;  %v8053_v51 = vld [vmem:[%s10433_s3 + $0xd8] ss:$12 sps:$4 sm:$0xff]  }
 0x158   :  { %2414 = vmatprep.mubr.bf16.mxu0 %v8007_v54  ;;  %2558 = vmatprep.mubr.bf16.mxu1 %v8009_v55  ;;  %v511_v62 = vadd.f32 %v8762_v35, %v510_v61  ;;  %v7201_v63 = vpop.f32.mrb[42].mxu0  ;;  %v8054_v52 = vld [vmem:[%s10433_s3 + $0x288] ss:$12 sps:$4 sm:$0xff]   ;;  %v8057_v54 = vld [vmem:[%s10433_s3 + $0x2a4] ss:$12 sps:$4 sm:$0xff]  }
 0x159   :  { %7210 = vmatprep.subr.bf16.mxu0 %v607_v58  ;;  %v583_v0 = vmax.f32 %v519_v60, 0.0  ;;  %v522_v1 = vadd.f32 %v7201_v63, %v8762_v35  ;;  %v513_v2 = vpop.f32.mrb[43].mxu0  ;;  %v8059_v55 = vld [vmem:[%s10433_s3 + $0xf0] ss:$12 sps:$4 sm:$0xff]   ;;  %v8060_v56 = vld [vmem:[%s10433_s3 + $0x2a0] ss:$12 sps:$4 sm:$0xff]  }
 0x15a   :  { %7211 = vmatpush3.bf16.msra.mxu0 %v607_v58  ;;  %v581_v3 = vmax.f32 %v511_v62, 0.0  ;;  %v514_v4 = vadd.f32 %v8762_v35, %v513_v2  ;;  %v8063_v58 = vld [vmem:[%s10433_s3 + $0x2bc] ss:$12 sps:$4 sm:$0xff]   ;;  %v8066_v60 = vld [vmem:[%s10433_s3 + $0x2b8] ss:$12 sps:$4 sm:$0xff]  }
 0x15b   :  { %7212 = vmatprep.subr.bf16.mxu0 %v608_v57  ;;  %v584_v7 = vmax.f32 %v522_v1, 0.0  ;;  %v8065_v59 = vld [vmem:[%s10433_s3 + $0x108] ss:$12 sps:$4 sm:$0xff]   ;;  %v8067_v61 = vld [vmem:[%s10433_s3 + $0x124] ss:$12 sps:$4 sm:$0xff]  }
 0x15c   :  { %v582_v10 = vmax.f32 %v514_v4, 0.0  ;;  %v8069_v62 = vld [vmem:[%s10433_s3 + $0x2d4] ss:$12 sps:$4 sm:$0xff]   ;;  %v8073_v1 = vld [vmem:[%s10433_s3 + $0x13c] ss:$12 sps:$4 sm:$0xff]  }
 0x15d   :  { %v610_v11 = vpack.c.bf16 %v584_v7, %v583_v0  ;;  %v8071_v63 = vld [vmem:[%s10433_s3 + $0x120] ss:$12 sps:$4 sm:$0xff]   ;;  %v8072_v0 = vld [vmem:[%s10433_s3 + $0x2d0] ss:$12 sps:$4 sm:$0xff]   ;;  %v8078_v4 = vld [vmem:[%s10433_s3 + $0x2e8] ss:$12 sps:$4 sm:$0xff]  }
 0x15e   :  { %7213 = vmatpush3.bf16.msra.mxu0 %v608_v57  ;;  %v609_v12 = vpack.c.bf16 %v582_v10, %v581_v3  ;;  %v7204_v13 = vpop.f32.mrb[44].mxu0  ;;  %v8061_v57 = vld [vmem:[%s10433_s3 + $0x10c] ss:$12 sps:$4 sm:$0xff]   ;;  %v8083_v7 = vld [vmem:[%s10433_s3 + $0x150] ss:$12 sps:$4 sm:$0xff]  }
 0x15f   :  { %2415 = vmatmul.mubr.bf16.gmra.mrb[56].mxu0 %v8011_v5  ;;  %2559 = vmatmul.mubr.bf16.gmra.mrb[8].mxu1 %v8012_v6  ;;  %v535_v14 = vadd.f32 %v7204_v13, %v8762_v35  ;;  %v526_v15 = vpop.f32.mrb[45].mxu0  ;;  %v8075_v2 = vld [vmem:[%s10433_s3 + $0x2ec] ss:$12 sps:$4 sm:$0xff]   ;;  %v8079_v5 = vld [vmem:[%s10433_s3 + $0x154] ss:$12 sps:$4 sm:$0xff]  }
 0x160   :  { %2422 = vmatprep.mubr.bf16.mxu0 %v8013_v8  ;;  %2566 = vmatprep.mubr.bf16.mxu1 %v8015_v9  ;;  %v527_v16 = vadd.f32 %v8762_v35, %v526_v15  ;;  %v7205_v17 = vpop.f32.mrb[46].mxu0  ;;  %v8077_v3 = vld [vmem:[%s10433_s3 + $0x138] ss:$12 sps:$4 sm:$0xff]   ;;  %v8084_v8 = vld [vmem:[%s10433_s3 + $0x300] ss:$12 sps:$4 sm:$0xff]  }
 0x161   :  { %7214 = vmatprep.subr.bf16.mxu0 %v609_v12  ;;  %v587_v18 = vmax.f32 %v535_v14, 0.0  ;;  %v538_v19 = vadd.f32 %v7205_v17, %v8762_v35  ;;  %v529_v20 = vpop.f32.mrb[47].mxu0  ;;  %v8081_v6 = vld [vmem:[%s10433_s3 + $0x304] ss:$12 sps:$4 sm:$0xff]   ;;  %v8085_v9 = vld [vmem:[%s10433_s3 + $0x16c] ss:$12 sps:$4 sm:$0xff]  }
 0x162   :  { %7215 = vmatpush3.bf16.msra.mxu0 %v609_v12  ;;  %v585_v21 = vmax.f32 %v527_v16, 0.0  ;;  %v530_v22 = vadd.f32 %v8762_v35, %v529_v20  ;;  %v8087_v10 = vld [vmem:[%s10433_s3 + $0x31c] ss:$12 sps:$4 sm:$0xff]   ;;  %v8090_v12 = vld [vmem:[%s10433_s3 + $0x318] ss:$12 sps:$4 sm:$0xff]  }
 0x163   :  { %v588_v25 = vmax.f32 %v538_v19, 0.0  ;;  %7216 = vmatprep.subr.bf16.mxu0 %v610_v11  ;;  %v8091_v13 = vld [vmem:[%s10433_s3 + $0x184] ss:$12 sps:$4 sm:$0xff]   ;;  %v8093_v14 = vld [vmem:[%s10433_s3 + $0x334] ss:$12 sps:$4 sm:$0xff]  }
 0x164   :  { %v586_v28 = vmax.f32 %v530_v22, 0.0  ;;  %v8095_v15 = vld [vmem:[%s10433_s3 + $0x180] ss:$12 sps:$4 sm:$0xff]   ;;  %v8096_v16 = vld [vmem:[%s10433_s3 + $0x330] ss:$12 sps:$4 sm:$0xff]  }
 0x165   :  { %v612_v35 = vpack.c.bf16 %v588_v25, %v587_v18  ;;  %v8097_v17 = vld [vmem:[%s10433_s3 + $0x19c] ss:$12 sps:$4 sm:$0xff]   ;;  %v8099_v18 = vld [vmem:[%s10433_s3 + $0x34c] ss:$12 sps:$4 sm:$0xff]  }
 0x166   :  { %v611_v29 = vpack.c.bf16 %v586_v28, %v585_v21  ;;  %7217 = vmatpush3.bf16.msra.mxu0 %v610_v11  ;;  %v8089_v11 = vld [vmem:[%s10433_s3 + $0x168] ss:$12 sps:$4 sm:$0xff]   ;;  %v8101_v19 = vld [vmem:[%s10433_s3 + $0x198] ss:$12 sps:$4 sm:$0xff]   ;;  %v8112_v28 = vld [vmem:[%s10433_s3 + $0x50] ss:$12 sps:$4 sm:$0xff]  }
 0x167   :  { %2423 = vmatmul.mubr.bf16.gmra.mrb[60].mxu0 %v8017_v23  ;;  %2567 = vmatmul.mubr.bf16.gmra.mrb[12].mxu1 %v8018_v24  ;;  %v8102_v20 = vld [vmem:[%s10433_s3 + $0x348] ss:$12 sps:$4 sm:$0xff]   ;;  %v8103_v21 = vld [vmem:[%s10433_s3 + $0x364] ss:$12 sps:$4 sm:$0xff]   ;;  %v8106_v23 = vld [vmem:[%s10433_s3 + $0x360] ss:$12 sps:$4 sm:$0xff]  }
 0x168   :  { %2430 = vmatprep.mubr.bf16.mxu0 %v8019_v26  ;;  %2574 = vmatprep.mubr.bf16.mxu1 %v8021_v27  ;;  %v8105_v22 = vld [vmem:[%s10433_s3 + $0x8] ss:$12 sps:$4 sm:$0xff]   ;;  %v8107_v24 = vld [vmem:[%s10433_s3 + $0x20] ss:$12 sps:$4 sm:$0xff]   ;;  %v8110_v26 = vld [vmem:[%s10433_s3 + $0x38] ss:$12 sps:$4 sm:$0xff]  }
 0x169   :  { %7218 = vmatprep.subr.bf16.mxu0 %v611_v29  ;;  %v8108_v25 = vld [vmem:[%s10433_s3 + $0x37c] ss:$12 sps:$4 sm:$0xff]   ;;  %v8111_v27 = vld [vmem:[%s10433_s3 + $0x378] ss:$12 sps:$4 sm:$0xff]  }
 0x16a   :  { %7219 = vmatpush3.bf16.msra.mxu0 %v611_v29  ;;  %v8115_v29 = vld [vmem:[%s10433_s3 + $0x68] ss:$12 sps:$4 sm:$0xff]  }
 0x16b   :  { %7220 = vmatprep.subr.bf16.mxu0 %v612_v35 }
 0x16e   :  { %7221 = vmatpush3.bf16.msra.mxu0 %v612_v35  ;;  %v8113_v35 = vld [vmem:[%s10433_s3 + $0x394] ss:$12 sps:$4 sm:$0xff]  }
 0x16f   :  { %2431 = vmatmul.mubr.bf16.gmra.mrb[64].mxu0 %v8023_v30  ;;  %2575 = vmatmul.mubr.bf16.gmra.mrb[16].mxu1 %v8024_v31  ;;  %v8116_v30 = vld [vmem:[%s10433_s3 + $0x390] ss:$12 sps:$4 sm:$0xff]   ;;  %v8117_v31 = vld [vmem:[%s10433_s3 + $0x80] ss:$12 sps:$4 sm:$0xff]  }
 0x170   :  { %2438 = vmatprep.mubr.bf16.mxu0 %v8025_v33  ;;  %2582 = vmatprep.mubr.bf16.mxu1 %v8027_v34  ;;  %v8118_v33 = vld [vmem:[%s10433_s3 + $0x3ac] ss:$12 sps:$4 sm:$0xff]  }
 0x171   :  { %v8120_v34 = vld [vmem:[%s10433_s3 + $0x98] ss:$12 sps:$4 sm:$0xff]  }
 0x177   :  { %2439 = vmatmul.mubr.bf16.gmra.mrb[68].mxu0 %v8029_v36  ;;  %2583 = vmatmul.mubr.bf16.gmra.mrb[20].mxu1 %v8030_v32  ;;  %v8121_v36 = vld [vmem:[%s10433_s3 + $0x3a8] ss:$12 sps:$4 sm:$0xff]   ;;  %v8122_v32 = vld [vmem:[%s10433_s3 + $0xb0] ss:$12 sps:$4 sm:$0xff]  }
 0x178   :  { %2446 = vmatprep.mubr.bf16.mxu0 %v8031_v37  ;;  %2590 = vmatprep.mubr.bf16.mxu1 %v8033_v38  ;;  %v8123_v37 = vld [vmem:[%s10433_s3 + $0x3c4] ss:$12 sps:$4 sm:$0xff]   ;;  %v8125_v38 = vld [vmem:[%s10433_s3 + $0xc8] ss:$12 sps:$4 sm:$0xff]  }
 0x17f   :  { %2447 = vmatmul.mubr.bf16.gmra.mrb[72].mxu0 %v8035_v39  ;;  %2591 = vmatmul.mubr.bf16.gmra.mrb[24].mxu1 %v8036_v40  ;;  %v8126_v39 = vld [vmem:[%s10433_s3 + $0x3c0] ss:$12 sps:$4 sm:$0xff]  }
 0x180   :  { %2454 = vmatprep.mubr.bf16.mxu0 %v8037_v41  ;;  %2598 = vmatprep.mubr.bf16.mxu1 %v8039_v42  ;;  %v8127_v40 = vld [vmem:[%s10433_s3 + $0xe0] ss:$12 sps:$4 sm:$0xff]   ;;  %v8128_v41 = vld [vmem:[%s10433_s3 + $0x3dc] ss:$12 sps:$4 sm:$0xff]   ;;  %v8130_v42 = vld [vmem:[%s10433_s3 + $0xf8] ss:$12 sps:$4 sm:$0xff]  }
 0x187   :  { %2455 = vmatmul.mubr.bf16.gmra.mrb[76].mxu0 %v8041_v43  ;;  %2599 = vmatmul.mubr.bf16.gmra.mrb[28].mxu1 %v8042_v44  ;;  %v8131_v43 = vld [vmem:[%s10433_s3 + $0x3d8] ss:$12 sps:$4 sm:$0xff]   ;;  %v8132_v44 = vld [vmem:[%s10433_s3 + $0x110] ss:$12 sps:$4 sm:$0xff]  }
 0x188   :  { %2462 = vmatprep.mubr.bf16.mxu0 %v8043_v45  ;;  %2606 = vmatprep.mubr.bf16.mxu1 %v8045_v46  ;;  %v8133_v45 = vld [vmem:[%s10433_s3 + $0x3f4] ss:$12 sps:$4 sm:$0xff]  }
 0x189   :  { %v8135_v46 = vld [vmem:[%s10433_s3 + $0x128] ss:$12 sps:$4 sm:$0xff]  }
 0x18f   :  { %2463 = vmatmul.mubr.bf16.gmra.mrb[80].mxu0 %v8047_v47  ;;  %2607 = vmatmul.mubr.bf16.gmra.mrb[32].mxu1 %v8048_v48  ;;  %v8136_v47 = vld [vmem:[%s10433_s3 + $0x3f0] ss:$12 sps:$4 sm:$0xff]   ;;  %v8137_v48 = vld [vmem:[%s10433_s3 + $0x140] ss:$12 sps:$4 sm:$0xff]  }
 0x190   :  { %2470 = vmatprep.mubr.bf16.mxu0 %v8049_v49  ;;  %2614 = vmatprep.mubr.bf16.mxu1 %v8051_v50  ;;  %v8138_v49 = vld [vmem:[%s10433_s3 + $0x40c] ss:$12 sps:$4 sm:$0xff]  }
 0x191   :  { %v8140_v50 = vld [vmem:[%s10433_s3 + $0x158] ss:$12 sps:$4 sm:$0xff]  }
 0x197   :  { %2471 = vmatmul.mubr.bf16.gmra.mrb[84].mxu0 %v8053_v51  ;;  %2615 = vmatmul.mubr.bf16.gmra.mrb[36].mxu1 %v8054_v52  ;;  %v8141_v51 = vld [vmem:[%s10433_s3 + $0x408] ss:$12 sps:$4 sm:$0xff]   ;;  %v8142_v52 = vld [vmem:[%s10433_s3 + $0x170] ss:$12 sps:$4 sm:$0xff]  }
 0x198   :  { %2478 = vmatprep.mubr.bf16.mxu0 %v8055_v53  ;;  %2622 = vmatprep.mubr.bf16.mxu1 %v8057_v54  ;;  %v8143_v53 = vld [vmem:[%s10433_s3 + $0x424] ss:$12 sps:$4 sm:$0xff]   ;;  %v8145_v54 = vld [vmem:[%s10433_s3 + $0x188] ss:$12 sps:$4 sm:$0xff]  }
 0x19f   :  { %2479 = vmatmul.mubr.bf16.gmra.mrb[88].mxu0 %v8059_v55  ;;  %2623 = vmatmul.mubr.bf16.gmra.mrb[40].mxu1 %v8060_v56  ;;  %v8146_v55 = vld [vmem:[%s10433_s3 + $0x420] ss:$12 sps:$4 sm:$0xff]  }
 0x1a0   :  { %2486 = vmatprep.mubr.bf16.mxu0 %v8061_v57  ;;  %2630 = vmatprep.mubr.bf16.mxu1 %v8063_v58  ;;  %v8147_v56 = vld [vmem:[%s10433_s3 + $0x1a0] ss:$12 sps:$4 sm:$0xff]   ;;  %v8148_v57 = vld [vmem:[%s10433_s3 + $0x43c] ss:$12 sps:$4 sm:$0xff]   ;;  %v8150_v58 = vld [vmem:[%s10433_s3 + $0x1b8] ss:$12 sps:$4 sm:$0xff]  }
 0x1a7   :  { %2487 = vmatmul.mubr.bf16.gmra.mrb[92].mxu0 %v8065_v59  ;;  %2631 = vmatmul.mubr.bf16.gmra.mrb[44].mxu1 %v8066_v60 }
 0x1a8   :  { %2494 = vmatprep.mubr.bf16.mxu0 %v8067_v61  ;;  %2638 = vmatprep.mubr.bf16.mxu1 %v8069_v62  ;;  %v8151_v62 = vld [vmem:[%s10433_s3 + $0x438] ss:$12 sps:$4 sm:$0xff]  }
 0x1af   :  { %2495 = vmatmul.mubr.bf16.gmra.mrb[96].mxu0 %v8071_v63  ;;  %2639 = vmatmul.mubr.bf16.gmra.mrb[48].mxu1 %v8072_v0  ;;  %v8152_v63 = vld [vmem:[%s10433_s3 + $0x1d0] ss:$12 sps:$4 sm:$0xff]  }
 0x1b0   :  { %2502 = vmatprep.mubr.bf16.mxu0 %v8073_v1  ;;  %2646 = vmatprep.mubr.bf16.mxu1 %v8075_v2  ;;  %v8153_v2 = vld [vmem:[%s10433_s3 + $0x454] ss:$12 sps:$4 sm:$0xff]  }
 0x1b7   :  { %2503 = vmatmul.mubr.bf16.gmra.mrb[100].mxu0 %v8077_v3  ;;  %2647 = vmatmul.mubr.bf16.gmra.mrb[52].mxu1 %v8078_v4  ;;  %v8155_v3 = vld [vmem:[%s10433_s3 + $0x1e8] ss:$12 sps:$4 sm:$0xff]  }
 0x1b8   :  { %2510 = vmatprep.mubr.bf16.mxu0 %v8079_v5  ;;  %2654 = vmatprep.mubr.bf16.mxu1 %v8081_v6 }
 0x1bf   :  { %2511 = vmatmul.mubr.bf16.gmra.mrb[104].mxu0 %v8083_v7  ;;  %2655 = vmatmul.mubr.bf16.gmra.mrb[56].mxu1 %v8084_v8 }
 0x1c0   :  { %2518 = vmatprep.mubr.bf16.mxu0 %v8085_v9  ;;  %2662 = vmatprep.mubr.bf16.mxu1 %v8087_v10  ;;  %v8156_v10 = vld [vmem:[%s10433_s3 + $0x450] ss:$12 sps:$4 sm:$0xff]  }
 0x1c7   :  { %2519 = vmatmul.mubr.bf16.gmra.mrb[108].mxu0 %v8089_v11  ;;  %2663 = vmatmul.mubr.bf16.gmra.mrb[60].mxu1 %v8090_v12  ;;  %v8157_v11 = vld [vmem:[%s10433_s3 + $0x200] ss:$12 sps:$4 sm:$0xff]  }
 0x1c8   :  { %2526 = vmatprep.mubr.bf16.mxu0 %v8091_v13  ;;  %2670 = vmatprep.mubr.bf16.mxu1 %v8093_v14  ;;  %v8158_v14 = vld [vmem:[%s10433_s3 + $0x46c] ss:$12 sps:$4 sm:$0xff]  }
 0x1cf   :  { %2527 = vmatmul.mubr.bf16.gmra.mrb[112].mxu0 %v8095_v15  ;;  %2671 = vmatmul.mubr.bf16.gmra.mrb[64].mxu1 %v8096_v16  ;;  %v8160_v15 = vld [vmem:[%s10433_s3 + $0x218] ss:$12 sps:$4 sm:$0xff]  }
 0x1d0   :  { %2534 = vmatprep.mubr.bf16.mxu0 %v8097_v17  ;;  %2678 = vmatprep.mubr.bf16.mxu1 %v8099_v18 }
 0x1d7   :  { %2535 = vmatmul.mubr.bf16.gmra.mrb[116].mxu0 %v8101_v19  ;;  %2679 = vmatmul.mubr.bf16.gmra.mrb[68].mxu1 %v8102_v20 }
 0x1d8   :  { %2686 = vmatprep.mubr.bf16.mxu1 %v8103_v21  ;;  %7222 = vmatprep.mubr.bf16.mxu0 %v8105_v22  ;;  %v8161_v22 = vld [vmem:[%s10433_s3 + $0x468] ss:$12 sps:$4 sm:$0xff]  }
 0x1df   :  { %2687 = vmatmul.mubr.bf16.gmra.mrb[72].mxu1 %v8106_v23  ;;  %7223 = vmatmul.mubr.bf16.vlgmr.msra.gmra.mrb[120].mxu0 %v8107_v24  ;;  %v8162_v23 = vld [vmem:[%s10433_s3 + $0x230] ss:$12 sps:$4 sm:$0xff]  }
 0x1e0   :  { %2694 = vmatprep.mubr.bf16.mxu1 %v8108_v25  ;;  %7226 = vmatprep.mubr.bf16.mxu0 %v8110_v26  ;;  %v8163_v26 = vld [vmem:[%s10433_s3 + $0x484] ss:$12 sps:$4 sm:$0xff]  }
 0x1e7   :  { %2695 = vmatmul.mubr.bf16.gmra.mrb[76].mxu1 %v8111_v27  ;;  %7227 = vmatmul.mubr.bf16.gmra.mrb[124].mxu0 %v8112_v28  ;;  %v8165_v27 = vld [vmem:[%s10433_s3 + $0x248] ss:$12 sps:$4 sm:$0xff]  }
 0x1e8   :  { %2702 = vmatprep.mubr.bf16.mxu1 %v8113_v35  ;;  %7230 = vmatprep.mubr.bf16.mxu0 %v8115_v29 }
 0x1ef   :  { %2703 = vmatmul.mubr.bf16.gmra.mrb[80].mxu1 %v8116_v30  ;;  %7231 = vmatmul.mubr.bf16.gmra.mrb[128].mxu0 %v8117_v31 }
 0x1f0   :  { %2710 = vmatprep.mubr.bf16.mxu1 %v8118_v33  ;;  %7234 = vmatprep.mubr.bf16.mxu0 %v8120_v34  ;;  %v8166_v34 = vld [vmem:[%s10433_s3 + $0x480] ss:$12 sps:$4 sm:$0xff]  }
 0x1f7   :  { %2711 = vmatmul.mubr.bf16.gmra.mrb[84].mxu1 %v8121_v36  ;;  %7235 = vmatmul.mubr.bf16.gmra.mrb[132].mxu0 %v8122_v32  ;;  %v8167_v36 = vld [vmem:[%s10433_s3 + $0x260] ss:$12 sps:$4 sm:$0xff]  }
 0x1f8   :  { %2718 = vmatprep.mubr.bf16.mxu1 %v8123_v37  ;;  %7238 = vmatprep.mubr.bf16.mxu0 %v8125_v38  ;;  %v8168_v38 = vld [vmem:[%s10433_s3 + $0x49c] ss:$12 sps:$4 sm:$0xff]  }
 0x1ff   :  { %2719 = vmatmul.mubr.bf16.gmra.mrb[88].mxu1 %v8126_v39  ;;  %7239 = vmatmul.mubr.bf16.gmra.mrb[136].mxu0 %v8127_v40  ;;  %v8170_v39 = vld [vmem:[%s10433_s3 + $0x278] ss:$12 sps:$4 sm:$0xff]  }
 0x200   :  { %2726 = vmatprep.mubr.bf16.mxu1 %v8128_v41  ;;  %7242 = vmatprep.mubr.bf16.mxu0 %v8130_v42 }
 0x207   :  { %2727 = vmatmul.mubr.bf16.gmra.mrb[92].mxu1 %v8131_v43  ;;  %7243 = vmatmul.mubr.bf16.gmra.mrb[140].mxu0 %v8132_v44 }
 0x208   :  { %2734 = vmatprep.mubr.bf16.mxu1 %v8133_v45  ;;  %7246 = vmatprep.mubr.bf16.mxu0 %v8135_v46  ;;  %v8171_v46 = vld [vmem:[%s10433_s3 + $0x498] ss:$12 sps:$4 sm:$0xff]  }
 0x20f   :  { %2735 = vmatmul.mubr.bf16.gmra.mrb[96].mxu1 %v8136_v47  ;;  %7247 = vmatmul.mubr.bf16.gmra.mrb[144].mxu0 %v8137_v48  ;;  %v8172_v47 = vld [vmem:[%s10433_s3 + $0x290] ss:$12 sps:$4 sm:$0xff]  }
 0x210   :  { %2742 = vmatprep.mubr.bf16.mxu1 %v8138_v49  ;;  %7250 = vmatprep.mubr.bf16.mxu0 %v8140_v50  ;;  %v8173_v50 = vld [vmem:[%s10433_s3 + $0x4b4] ss:$12 sps:$4 sm:$0xff]  }
 0x217   :  { %2743 = vmatmul.mubr.bf16.gmra.mrb[100].mxu1 %v8141_v51  ;;  %7251 = vmatmul.mubr.bf16.gmra.mrb[148].mxu0 %v8142_v52  ;;  %v8175_v51 = vld [vmem:[%s10433_s3 + $0x2a8] ss:$12 sps:$4 sm:$0xff]  }
 0x218   :  { %2750 = vmatprep.mubr.bf16.mxu1 %v8143_v53  ;;  %7254 = vmatprep.mubr.bf16.mxu0 %v8145_v54 }
 0x21f   :  { %2751 = vmatmul.mubr.bf16.gmra.mrb[104].mxu1 %v8146_v55  ;;  %7255 = vmatmul.mubr.bf16.gmra.mrb[152].mxu0 %v8147_v56 }
 0x220   :  { %2758 = vmatprep.mubr.bf16.mxu1 %v8148_v57  ;;  %7258 = vmatprep.mubr.bf16.mxu0 %v8150_v58  ;;  %v8176_v58 = vld [vmem:[%s10433_s3 + $0x4b0] ss:$12 sps:$4 sm:$0xff]  }
 0x222   :  { %v9166_v59 = vpop.f32.mrb[0].mxu1  ;;  %v9168_v60 = vpop.f32.mrb[48].mxu0 }
 0x223   :  { %v2546_v61 = vpop.f32.mrb[1].mxu1  ;;  %v2402_v0 = vpop.f32.mrb[49].mxu0 }
 0x224   :  { %v9176_v1 = vpop.f32.mrb[2].mxu1  ;;  %v9184_v4 = vpop.f32.mrb[50].mxu0  ;;  %v8177_v61 = vld [vmem:[%s10433_s3 + $0x2c0] ss:$12 sps:$4 sm:$0xff]  }
 0x225   :  { %v2549_v5 = vpop.f32.mrb[3].mxu1  ;;  %v2405_v6 = vpop.f32.mrb[51].mxu0  ;;  %v8178_v0 = vld [vmem:[%s10433_s3 + $0x4cc] ss:$12 sps:$4 sm:$0xff]  }
 0x227   :  { %2759 = vmatmul.mubr.bf16.gmra.mrb[108].mxu1 %v8151_v62  ;;  %7259 = vmatmul.mubr.bf16.gmra.mrb[156].mxu0 %v8152_v63 }
 0x228   :  { %2766 = vmatprep.mubr.bf16.mxu1 %v8153_v2  ;;  %7262 = vmatprep.mubr.bf16.mxu0 %v8155_v3  ;;  %v8180_v2 = vld [vmem:[%s10433_s3 + $0x2d8] ss:$12 sps:$4 sm:$0xff]  }
 0x22a   :  { %v9186_v7 = vpop.f32.mrb[4].mxu1  ;;  %v9188_v8 = vpop.f32.mrb[52].mxu0 }
 0x22b   :  { %v2554_v9 = vpop.f32.mrb[5].mxu1  ;;  %v2410_v12 = vpop.f32.mrb[53].mxu0 }
 0x22c   :  { %v9196_v13 = vpop.f32.mrb[6].mxu1  ;;  %v9204_v16 = vpop.f32.mrb[54].mxu0  ;;  %v8181_v12 = vld [vmem:[%s10433_s3 + $0x4c8] ss:$12 sps:$4 sm:$0xff]  }
 0x22d   :  { %v2557_v17 = vpop.f32.mrb[7].mxu1  ;;  %v2413_v18 = vpop.f32.mrb[55].mxu0 }
 0x22e   :  { %v8183_v18 = vld [vmem:[%s10433_s3 + $0x4e4] ss:$12 sps:$4 sm:$0xff]  }
 0x22f   :  { %2767 = vmatmul.mubr.bf16.gmra.mrb[112].mxu1 %v8156_v10  ;;  %7263 = vmatmul.mubr.bf16.gmra.mrb[160].mxu0 %v8157_v11 }
 0x230   :  { %2774 = vmatprep.mubr.bf16.mxu1 %v8158_v14  ;;  %7266 = vmatprep.mubr.bf16.mxu0 %v8160_v15  ;;  %v8182_v14 = vld [vmem:[%s10433_s3 + $0x2f0] ss:$12 sps:$4 sm:$0xff]  }
 0x232   :  { %v9206_v19 = vpop.f32.mrb[8].mxu1  ;;  %v9208_v20 = vpop.f32.mrb[56].mxu0 }
 0x233   :  { %v2562_v21 = vpop.f32.mrb[9].mxu1  ;;  %v2418_v24 = vpop.f32.mrb[57].mxu0 }
 0x234   :  { %v9216_v25 = vpop.f32.mrb[10].mxu1  ;;  %v9224_v28 = vpop.f32.mrb[58].mxu0  ;;  %v8185_v21 = vld [vmem:[%s10433_s3 + $0x308] ss:$12 sps:$4 sm:$0xff]  }
 0x235   :  { %v2565_v35 = vpop.f32.mrb[11].mxu1  ;;  %v2421_v29 = vpop.f32.mrb[59].mxu0 }
 0x236   :  { %v8186_v29 = vld [vmem:[%s10433_s3 + $0x4e0] ss:$12 sps:$4 sm:$0xff]  }
 0x237   :  { %2775 = vmatmul.mubr.bf16.gmra.mrb[116].mxu1 %v8161_v22  ;;  %7267 = vmatmul.mubr.bf16.gmra.mrb[164].mxu0 %v8162_v23 }
 0x238   :  { %2782 = vmatprep.mubr.bf16.mxu1 %v8163_v26  ;;  %7270 = vmatprep.mubr.bf16.mxu0 %v8165_v27 }
 0x23a   :  { %v9226_v30 = vpop.f32.mrb[12].mxu1  ;;  %v9228_v31 = vpop.f32.mrb[60].mxu0 }
 0x23b   :  { %v2570_v33 = vpop.f32.mrb[13].mxu1  ;;  %v2426_v32 = vpop.f32.mrb[61].mxu0 }
 0x23c   :  { %v9236_v37 = vpop.f32.mrb[14].mxu1  ;;  %v9244_v40 = vpop.f32.mrb[62].mxu0  ;;  %v8187_v33 = vld [vmem:[%s10433_s3 + $0x320] ss:$12 sps:$4 sm:$0xff]   ;;  %v8188_v32 = vld [vmem:[%s10433_s3 + $0x4fc] ss:$12 sps:$4 sm:$0xff]  }
 0x23d   :  { %v2573_v41 = vpop.f32.mrb[15].mxu1  ;;  %v2429_v42 = vpop.f32.mrb[63].mxu0 }
 0x23f   :  { %2783 = vmatmul.mubr.bf16.gmra.mrb[120].mxu1 %v8166_v34  ;;  %7271 = vmatmul.mubr.bf16.gmra.mrb[168].mxu0 %v8167_v36 }
 0x240   :  { %2790 = vmatprep.mubr.bf16.mxu1 %v8168_v38  ;;  %7274 = vmatprep.mubr.bf16.mxu0 %v8170_v39  ;;  %v8190_v38 = vld [vmem:[%s10433_s3 + $0x338] ss:$12 sps:$4 sm:$0xff]  }
 0x242   :  { %v9246_v43 = vpop.f32.mrb[16].mxu1  ;;  %v9248_v44 = vpop.f32.mrb[64].mxu0 }
 0x243   :  { %v2578_v45 = vpop.f32.mrb[17].mxu1  ;;  %v2434_v48 = vpop.f32.mrb[65].mxu0 }
 0x244   :  { %v9256_v49 = vpop.f32.mrb[18].mxu1  ;;  %v9264_v52 = vpop.f32.mrb[66].mxu0  ;;  %v8191_v48 = vld [vmem:[%s10433_s3 + $0x4f8] ss:$12 sps:$4 sm:$0xff]  }
 0x245   :  { %v2581_v53 = vpop.f32.mrb[19].mxu1  ;;  %v2437_v54 = vpop.f32.mrb[67].mxu0 }
 0x246   :  { %v8193_v54 = vld [vmem:[%s10433_s3 + $0x514] ss:$12 sps:$4 sm:$0xff]  }
 0x247   :  { %2791 = vmatmul.mubr.bf16.gmra.mrb[124].mxu1 %v8171_v46  ;;  %7275 = vmatmul.mubr.bf16.gmra.mrb[172].mxu0 %v8172_v47 }
 0x248   :  { %2798 = vmatprep.mubr.bf16.mxu1 %v8173_v50  ;;  %7278 = vmatprep.mubr.bf16.mxu0 %v8175_v51  ;;  %v8192_v50 = vld [vmem:[%s10433_s3 + $0x350] ss:$12 sps:$4 sm:$0xff]  }
 0x24a   :  { %v9266_v55 = vpop.f32.mrb[20].mxu1  ;;  %v9268_v56 = vpop.f32.mrb[68].mxu0 }
 0x24b   :  { %v2586_v57 = vpop.f32.mrb[21].mxu1  ;;  %v2442_v62 = vpop.f32.mrb[69].mxu0 }
 0x24c   :  { %v9276_v63 = vpop.f32.mrb[22].mxu1  ;;  %v9284_v3 = vpop.f32.mrb[70].mxu0  ;;  %v8195_v57 = vld [vmem:[%s10433_s3 + $0x368] ss:$12 sps:$4 sm:$0xff]  }
 0x24d   :  { %v2589_v5 = vpop.f32.mrb[23].mxu1  ;;  %v2445_v6 = vpop.f32.mrb[71].mxu0 }
 0x24e   :  { %v8196_v6 = vld [vmem:[%s10433_s3 + $0x510] ss:$12 sps:$4 sm:$0xff]  }
 0x24f   :  { %2799 = vmatmul.mubr.bf16.gmra.mrb[128].mxu1 %v8176_v58  ;;  %7279 = vmatmul.mubr.bf16.gmra.mrb[176].mxu0 %v8177_v61 }
 0x250   :  { %2806 = vmatprep.mubr.bf16.mxu1 %v8178_v0  ;;  %7282 = vmatprep.mubr.bf16.mxu0 %v8180_v2 }
 0x252   :  { %v9286_v9 = vpop.f32.mrb[24].mxu1  ;;  %v9288_v10 = vpop.f32.mrb[72].mxu0 }
 0x253   :  { %v2594_v11 = vpop.f32.mrb[25].mxu1  ;;  %v2450_v15 = vpop.f32.mrb[73].mxu0 }
 0x254   :  { %v9296_v17 = vpop.f32.mrb[26].mxu1  ;;  %v9304_v22 = vpop.f32.mrb[74].mxu0  ;;  %v8197_v11 = vld [vmem:[%s10433_s3 + $0x380] ss:$12 sps:$4 sm:$0xff]  }
 0x255   :  { %10442 = vst [vmem:[#allocation7_spill] sm:$0xff] %v9296_v17  ;;  %v2597_v23 = vpop.f32.mrb[27].mxu1  ;;  %v2453_v24 = vpop.f32.mrb[75].mxu0  ;;  %v8198_v15 = vld [vmem:[%s10433_s3 + $0x52c] ss:$12 sps:$4 sm:$0xff]  }
 0x257   :  { %2807 = vmatmul.mubr.bf16.gmra.mrb[132].mxu1 %v8181_v12  ;;  %7283 = vmatmul.mubr.bf16.gmra.mrb[180].mxu0 %v8182_v14 }
 0x258   :  { %2814 = vmatprep.mubr.bf16.mxu1 %v8183_v18  ;;  %7286 = vmatprep.mubr.bf16.mxu0 %v8185_v21  ;;  %v8200_v18 = vld [vmem:[%s10433_s3 + $0x398] ss:$12 sps:$4 sm:$0xff]  }
 0x25a   :  { %v9306_v26 = vpop.f32.mrb[28].mxu1  ;;  %v9308_v27 = vpop.f32.mrb[76].mxu0 }
 0x25b   :  { %v2602_v35 = vpop.f32.mrb[29].mxu1  ;;  %v2458_v34 = vpop.f32.mrb[77].mxu0 }
 0x25c   :  { %v9316_v36 = vpop.f32.mrb[30].mxu1  ;;  %v9324_v39 = vpop.f32.mrb[78].mxu0  ;;  %v8201_v34 = vld [vmem:[%s10433_s3 + $0x528] ss:$12 sps:$4 sm:$0xff]  }
 0x25d   :  { %v2605_v41 = vpop.f32.mrb[31].mxu1  ;;  %v2461_v42 = vpop.f32.mrb[79].mxu0 }
 0x25e   :  { %v8203_v42 = vld [vmem:[%s10433_s3 + $0x544] ss:$12 sps:$4 sm:$0xff]  }
 0x25f   :  { %2815 = vmatmul.mubr.bf16.gmra.mrb[136].mxu1 %v8186_v29  ;;  %7287 = vmatmul.mubr.bf16.gmra.mrb[184].mxu0 %v8187_v33 }
 0x260   :  { %2822 = vmatprep.mubr.bf16.mxu1 %v8188_v32  ;;  %7290 = vmatprep.mubr.bf16.mxu0 %v8190_v38  ;;  %v8202_v32 = vld [vmem:[%s10433_s3 + $0x3b0] ss:$12 sps:$4 sm:$0xff]  }
 0x262   :  { %v9326_v45 = vpop.f32.mrb[32].mxu1  ;;  %v9328_v46 = vpop.f32.mrb[80].mxu0 }
 0x263   :  { %10443 = vst [vmem:[#allocation8_spill] sm:$0xff] %v9326_v45  ;;  %v2610_v47 = vpop.f32.mrb[33].mxu1  ;;  %v2466_v51 = vpop.f32.mrb[81].mxu0 }
 0x264   :  { %v9336_v53 = vpop.f32.mrb[34].mxu1  ;;  %v9344_v58 = vpop.f32.mrb[82].mxu0  ;;  %v8205_v47 = vld [vmem:[%s10433_s3 + $0x3c8] ss:$12 sps:$4 sm:$0xff]  }
 0x265   :  { %10444 = vst [vmem:[#allocation9_spill] sm:$0xff] %v9336_v53  ;;  %v2613_v61 = vpop.f32.mrb[35].mxu1  ;;  %v2469_v62 = vpop.f32.mrb[83].mxu0  ;;  %v8236_v53 = vld [vmem:[%s10433_s3 + $0x5d0] ss:$12 sps:$4 sm:$0xff]  }
 0x266   :  { %v8206_v62 = vld [vmem:[%s10433_s3 + $0x540] ss:$12 sps:$4 sm:$0xff]  }
 0x267   :  { %2823 = vmatmul.mubr.bf16.gmra.mrb[140].mxu1 %v8191_v48  ;;  %7291 = vmatmul.mubr.bf16.gmra.mrb[188].mxu0 %v8192_v50 }
 0x268   :  { %2830 = vmatprep.mubr.bf16.mxu1 %v8193_v54  ;;  %7294 = vmatprep.mubr.bf16.mxu0 %v8195_v57 }
 0x26a   :  { %v9346_v0 = vpop.f32.mrb[36].mxu1  ;;  %v9348_v2 = vpop.f32.mrb[84].mxu0 }
 0x26b   :  { %10445 = vst [vmem:[#allocation10_spill] sm:$0xff] %v9346_v0  ;;  %v2618_v5 = vpop.f32.mrb[37].mxu1  ;;  %v2474_v12 = vpop.f32.mrb[85].mxu0  ;;  %v8241_v0 = vld [vmem:[%s10433_s3 + $0x5e8] ss:$12 sps:$4 sm:$0xff]  }
 0x26c   :  { %v9356_v14 = vpop.f32.mrb[38].mxu1  ;;  %v9364_v21 = vpop.f32.mrb[86].mxu0  ;;  %v8207_v5 = vld [vmem:[%s10433_s3 + $0x3e0] ss:$12 sps:$4 sm:$0xff]   ;;  %v8208_v12 = vld [vmem:[%s10433_s3 + $0x55c] ss:$12 sps:$4 sm:$0xff]  }
 0x26d   :  { %10446 = vst [vmem:[#allocation11_spill] sm:$0xff] %v9356_v14  ;;  %v2621_v23 = vpop.f32.mrb[39].mxu1  ;;  %v2477_v24 = vpop.f32.mrb[87].mxu0  ;;  %v8237_v14 = vld [vmem:[%s10433_s3 + $0x500] ss:$12 sps:$4 sm:$0xff]  }
 0x26f   :  { %2831 = vmatmul.mubr.bf16.gmra.mrb[144].mxu1 %v8196_v6  ;;  %7295 = vmatmul.mubr.bf16.gmra.mrb[192].mxu0 %v8197_v11 }
 0x270   :  { %2838 = vmatprep.mubr.bf16.mxu1 %v8198_v15  ;;  %7298 = vmatprep.mubr.bf16.mxu0 %v8200_v18  ;;  %v8210_v15 = vld [vmem:[%s10433_s3 + $0x3f8] ss:$12 sps:$4 sm:$0xff]  }
 0x272   :  { %v9366_v35 = vpop.f32.mrb[40].mxu1  ;;  %v9368_v29 = vpop.f32.mrb[88].mxu0 }
 0x273   :  { %10447 = vst [vmem:[#allocation12_spill] sm:$0xff] %v9366_v35  ;;  %v2626_v33 = vpop.f32.mrb[41].mxu1  ;;  %v2482_v38 = vpop.f32.mrb[89].mxu0  ;;  %v8232_v35 = vld [vmem:[%s10433_s3 + $0x4d0] ss:$12 sps:$4 sm:$0xff]  }
 0x274   :  { %v9376_v41 = vpop.f32.mrb[42].mxu1  ;;  %v9384_v48 = vpop.f32.mrb[90].mxu0  ;;  %v8211_v38 = vld [vmem:[%s10433_s3 + $0x558] ss:$12 sps:$4 sm:$0xff]  }
 0x275   :  { %10448 = vst [vmem:[#allocation13_spill] sm:$0xff] %v9376_v41  ;;  %v2629_v50 = vpop.f32.mrb[43].mxu1  ;;  %v2485_v51 = vpop.f32.mrb[91].mxu0  ;;  %v8227_v41 = vld [vmem:[%s10433_s3 + $0x4a0] ss:$12 sps:$4 sm:$0xff]  }
 0x276   :  { %v8213_v51 = vld [vmem:[%s10433_s3 + $0x574] ss:$12 sps:$4 sm:$0xff]  }
 0x277   :  { %2839 = vmatmul.mubr.bf16.gmra.mrb[148].mxu1 %v8201_v34  ;;  %7299 = vmatmul.mubr.bf16.gmra.mrb[196].mxu0 %v8202_v32 }
 0x278   :  { %2846 = vmatprep.mubr.bf16.mxu1 %v8203_v42  ;;  %7302 = vmatprep.mubr.bf16.mxu0 %v8205_v47  ;;  %v8212_v42 = vld [vmem:[%s10433_s3 + $0x410] ss:$12 sps:$4 sm:$0xff]  }
 0x27a   :  { %v9386_v54 = vpop.f32.mrb[44].mxu1  ;;  %v9388_v57 = vpop.f32.mrb[92].mxu0 }
 0x27b   :  { %10449 = vst [vmem:[#allocation14_spill] sm:$0xff] %v9386_v54  ;;  %v2634_v61 = vpop.f32.mrb[45].mxu1  ;;  %v2490_v6 = vpop.f32.mrb[93].mxu0 }
 0x27c   :  { %v9396_v11 = vpop.f32.mrb[46].mxu1  ;;  %v9404_v18 = vpop.f32.mrb[94].mxu0  ;;  %v8215_v61 = vld [vmem:[%s10433_s3 + $0x428] ss:$12 sps:$4 sm:$0xff]  }
 0x27d   :  { %10450 = vst [vmem:[#allocation15_spill] sm:$0xff] %v9396_v11  ;;  %v2637_v23 = vpop.f32.mrb[47].mxu1  ;;  %v2493_v24 = vpop.f32.mrb[95].mxu0 }
 0x27e   :  { %v8216_v24 = vld [vmem:[%s10433_s3 + $0x570] ss:$12 sps:$4 sm:$0xff]  }
 0x27f   :  { %2847 = vmatmul.mubr.bf16.gmra.mrb[152].mxu1 %v8206_v62  ;;  %7303 = vmatmul.mubr.bf16.gmra.mrb[200].mxu0 %v8207_v5 }
 0x280   :  { %2854 = vmatprep.mubr.bf16.mxu1 %v8208_v12  ;;  %7306 = vmatprep.mubr.bf16.mxu0 %v8210_v15 }
 0x282   :  { %v9406_v33 = vpop.f32.mrb[48].mxu1  ;;  %v9408_v34 = vpop.f32.mrb[96].mxu0 }
 0x283   :  { %10451 = vst [vmem:[#allocation16_spill] sm:$0xff] %v9406_v33  ;;  %v2642_v32 = vpop.f32.mrb[49].mxu1  ;;  %v2498_v47 = vpop.f32.mrb[97].mxu0  ;;  %v8222_v33 = vld [vmem:[%s10433_s3 + $0x470] ss:$12 sps:$4 sm:$0xff]  }
 0x284   :  { %v9416_v50 = vpop.f32.mrb[50].mxu1  ;;  %v9424_v62 = vpop.f32.mrb[98].mxu0  ;;  %v8217_v32 = vld [vmem:[%s10433_s3 + $0x440] ss:$12 sps:$4 sm:$0xff]  }
 0x285   :  { %10452 = vst [vmem:[#allocation17_spill] sm:$0xff] %v9416_v50  ;;  %v2645_v5 = vpop.f32.mrb[51].mxu1  ;;  %v2501_v6 = vpop.f32.mrb[99].mxu0 }
 0x287   :  { %2855 = vmatmul.mubr.bf16.gmra.mrb[156].mxu1 %v8211_v38  ;;  %7307 = vmatmul.mubr.bf16.gmra.mrb[204].mxu0 %v8212_v42  ;;  %v8218_v38 = vld [vmem:[%s10433_s3 + $0x58c] ss:$12 sps:$4 sm:$0xff]  }
 0x288   :  { %2862 = vmatprep.mubr.bf16.mxu1 %v8213_v51  ;;  %7310 = vmatprep.mubr.bf16.mxu0 %v8215_v61  ;;  %v8220_v42 = vld [vmem:[%s10433_s3 + $0x458] ss:$12 sps:$4 sm:$0xff]  }
 0x28a   :  { %v9426_v12 = vpop.f32.mrb[52].mxu1  ;;  %v9428_v15 = vpop.f32.mrb[100].mxu0 }
 0x28b   :  { %10453 = vst [vmem:[#allocation18_spill] sm:$0xff] %v9426_v12  ;;  %v2650_v23 = vpop.f32.mrb[53].mxu1  ;;  %v2506_v47 = vpop.f32.mrb[101].mxu0 }
 0x28c   :  { %v9436_v5 = vpop.f32.mrb[54].mxu1  ;;  %v9444_v51 = vpop.f32.mrb[102].mxu0 }
 0x28d   :  { %10454 = vst [vmem:[#allocation19_spill] sm:$0xff] %v9436_v5  ;;  %v2653_v61 = vpop.f32.mrb[55].mxu1  ;;  %v2509_v6 = vpop.f32.mrb[103].mxu0  ;;  %v8221_v5 = vld [vmem:[%s10433_s3 + $0x588] ss:$12 sps:$4 sm:$0xff]  }
 0x28f   :  { %2863 = vmatmul.mubr.bf16.gmra.mrb[160].mxu1 %v8216_v24  ;;  %7311 = vmatmul.mubr.bf16.gmra.mrb[208].mxu0 %v8217_v32  ;;  %v8223_v24 = vld [vmem:[%s10433_s3 + $0x5a4] ss:$12 sps:$4 sm:$0xff]   ;;  %v8225_v32 = vld [vmem:[%s10433_s3 + $0x488] ss:$12 sps:$4 sm:$0xff]  }
 0x290   :  { %2870 = vmatprep.mubr.bf16.mxu1 %v8218_v38  ;;  %7314 = vmatprep.mubr.bf16.mxu0 %v8220_v42 }
 0x292   :  { %v9446_v23 = vpop.f32.mrb[56].mxu1  ;;  %v9448_v47 = vpop.f32.mrb[104].mxu0 }
 0x293   :  { %10455 = vst [vmem:[#allocation20_spill] sm:$0xff] %v9446_v23  ;;  %v2658_v50 = vpop.f32.mrb[57].mxu1  ;;  %v2514_v12 = vpop.f32.mrb[105].mxu0  ;;  %v8226_v23 = vld [vmem:[%s10433_s3 + $0x5a0] ss:$12 sps:$4 sm:$0xff]  }
 0x294   :  { %v9456_v61 = vpop.f32.mrb[58].mxu1  ;;  %v9464_v50 = vpop.f32.mrb[106].mxu0 }
 0x295   :  { %10456 = vst [vmem:[#allocation21_spill] sm:$0xff] %v9456_v61  ;;  %v2661_v38 = vpop.f32.mrb[59].mxu1  ;;  %v2517_v42 = vpop.f32.mrb[107].mxu0 }
 0x297   :  { %2871 = vmatmul.mubr.bf16.gmra.mrb[164].mxu1 %v8221_v5  ;;  %7315 = vmatmul.mubr.bf16.gmra.mrb[212].mxu0 %v8222_v33  ;;  %v8228_v33 = vld [vmem:[%s10433_s3 + $0x5bc] ss:$12 sps:$4 sm:$0xff]   ;;  %v8230_v5 = vld [vmem:[%s10433_s3 + $0x4b8] ss:$12 sps:$4 sm:$0xff]  }
 0x298   :  { %2878 = vmatprep.mubr.bf16.mxu1 %v8223_v24  ;;  %7318 = vmatprep.mubr.bf16.mxu0 %v8225_v32 }
 0x29a   :  { %v9466_v6 = vpop.f32.mrb[60].mxu1  ;;  %v9468_v12 = vpop.f32.mrb[108].mxu0 }
 0x29b   :  { %10457 = vst [vmem:[#allocation22_spill] sm:$0xff] %v9466_v6  ;;  %v2666_v61 = vpop.f32.mrb[61].mxu1  ;;  %v2522_v11 = vpop.f32.mrb[109].mxu0  ;;  %v8231_v6 = vld [vmem:[%s10433_s3 + $0x5b8] ss:$12 sps:$4 sm:$0xff]  }
 0x29c   :  { %v9476_v38 = vpop.f32.mrb[62].mxu1  ;;  %v9484_v61 = vpop.f32.mrb[110].mxu0 }
 0x29d   :  { %10458 = vst [vmem:[#allocation23_spill] sm:$0xff] %v9476_v38  ;;  %v2669_v24 = vpop.f32.mrb[63].mxu1  ;;  %v2525_v32 = vpop.f32.mrb[111].mxu0 }
 0x29f   :  { %2879 = vmatmul.mubr.bf16.gmra.mrb[168].mxu1 %v8226_v23  ;;  %7319 = vmatmul.mubr.bf16.gmra.mrb[216].mxu0 %v8227_v41  ;;  %v8233_v41 = vld [vmem:[%s10433_s3 + $0x5d4] ss:$12 sps:$4 sm:$0xff]  }
 0x2a0   :  { %2886 = vmatprep.mubr.bf16.mxu1 %v8228_v33  ;;  %7322 = vmatprep.mubr.bf16.mxu0 %v8230_v5 }
 0x2a2   :  { %v9486_v42 = vpop.f32.mrb[64].mxu1  ;;  %v9488_v11 = vpop.f32.mrb[112].mxu0 }
 0x2a3   :  { %10459 = vst [vmem:[#allocation24_spill] sm:$0xff] %v9486_v42  ;;  %v2674_v38 = vpop.f32.mrb[65].mxu1  ;;  %v2530_v54 = vpop.f32.mrb[113].mxu0 }
 0x2a4   :  { %v9496_v24 = vpop.f32.mrb[66].mxu1  ;;  %v9498_v23 = vpop.f32.mrb[114].mxu0  ;;  %v8235_v38 = vld [vmem:[%s10433_s3 + $0x4e8] ss:$12 sps:$4 sm:$0xff]  }
 0x2a5   :  { %10460 = vst [vmem:[#allocation25_spill] sm:$0xff] %v9496_v24  ;;  %v2677_v33 = vpop.f32.mrb[67].mxu1  ;;  %v2533_v5 = vpop.f32.mrb[115].mxu0 }
 0x2a7   :  { %2887 = vmatmul.mubr.bf16.gmra.mrb[172].mxu1 %v8231_v6  ;;  %7323 = vmatmul.mubr.bf16.gmra.mrb[220].mxu0 %v8232_v35  ;;  %v8238_v35 = vld [vmem:[%s10433_s3 + $0x5ec] ss:$12 sps:$4 sm:$0xff]  }
 0x2a8   :  { %2894 = vmatprep.mubr.bf16.mxu1 %v8233_v41  ;;  %7326 = vmatprep.mubr.bf16.mxu0 %v8235_v38 }
 0x2aa   :  { %v9506_v32 = vpop.f32.mrb[68].mxu1  ;;  %v9508_v54 = vpop.f32.mrb[116].mxu0 }
 0x2ab   :  { %10461 = vst [vmem:[#allocation26_spill] sm:$0xff] %v9506_v32  ;;  %v2682_v24 = vpop.f32.mrb[69].mxu1  ;;  %v2538_v42 = vpop.f32.mrb[117].mxu0 }
 0x2ac   :  { %v9516_v33 = vpop.f32.mrb[70].mxu1  ;;  %v9518_v6 = vpop.f32.mrb[118].mxu0  ;;  %v8240_v42 = vld [vmem:[%s10433_s3 + $0x518] ss:$12 sps:$4 sm:$0xff]  }
 0x2ad   :  { %10462 = vst [vmem:[#allocation27_spill] sm:$0xff] %v9516_v33  ;;  %v2685_v24 = vpop.f32.mrb[71].mxu1  ;;  %v2541_v41 = vpop.f32.mrb[119].mxu0 }
 0x2ae   :  { %v8242_v24 = vld [vmem:[%s10433_s3 + $0x530] ss:$12 sps:$4 sm:$0xff]  }
 0x2af   :  { %2895 = vmatmul.mubr.bf16.gmra.mrb[176].mxu1 %v8236_v53  ;;  %7327 = vmatmul.mubr.bf16.gmra.mrb[224].mxu0 %v8237_v14 }
 0x2b0   :  { %2902 = vmatprep.mubr.bf16.mxu1 %v8238_v35  ;;  %7330 = vmatprep.mubr.bf16.mxu0 %v8240_v42  ;;  %v8243_v42 = vld [vmem:[%s10433_s3 + $0x604] ss:$12 sps:$4 sm:$0xff]  }
 0x2b2   :  { %v9526_v38 = vpop.f32.mrb[72].mxu1  ;;  %v7224_v5 = vpop.f32.mrb[120].mxu0 }
 0x2b3   :  { %10463 = vst [vmem:[#allocation28_spill] sm:$0xff] %v9526_v38  ;;  %v3145_v33 = vadd.f32 %v7224_v5, %v9188_v8  ;;  %v2690_v32 = vpop.f32.mrb[73].mxu1  ;;  %v3136_v45 = vpop.f32.mrb[121].mxu0  ;;  %v8245_v8 = vld [vmem:[%s10433_s3 + $0x548] ss:$12 sps:$4 sm:$0xff]  }
 0x2b4   :  { %v3137_v53 = vadd.f32 %v3136_v45, %v9168_v60  ;;  %v9536_v14 = vpop.f32.mrb[74].mxu1  ;;  %v7225_v35 = vpop.f32.mrb[122].mxu0 }
 0x2b5   :  { %10464 = vst [vmem:[#allocation29_spill] sm:$0xff] %v9536_v14  ;;  %3840 = vst [vmem:[#allocation2 + $0x10] sm:$0xff] %v3145_v33  ;;  %v3148_v32 = vadd.f32 %v7225_v35, %v9204_v16  ;;  %v2693_v41 = vpop.f32.mrb[75].mxu1  ;;  %v3139_v5 = vpop.f32.mrb[123].mxu0  ;;  %v8246_v16 = vld [vmem:[%s10433_s3 + $0x600] ss:$12 sps:$4 sm:$0xff]  }
 0x2b6   :  { %3838 = vst [vmem:[#allocation2] sm:$0xff] %v3137_v53  ;;  %v3140_v38 = vadd.f32 %v3139_v5, %v9184_v4  ;;  %v8247_v4 = vld [vmem:[%s10433_s3 + $0x560] ss:$12 sps:$4 sm:$0xff]   ;;  %v8248_v53 = vld [vmem:[%s10433_s3 + $0x61c] ss:$12 sps:$4 sm:$0xff]  }
 0x2b7   :  { %3841 = vst [vmem:[#allocation2 + $0x18] sm:$0xff] %v3148_v32  ;;  %2903 = vmatmul.mubr.bf16.gmra.mrb[180].mxu1 %v8241_v0  ;;  %7331 = vmatmul.mubr.bf16.gmra.mrb[228].mxu0 %v8242_v24 }
 0x2b8   :  { %3839 = vst [vmem:[#allocation2 + $0x8] sm:$0xff] %v3140_v38  ;;  %2910 = vmatprep.mubr.bf16.mxu1 %v8243_v42  ;;  %7334 = vmatprep.mubr.bf16.mxu0 %v8245_v8 }
 0x2ba   :  { %v9546_v60 = vpop.f32.mrb[76].mxu1  ;;  %v7228_v45 = vpop.f32.mrb[124].mxu0 }
 0x2bb   :  { %v3161_v14 = vadd.f32 %v7228_v45, %v9228_v31  ;;  %v2698_v17 = vpop.f32.mrb[77].mxu1  ;;  %v3152_v33 = vpop.f32.mrb[125].mxu0  ;;  %v8250_v31 = vld [vmem:[%s10433_s3 + $0x578] ss:$12 sps:$4 sm:$0xff]  }
 0x2bc   :  { %v3153_v0 = vadd.f32 %v3152_v33, %v9208_v20  ;;  %v9556_v38 = vpop.f32.mrb[78].mxu1  ;;  %v7229_v24 = vpop.f32.mrb[126].mxu0 }
 0x2bd   :  { %3844 = vst [vmem:[#allocation2 + $0x30] sm:$0xff] %v3161_v14  ;;  %v3164_v17 = vadd.f32 %v7229_v24, %v9244_v40  ;;  %v2701_v35 = vpop.f32.mrb[79].mxu1  ;;  %v3155_v42 = vpop.f32.mrb[127].mxu0  ;;  %v8251_v40 = vld [vmem:[%s10433_s3 + $0x618] ss:$12 sps:$4 sm:$0xff]  }
 0x2be   :  { %3842 = vst [vmem:[#allocation2 + $0x20] sm:$0xff] %v3153_v0  ;;  %v3156_v8 = vadd.f32 %v3155_v42, %v9224_v28  ;;  %v8252_v28 = vld [vmem:[%s10433_s3 + $0x590] ss:$12 sps:$4 sm:$0xff]  }
 0x2bf   :  { %3845 = vst [vmem:[#allocation2 + $0x38] sm:$0xff] %v3164_v17  ;;  %2911 = vmatmul.mubr.bf16.gmra.mrb[184].mxu1 %v8246_v16  ;;  %7335 = vmatmul.mubr.bf16.gmra.mrb[232].mxu0 %v8247_v4  ;;  %v8253_v4 = vld [vmem:[%s10433_s3 + $0x634] ss:$12 sps:$4 sm:$0xff]  }
 0x2c0   :  { %3843 = vst [vmem:[#allocation2 + $0x28] sm:$0xff] %v3156_v8  ;;  %2918 = vmatprep.mubr.bf16.mxu1 %v8248_v53  ;;  %7338 = vmatprep.mubr.bf16.mxu0 %v8250_v31 }
 0x2c2   :  { %v9566_v20 = vpop.f32.mrb[80].mxu1  ;;  %v7232_v32 = vpop.f32.mrb[128].mxu0 }
 0x2c3   :  { %v3177_v41 = vadd.f32 %v7232_v32, %v9268_v56  ;;  %v2706_v5 = vpop.f32.mrb[81].mxu1  ;;  %v3168_v14 = vpop.f32.mrb[129].mxu0  ;;  %v8255_v56 = vld [vmem:[%s10433_s3 + $0x5a8] ss:$12 sps:$4 sm:$0xff]  }
 0x2c4   :  { %v3169_v45 = vadd.f32 %v3168_v14, %v9248_v44  ;;  %v9576_v33 = vpop.f32.mrb[82].mxu1  ;;  %v7233_v16 = vpop.f32.mrb[130].mxu0  ;;  %v8258_v14 = vld [vmem:[%s10433_s3 + $0x64c] ss:$12 sps:$4 sm:$0xff]  }
 0x2c5   :  { %3848 = vst [vmem:[#allocation2 + $0x50] sm:$0xff] %v3177_v41  ;;  %v3180_v0 = vadd.f32 %v7233_v16, %v9284_v3  ;;  %v2709_v24 = vpop.f32.mrb[83].mxu1  ;;  %v3171_v53 = vpop.f32.mrb[131].mxu0  ;;  %v8256_v3 = vld [vmem:[%s10433_s3 + $0x630] ss:$12 sps:$4 sm:$0xff]  }
 0x2c6   :  { %3846 = vst [vmem:[#allocation2 + $0x40] sm:$0xff] %v3169_v45  ;;  %v3172_v31 = vadd.f32 %v3171_v53, %v9264_v52  ;;  %v8257_v52 = vld [vmem:[%s10433_s3 + $0x5c0] ss:$12 sps:$4 sm:$0xff]  }
 0x2c7   :  { %3849 = vst [vmem:[#allocation2 + $0x58] sm:$0xff] %v3180_v0  ;;  %2919 = vmatmul.mubr.bf16.gmra.mrb[188].mxu1 %v8251_v40  ;;  %7339 = vmatmul.mubr.bf16.gmra.mrb[236].mxu0 %v8252_v28 }
 0x2c8   :  { %3847 = vst [vmem:[#allocation2 + $0x48] sm:$0xff] %v3172_v31  ;;  %2926 = vmatprep.mubr.bf16.mxu1 %v8253_v4  ;;  %7342 = vmatprep.mubr.bf16.mxu0 %v8255_v56 }
 0x2ca   :  { %v9586_v44 = vpop.f32.mrb[84].mxu1  ;;  %v7236_v17 = vpop.f32.mrb[132].mxu0 }
 0x2cb   :  { %v3193_v35 = vadd.f32 %v7236_v17, %v9308_v27  ;;  %v2714_v42 = vpop.f32.mrb[85].mxu1  ;;  %v3184_v8 = vpop.f32.mrb[133].mxu0  ;;  %v8260_v27 = vld [vmem:[%s10433_s3 + $0x5d8] ss:$12 sps:$4 sm:$0xff]  }
 0x2cc   :  { %v3185_v32 = vadd.f32 %v3184_v8, %v9288_v10  ;;  %v9596_v41 = vpop.f32.mrb[86].mxu1  ;;  %v7237_v5 = vpop.f32.mrb[134].mxu0 }
 0x2cd   :  { %3852 = vst [vmem:[#allocation2 + $0x70] sm:$0xff] %v3193_v35  ;;  %v3196_v40 = vadd.f32 %v7237_v5, %v9324_v39  ;;  %v2717_v28 = vpop.f32.mrb[87].mxu1  ;;  %v3187_v45 = vpop.f32.mrb[135].mxu0  ;;  %v8261_v39 = vld [vmem:[%s10433_s3 + $0x648] ss:$12 sps:$4 sm:$0xff]  }
 0x2ce   :  { %3850 = vst [vmem:[#allocation2 + $0x60] sm:$0xff] %v3185_v32  ;;  %v3188_v16 = vadd.f32 %v3187_v45, %v9304_v22  ;;  %v8262_v22 = vld [vmem:[%s10433_s3 + $0x5f0] ss:$12 sps:$4 sm:$0xff]  }
 0x2cf   :  { %3853 = vst [vmem:[#allocation2 + $0x78] sm:$0xff] %v3196_v40  ;;  %2927 = vmatmul.mubr.bf16.gmra.mrb[192].mxu1 %v8256_v3  ;;  %7343 = vmatmul.mubr.bf16.gmra.mrb[240].mxu0 %v8257_v52  ;;  %v8263_v35 = vld [vmem:[%s10433_s3 + $0x664] ss:$12 sps:$4 sm:$0xff]  }
 0x2d0   :  { %3851 = vst [vmem:[#allocation2 + $0x68] sm:$0xff] %v3188_v16  ;;  %2934 = vmatprep.mubr.bf16.mxu1 %v8258_v14  ;;  %7346 = vmatprep.mubr.bf16.mxu0 %v8260_v27  ;;  %v8268_v16 = vld [vmem:[%s10433_s3 + $0x67c] ss:$12 sps:$4 sm:$0xff]  }
 0x2d2   :  { %v9606_v10 = vpop.f32.mrb[88].mxu1  ;;  %v7240_v4 = vpop.f32.mrb[136].mxu0 }
 0x2d3   :  { %v3209_v56 = vadd.f32 %v7240_v4, %v9348_v2  ;;  %v2722_v0 = vpop.f32.mrb[89].mxu1  ;;  %v3200_v24 = vpop.f32.mrb[137].mxu0  ;;  %v8265_v2 = vld [vmem:[%s10433_s3 + $0x608] ss:$12 sps:$4 sm:$0xff]  }
 0x2d4   :  { %v3201_v53 = vadd.f32 %v3200_v24, %v9328_v46  ;;  %v9616_v31 = vpop.f32.mrb[90].mxu1  ;;  %v7241_v17 = vpop.f32.mrb[138].mxu0 }
 0x2d5   :  { %3856 = vst [vmem:[#allocation2 + $0x90] sm:$0xff] %v3209_v56  ;;  %v3212_v42 = vadd.f32 %v7241_v17, %v9364_v21  ;;  %v2725_v8 = vpop.f32.mrb[91].mxu1  ;;  %v3203_v3 = vpop.f32.mrb[139].mxu0  ;;  %v8266_v21 = vld [vmem:[%s10433_s3 + $0x660] ss:$12 sps:$4 sm:$0xff]  }
 0x2d6   :  { %3854 = vst [vmem:[#allocation2 + $0x80] sm:$0xff] %v3201_v53  ;;  %v3204_v52 = vadd.f32 %v3203_v3, %v9344_v58  ;;  %v8267_v58 = vld [vmem:[%s10433_s3 + $0x620] ss:$12 sps:$4 sm:$0xff]  }
 0x2d7   :  { %3857 = vst [vmem:[#allocation2 + $0x98] sm:$0xff] %v3212_v42  ;;  %2935 = vmatmul.mubr.bf16.gmra.mrb[196].mxu1 %v8261_v39  ;;  %7347 = vmatmul.mubr.bf16.gmra.mrb[244].mxu0 %v8262_v22  ;;  %v8273_v8 = vld [vmem:[%s10433_s3 + $0x694] ss:$12 sps:$4 sm:$0xff]  }
 0x2d8   :  { %3855 = vst [vmem:[#allocation2 + $0x88] sm:$0xff] %v3204_v52  ;;  %2942 = vmatprep.mubr.bf16.mxu1 %v8263_v35  ;;  %7350 = vmatprep.mubr.bf16.mxu0 %v8265_v2 }
 0x2da   :  { %v9626_v46 = vpop.f32.mrb[92].mxu1  ;;  %v7244_v32 = vpop.f32.mrb[140].mxu0 }
 0x2db   :  { %v3225_v5 = vadd.f32 %v7244_v32, %v9388_v57  ;;  %v2730_v14 = vpop.f32.mrb[93].mxu1  ;;  %v3216_v27 = vpop.f32.mrb[141].mxu0  ;;  %v8270_v57 = vld [vmem:[%s10433_s3 + $0x638] ss:$12 sps:$4 sm:$0xff]  }
 0x2dc   :  { %v3217_v40 = vadd.f32 %v3216_v27, %v9368_v29  ;;  %v9636_v28 = vpop.f32.mrb[94].mxu1  ;;  %v7245_v45 = vpop.f32.mrb[142].mxu0 }
 0x2dd   :  { %3860 = vst [vmem:[#allocation2 + $0xb0] sm:$0xff] %v3225_v5  ;;  %v3228_v4 = vadd.f32 %v7245_v45, %v9404_v18  ;;  %v2733_v56 = vpop.f32.mrb[95].mxu1  ;;  %v3219_v0 = vpop.f32.mrb[143].mxu0  ;;  %v8271_v18 = vld [vmem:[%s10433_s3 + $0x678] ss:$12 sps:$4 sm:$0xff]  }
 0x2de   :  { %3858 = vst [vmem:[#allocation2 + $0xa0] sm:$0xff] %v3217_v40  ;;  %v3220_v24 = vadd.f32 %v3219_v0, %v9384_v48  ;;  %v8272_v48 = vld [vmem:[%s10433_s3 + $0x650] ss:$12 sps:$4 sm:$0xff]  }
 0x2df   :  { %3861 = vst [vmem:[#allocation2 + $0xb8] sm:$0xff] %v3228_v4  ;;  %2943 = vmatmul.mubr.bf16.gmra.mrb[200].mxu1 %v8266_v21  ;;  %7351 = vmatmul.mubr.bf16.gmra.mrb[248].mxu0 %v8267_v58 }
 0x2e0   :  { %3859 = vst [vmem:[#allocation2 + $0xa8] sm:$0xff] %v3220_v24  ;;  %2950 = vmatprep.mubr.bf16.mxu1 %v8268_v16  ;;  %7354 = vmatprep.mubr.bf16.mxu0 %v8270_v57  ;;  %v8278_v57 = vld [vmem:[%s10433_s3 + $0x6ac] ss:$12 sps:$4 sm:$0xff]  }
 0x2e2   :  { %v9646_v29 = vpop.f32.mrb[96].mxu1  ;;  %v7248_v39 = vpop.f32.mrb[144].mxu0 }
 0x2e3   :  { %v3241_v22 = vadd.f32 %v7248_v39, %v9428_v15  ;;  %v2738_v53 = vpop.f32.mrb[97].mxu1  ;;  %v3232_v17 = vpop.f32.mrb[145].mxu0  ;;  %v8275_v15 = vld [vmem:[%s10433_s3 + $0x668] ss:$12 sps:$4 sm:$0xff]  }
 0x2e4   :  { %v3233_v35 = vadd.f32 %v3232_v17, %v9408_v34  ;;  %v9656_v2 = vpop.f32.mrb[98].mxu1  ;;  %v7249_v42 = vpop.f32.mrb[146].mxu0 }
 0x2e5   :  { %3864 = vst [vmem:[#allocation2 + $0xd0] sm:$0xff] %v3241_v22  ;;  %v3244_v3 = vadd.f32 %v7249_v42, %v9444_v51  ;;  %v2741_v52 = vpop.f32.mrb[99].mxu1  ;;  %v3235_v32 = vpop.f32.mrb[147].mxu0  ;;  %v8276_v51 = vld [vmem:[%s10433_s3 + $0x690] ss:$12 sps:$4 sm:$0xff]  }
 0x2e6   :  { %3862 = vst [vmem:[#allocation2 + $0xc0] sm:$0xff] %v3233_v35  ;;  %v3236_v5 = vadd.f32 %v3235_v32, %v9424_v62  ;;  %v8277_v62 = vld [vmem:[%s10433_s3 + $0x680] ss:$12 sps:$4 sm:$0xff]   ;;  %v8283_v42 = vld [vmem:[%s10433_s3 + $0x6c4] ss:$12 sps:$4 sm:$0xff]  }
 0x2e7   :  { %3865 = vst [vmem:[#allocation2 + $0xd8] sm:$0xff] %v3244_v3  ;;  %2951 = vmatmul.mubr.bf16.gmra.mrb[204].mxu1 %v8271_v18  ;;  %7355 = vmatmul.mubr.bf16.gmra.mrb[252].mxu0 %v8272_v48 }
 0x2e8   :  { %3863 = vst [vmem:[#allocation2 + $0xc8] sm:$0xff] %v3236_v5  ;;  %2958 = vmatprep.mubr.bf16.mxu1 %v8273_v8  ;;  %7358 = vmatprep.mubr.bf16.mxu0 %v8275_v15 }
 0x2ea   :  { %v9666_v34 = vpop.f32.mrb[100].mxu1  ;;  %v7252_v14 = vpop.f32.mrb[148].mxu0 }
 0x2eb   :  { %v3257_v27 = vadd.f32 %v7252_v14, %v9468_v12  ;;  %v2746_v21 = vpop.f32.mrb[101].mxu1  ;;  %v3248_v58 = vpop.f32.mrb[149].mxu0  ;;  %v8280_v12 = vld [vmem:[%s10433_s3 + $0x698] ss:$12 sps:$4 sm:$0xff]  }
 0x2ec   :  { %v3249_v40 = vadd.f32 %v3248_v58, %v9448_v47  ;;  %v9676_v45 = vpop.f32.mrb[102].mxu1  ;;  %v7253_v16 = vpop.f32.mrb[150].mxu0 }
 0x2ed   :  { %3868 = vst [vmem:[#allocation2 + $0xf0] sm:$0xff] %v3257_v27  ;;  %v3260_v4 = vadd.f32 %v7253_v16, %v9484_v61  ;;  %v2749_v56 = vpop.f32.mrb[103].mxu1  ;;  %v3251_v0 = vpop.f32.mrb[151].mxu0  ;;  %v8281_v61 = vld [vmem:[%s10433_s3 + $0x6a8] ss:$12 sps:$4 sm:$0xff]  }
 0x2ee   :  { %3866 = vst [vmem:[#allocation2 + $0xe0] sm:$0xff] %v3249_v40  ;;  %v3252_v24 = vadd.f32 %v3251_v0, %v9464_v50  ;;  %v8282_v50 = vld [vmem:[%s10433_s3 + $0x6b0] ss:$12 sps:$4 sm:$0xff]  }
 0x2ef   :  { %3869 = vst [vmem:[#allocation2 + $0xf8] sm:$0xff] %v3260_v4  ;;  %2959 = vmatmul.mubr.bf16.gmra.mrb[208].mxu1 %v8276_v51  ;;  %7359 = vmatmul.mubr.bf16.gmra.mrb[0].mxu0 %v8277_v62  ;;  %v8288_v62 = vld [vmem:[%s10433_s3 + $0x6dc] ss:$12 sps:$4 sm:$0xff]  }
 0x2f0   :  { %3867 = vst [vmem:[#allocation2 + $0xe8] sm:$0xff] %v3252_v24  ;;  %2966 = vmatprep.mubr.bf16.mxu1 %v8278_v57  ;;  %7362 = vmatprep.mubr.bf16.mxu0 %v8280_v12 }
 0x2f2   :  { %v9686_v47 = vpop.f32.mrb[104].mxu1  ;;  %v7256_v39 = vpop.f32.mrb[152].mxu0 }
 0x2f3   :  { %v3273_v22 = vadd.f32 %v7256_v39, %v9508_v54  ;;  %v2754_v53 = vpop.f32.mrb[105].mxu1  ;;  %v3264_v17 = vpop.f32.mrb[153].mxu0  ;;  %v8285_v54 = vld [vmem:[%s10433_s3 + $0x6c8] ss:$12 sps:$4 sm:$0xff]  }
 0x2f4   :  { %v3265_v18 = vadd.f32 %v3264_v17, %v9488_v11  ;;  %v9696_v48 = vpop.f32.mrb[106].mxu1  ;;  %v7257_v35 = vpop.f32.mrb[154].mxu0  ;;  %v8292_v17 = vld [vmem:[%s10433_s3 + $0x6f4] ss:$12 sps:$4 sm:$0xff]  }
 0x2f5   :  { %3872 = vst [vmem:[#allocation2 + $0x110] sm:$0xff] %v3273_v22  ;;  %v3276_v8 = vadd.f32 %v7257_v35, %v9518_v6  ;;  %v2757_v15 = vpop.f32.mrb[107].mxu1  ;;  %v3267_v3 = vpop.f32.mrb[155].mxu0  ;;  %v8286_v6 = vld [vmem:[%s10433_s3 + $0x6c0] ss:$12 sps:$4 sm:$0xff]  }
 0x2f6   :  { %3870 = vst [vmem:[#allocation2 + $0x100] sm:$0xff] %v3265_v18  ;;  %v3268_v52 = vadd.f32 %v3267_v3, %v9498_v23  ;;  %v8287_v23 = vld [vmem:[%s10433_s3 + $0x6e0] ss:$12 sps:$4 sm:$0xff]  }
 0x2f7   :  { %3873 = vst [vmem:[#allocation2 + $0x118] sm:$0xff] %v3276_v8  ;;  %2967 = vmatmul.mubr.bf16.gmra.mrb[212].mxu1 %v8281_v61  ;;  %7363 = vmatmul.mubr.bf16.gmra.mrb[4].mxu0 %v8282_v50 }
 0x2f8   :  { %3871 = vst [vmem:[#allocation2 + $0x108] sm:$0xff] %v3268_v52  ;;  %2974 = vmatprep.mubr.bf16.mxu1 %v8283_v42  ;;  %7366 = vmatprep.mubr.bf16.mxu0 %v8285_v54 }
 0x2fa   :  { %v9706_v11 = vpop.f32.mrb[108].mxu1  ;;  %v7260_v32 = vpop.f32.mrb[156].mxu0 }
 0x2fb   :  { %v3289_v5 = vadd.f32 %v7260_v32, %v9186_v7  ;;  %v2762_v14 = vpop.f32.mrb[109].mxu1  ;;  %v3280_v27 = vpop.f32.mrb[157].mxu0  ;;  %v8291_v7 = vld [vmem:[%s10433_s3 + $0x6f8] ss:$12 sps:$4 sm:$0xff]  }
 0x2fc   :  { %v3281_v21 = vadd.f32 %v3280_v27, %v9166_v59  ;;  %v9716_v58 = vpop.f32.mrb[110].mxu1  ;;  %v7261_v51 = vpop.f32.mrb[158].mxu0 }
 0x2fd   :  { %3876 = vst [vmem:[#allocation2 + $0x130] sm:$0xff] %v3289_v5  ;;  %v3292_v40 = vadd.f32 %v7261_v51, %v9196_v13  ;;  %v2765_v16 = vpop.f32.mrb[111].mxu1  ;;  %v3283_v57 = vpop.f32.mrb[159].mxu0  ;;  %v8290_v13 = vld [vmem:[%s10433_s3 + $0x6d8] ss:$12 sps:$4 sm:$0xff]  }
 0x2fe   :  { %3874 = vst [vmem:[#allocation2 + $0x120] sm:$0xff] %v3281_v21  ;;  %v3284_v12 = vadd.f32 %v3283_v57, %v9176_v1  ;;  %v8294_v1 = vld [vmem:[%s10433_s3 + $0x710] ss:$12 sps:$4 sm:$0xff]   ;;  %v8296_v5 = vld [vmem:[%s10433_s3 + $0x70c] ss:$12 sps:$4 sm:$0xff]  }
 0x2ff   :  { %3877 = vst [vmem:[#allocation2 + $0x138] sm:$0xff] %v3292_v40  ;;  %2975 = vmatmul.mubr.bf16.gmra.mrb[216].mxu1 %v8286_v6  ;;  %7367 = vmatmul.mubr.bf16.gmra.mrb[8].mxu0 %v8287_v23 }
 0x300   :  { %3875 = vst [vmem:[#allocation2 + $0x128] sm:$0xff] %v3284_v12  ;;  %2982 = vmatprep.mubr.bf16.mxu1 %v8288_v62  ;;  %7370 = vmatprep.mubr.bf16.mxu0 %v8291_v7  ;;  %v8300_v12 = vld [vmem:[%s10433_s3 + $0x724] ss:$12 sps:$4 sm:$0xff]  }
 0x302   :  { %v9726_v59 = vpop.f32.mrb[112].mxu1  ;;  %v7264_v4 = vpop.f32.mrb[160].mxu0 }
 0x303   :  { %v3305_v56 = vadd.f32 %v7264_v4, %v9226_v30  ;;  %v2770_v0 = vpop.f32.mrb[113].mxu1  ;;  %v3296_v24 = vpop.f32.mrb[161].mxu0  ;;  %v8299_v30 = vld [vmem:[%s10433_s3 + $0x728] ss:$12 sps:$4 sm:$0xff]  }
 0x304   :  { %v3297_v39 = vadd.f32 %v3296_v24, %v9206_v19  ;;  %v9736_v22 = vpop.f32.mrb[114].mxu1  ;;  %v7265_v53 = vpop.f32.mrb[162].mxu0  ;;  %v10465_v24 = vld [vmem:[#allocation7_spill] sm:$0xff] }
 0x305   :  { %3880 = vst [vmem:[#allocation2 + $0x150] sm:$0xff] %v3305_v56  ;;  %v3308_v61 = vadd.f32 %v7265_v53, %v9236_v37  ;;  %v2773_v50 = vpop.f32.mrb[115].mxu1  ;;  %v3299_v18 = vpop.f32.mrb[163].mxu0  ;;  %v8295_v37 = vld [vmem:[%s10433_s3 + $0x6f0] ss:$12 sps:$4 sm:$0xff]  }
 0x306   :  { %3878 = vst [vmem:[#allocation2 + $0x140] sm:$0xff] %v3297_v39  ;;  %v3300_v35 = vadd.f32 %v3299_v18, %v9216_v25  ;;  %v8302_v25 = vld [vmem:[%s10433_s3 + $0x740] ss:$12 sps:$4 sm:$0xff]   ;;  %v10466_v39 = vld [vmem:[#allocation10_spill] sm:$0xff] }
 0x307   :  { %3881 = vst [vmem:[#allocation2 + $0x158] sm:$0xff] %v3308_v61  ;;  %2983 = vmatmul.mubr.bf16.gmra.mrb[220].mxu1 %v8290_v13  ;;  %7371 = vmatmul.mubr.bf16.gmra.mrb[12].mxu0 %v8294_v1  ;;  %v8318_v61 = vld [vmem:[%s10433_s3 + $0x7a0] ss:$12 sps:$4 sm:$0xff]  }
 0x308   :  { %3879 = vst [vmem:[#allocation2 + $0x148] sm:$0xff] %v3300_v35  ;;  %2990 = vmatprep.mubr.bf16.mxu1 %v8292_v17  ;;  %7374 = vmatprep.mubr.bf16.mxu0 %v8299_v30  ;;  %v10467_v50 = vld [vmem:[#allocation8_spill] sm:$0xff] }
 0x30a   :  { %v9746_v19 = vpop.f32.mrb[116].mxu1  ;;  %v7268_v42 = vpop.f32.mrb[164].mxu0 }
 0x30b   :  { %v3321_v54 = vadd.f32 %v7268_v42, %v9266_v55  ;;  %v2778_v8 = vpop.f32.mrb[117].mxu1  ;;  %v3312_v15 = vpop.f32.mrb[165].mxu0  ;;  %v8307_v55 = vld [vmem:[%s10433_s3 + $0x758] ss:$12 sps:$4 sm:$0xff]  }
 0x30c   :  { %v3313_v3 = vadd.f32 %v3312_v15, %v9246_v43  ;;  %v9756_v52 = vpop.f32.mrb[118].mxu1  ;;  %v7269_v32 = vpop.f32.mrb[166].mxu0  ;;  %v8323_v8 = vld [vmem:[%s10433_s3 + $0x7b8] ss:$12 sps:$4 sm:$0xff]  }
 0x30d   :  { %3884 = vst [vmem:[#allocation2 + $0x170] sm:$0xff] %v3321_v54  ;;  %v3324_v14 = vadd.f32 %v7269_v32, %v9276_v63  ;;  %v2781_v27 = vpop.f32.mrb[119].mxu1  ;;  %v3315_v6 = vpop.f32.mrb[167].mxu0  ;;  %v8298_v63 = vld [vmem:[%s10433_s3 + $0x708] ss:$12 sps:$4 sm:$0xff]   ;;  %v10468_v15 = vld [vmem:[#allocation11_spill] sm:$0xff] }
 0x30e   :  { %3882 = vst [vmem:[#allocation2 + $0x160] sm:$0xff] %v3313_v3  ;;  %v3316_v23 = vadd.f32 %v3315_v6, %v9256_v49  ;;  %v8310_v49 = vld [vmem:[%s10433_s3 + $0x770] ss:$12 sps:$4 sm:$0xff]  }
 0x30f   :  { %3885 = vst [vmem:[#allocation2 + $0x178] sm:$0xff] %v3324_v14  ;;  %2991 = vmatmul.mubr.bf16.gmra.mrb[224].mxu1 %v8295_v37  ;;  %7375 = vmatmul.mubr.bf16.gmra.mrb[16].mxu0 %v8302_v25  ;;  %v8304_v54 = vld [vmem:[%s10433_s3 + $0x73c] ss:$12 sps:$4 sm:$0xff]   ;;  %v10469_v32 = vld [vmem:[#allocation9_spill] sm:$0xff] }
 0x310   :  { %3883 = vst [vmem:[#allocation2 + $0x168] sm:$0xff] %v3316_v23  ;;  %2998 = vmatprep.mubr.bf16.mxu1 %v8296_v5  ;;  %7378 = vmatprep.mubr.bf16.mxu0 %v8307_v55  ;;  %v10470_v27 = vld [vmem:[#allocation14_spill] sm:$0xff] }
 0x312   :  { %v9766_v43 = vpop.f32.mrb[120].mxu1  ;;  %v7272_v21 = vpop.f32.mrb[168].mxu0 }
 0x313   :  { %v3337_v51 = vadd.f32 %v7272_v21, %v9306_v26  ;;  %v2786_v62 = vpop.f32.mrb[121].mxu1  ;;  %v3328_v7 = vpop.f32.mrb[169].mxu0  ;;  %v8315_v26 = vld [vmem:[%s10433_s3 + $0x788] ss:$12 sps:$4 sm:$0xff]  }
 0x314   :  { %v3329_v40 = vadd.f32 %v3328_v7, %v9286_v9  ;;  %v9776_v16 = vpop.f32.mrb[122].mxu1  ;;  %v7273_v57 = vpop.f32.mrb[170].mxu0  ;;  %v8327_v62 = vld [vmem:[%s10433_s3 + $0x7d0] ss:$12 sps:$4 sm:$0xff]   ;;  %v10471_v7 = vld [vmem:[#allocation12_spill] sm:$0xff] }
 0x315   :  { %3888 = vst [vmem:[#allocation2 + $0x190] sm:$0xff] %v3337_v51  ;;  %v3340_v4 = vadd.f32 %v7273_v57, %v9316_v36  ;;  %v2789_v56 = vpop.f32.mrb[123].mxu1  ;;  %v3331_v0 = vpop.f32.mrb[171].mxu0  ;;  %v8303_v36 = vld [vmem:[%s10433_s3 + $0x720] ss:$12 sps:$4 sm:$0xff]  }
 0x316   :  { %3886 = vst [vmem:[#allocation2 + $0x180] sm:$0xff] %v3329_v40  ;;  %v3332_v13 = vadd.f32 %v3331_v0, %v10465_v24  ;;  %v8306_v51 = vld [vmem:[%s10433_s3 + $0x738] ss:$12 sps:$4 sm:$0xff]   ;;  %v8308_v57 = vld [vmem:[%s10433_s3 + $0x754] ss:$12 sps:$4 sm:$0xff]  }
 0x317   :  { %3889 = vst [vmem:[#allocation2 + $0x198] sm:$0xff] %v3340_v4  ;;  %2999 = vmatmul.mubr.bf16.gmra.mrb[228].mxu1 %v8298_v63  ;;  %7379 = vmatmul.mubr.bf16.gmra.mrb[20].mxu0 %v8310_v49  ;;  %v10473_v24 = vld [vmem:[#allocation13_spill] sm:$0xff] }
 0x318   :  { %3887 = vst [vmem:[#allocation2 + $0x188] sm:$0xff] %v3332_v13  ;;  %3006 = vmatprep.mubr.bf16.mxu1 %v8300_v12  ;;  %7382 = vmatprep.mubr.bf16.mxu0 %v8315_v26  ;;  %v8331_v12 = vld [vmem:[%s10433_s3 + $0x7e8] ss:$12 sps:$4 sm:$0xff]   ;;  %v10472_v26 = vld [vmem:[#allocation15_spill] sm:$0xff] }
 0x31a   :  { %v9786_v9 = vpop.f32.mrb[124].mxu1  ;;  %v7276_v1 = vpop.f32.mrb[172].mxu0 }
 0x31b   :  { %v3353_v53 = vadd.f32 %v7276_v1, %v10466_v39  ;;  %v2794_v17 = vpop.f32.mrb[125].mxu1  ;;  %v3344_v30 = vpop.f32.mrb[173].mxu0 }
 0x31c   :  { %v3345_v18 = vadd.f32 %v3344_v30, %v10467_v50  ;;  %v9796_v35 = vpop.f32.mrb[126].mxu1  ;;  %v7277_v42 = vpop.f32.mrb[174].mxu0  ;;  %v8335_v50 = vld [vmem:[%s10433_s3 + $0x800] ss:$12 sps:$4 sm:$0xff]  }
 0x31d   :  { %3892 = vst [vmem:[#allocation2 + $0x1b0] sm:$0xff] %v3353_v53  ;;  %v3356_v37 = vadd.f32 %v7277_v42, %v10468_v15  ;;  %v2797_v25 = vpop.f32.mrb[127].mxu1  ;;  %v3347_v3 = vpop.f32.mrb[175].mxu0  ;;  %v10474_v53 = vld [vmem:[#allocation18_spill] sm:$0xff] }
 0x31e   :  { %3890 = vst [vmem:[#allocation2 + $0x1a0] sm:$0xff] %v3345_v18  ;;  %v3348_v5 = vadd.f32 %v3347_v3, %v10469_v32  ;;  %v10475_v18 = vld [vmem:[#allocation16_spill] sm:$0xff]  ;;  %v10476_v25 = vld [vmem:[#allocation19_spill] sm:$0xff] }
 0x31f   :  { %3893 = vst [vmem:[#allocation2 + $0x1b8] sm:$0xff] %v3356_v37  ;;  %3007 = vmatmul.mubr.bf16.gmra.mrb[232].mxu1 %v8303_v36  ;;  %7383 = vmatmul.mubr.bf16.gmra.mrb[24].mxu0 %v8318_v61  ;;  %v8311_v61 = vld [vmem:[%s10433_s3 + $0x750] ss:$12 sps:$4 sm:$0xff]   ;;  %v8312_v15 = vld [vmem:[%s10433_s3 + $0x76c] ss:$12 sps:$4 sm:$0xff]  }
 0x320   :  { %3891 = vst [vmem:[#allocation2 + $0x1a8] sm:$0xff] %v3348_v5  ;;  %3014 = vmatprep.mubr.bf16.mxu1 %v8304_v54  ;;  %7386 = vmatprep.mubr.bf16.mxu0 %v8323_v8  ;;  %v8339_v37 = vld [vmem:[%s10433_s3 + $0x818] ss:$12 sps:$4 sm:$0xff]  }
 0x322   :  { %v9806_v55 = vpop.f32.mrb[128].mxu1  ;;  %v7280_v14 = vpop.f32.mrb[176].mxu0 }
 0x323   :  { %v3369_v6 = vadd.f32 %v7280_v14, %v10470_v27  ;;  %v2802_v23 = vpop.f32.mrb[129].mxu1  ;;  %v3360_v21 = vpop.f32.mrb[177].mxu0  ;;  %v10477_v14 = vld [vmem:[#allocation17_spill] sm:$0xff] }
 0x324   :  { %v3361_v63 = vadd.f32 %v3360_v21, %v10471_v7  ;;  %v9816_v49 = vpop.f32.mrb[130].mxu1  ;;  %v7281_v40 = vpop.f32.mrb[178].mxu0  ;;  %v10478_v21 = vld [vmem:[#allocation22_spill] sm:$0xff] }
 0x325   :  { %3896 = vst [vmem:[#allocation2 + $0x1d0] sm:$0xff] %v3369_v6  ;;  %v3372_v4 = vadd.f32 %v7281_v40, %v10472_v26  ;;  %v2805_v56 = vpop.f32.mrb[131].mxu1  ;;  %v3363_v0 = vpop.f32.mrb[179].mxu0  ;;  %v8343_v40 = vld [vmem:[%s10433_s3 + $0x830] ss:$0 sps:$4 sm:$0xff]  }
 0x326   :  { %3894 = vst [vmem:[#allocation2 + $0x1c0] sm:$0xff] %v3361_v63  ;;  %v3364_v13 = vadd.f32 %v3363_v0, %v10473_v24  ;;  %v8314_v63 = vld [vmem:[%s10433_s3 + $0x768] ss:$12 sps:$4 sm:$0xff]   ;;  %v8316_v56 = vld [vmem:[%s10433_s3 + $0x784] ss:$12 sps:$4 sm:$0xff]  }
 0x327   :  { %3897 = vst [vmem:[#allocation2 + $0x1d8] sm:$0xff] %v3372_v4  ;;  %3015 = vmatmul.mubr.bf16.gmra.mrb[236].mxu1 %v8306_v51  ;;  %7387 = vmatmul.mubr.bf16.gmra.mrb[28].mxu0 %v8327_v62  ;;  %v10480_v0 = vld [vmem:[#allocation23_spill] sm:$0xff] }
 0x328   :  { %3895 = vst [vmem:[#allocation2 + $0x1c8] sm:$0xff] %v3364_v13  ;;  %3022 = vmatprep.mubr.bf16.mxu1 %v8308_v57  ;;  %7390 = vmatprep.mubr.bf16.mxu0 %v8331_v12  ;;  %v10479_v57 = vld [vmem:[#allocation20_spill] sm:$0xff] }
 0x32a   :  { %v9826_v1 = vpop.f32.mrb[132].mxu1  ;;  %v7284_v39 = vpop.f32.mrb[180].mxu0 }
 0x32b   :  { %v3385_v17 = vadd.f32 %v7284_v39, %v10474_v53  ;;  %v2810_v30 = vpop.f32.mrb[133].mxu1  ;;  %v3376_v36 = vpop.f32.mrb[181].mxu0  ;;  %v10481_v53 = vld [vmem:[#allocation21_spill] sm:$0xff] }
 0x32c   :  { %v3377_v42 = vadd.f32 %v3376_v36, %v10475_v18  ;;  %v9836_v54 = vpop.f32.mrb[134].mxu1  ;;  %v7285_v8 = vpop.f32.mrb[182].mxu0 }
 0x32d   :  { %3900 = vst [vmem:[#allocation2 + $0x1f0] sm:$0xff] %v3385_v17  ;;  %v3388_v3 = vadd.f32 %v7285_v8, %v10476_v25  ;;  %v2813_v32 = vpop.f32.mrb[135].mxu1  ;;  %v3379_v5 = vpop.f32.mrb[183].mxu0  ;;  %v8319_v8 = vld [vmem:[%s10433_s3 + $0x780] ss:$12 sps:$4 sm:$0xff]  }
 0x32e   :  { %3898 = vst [vmem:[#allocation2 + $0x1e0] sm:$0xff] %v3377_v42  ;;  %v3380_v27 = vadd.f32 %v3379_v5, %v10477_v14  ;;  %v8320_v32 = vld [vmem:[%s10433_s3 + $0x79c] ss:$12 sps:$4 sm:$0xff]   ;;  %v10484_v5 = vld [vmem:[#allocation27_spill] sm:$0xff] }
 0x32f   :  { %3901 = vst [vmem:[#allocation2 + $0x1f8] sm:$0xff] %v3388_v3  ;;  %3023 = vmatmul.mubr.bf16.gmra.mrb[240].mxu1 %v8311_v61  ;;  %7391 = vmatmul.mubr.bf16.gmra.mrb[32].mxu0 %v8335_v50  ;;  %v10482_v61 = vld [vmem:[#allocation26_spill] sm:$0xff] }
 0x330   :  { %3899 = vst [vmem:[#allocation2 + $0x1e8] sm:$0xff] %v3380_v27  ;;  %3030 = vmatprep.mubr.bf16.mxu1 %v8312_v15  ;;  %7394 = vmatprep.mubr.bf16.mxu0 %v8339_v37  ;;  %v10483_v15 = vld [vmem:[#allocation24_spill] sm:$0xff] }
 0x332   :  { %v9846_v6 = vpop.f32.mrb[136].mxu1  ;;  %v7288_v23 = vpop.f32.mrb[184].mxu0 }
 0x333   :  { %v3401_v51 = vadd.f32 %v7288_v23, %v10478_v21  ;;  %v2818_v62 = vpop.f32.mrb[137].mxu1  ;;  %v3392_v7 = vpop.f32.mrb[185].mxu0  ;;  %v10485_v21 = vld [vmem:[#allocation25_spill] sm:$0xff] }
 0x334   :  { %v3393_v12 = vadd.f32 %v3392_v7, %v10479_v57  ;;  %v9856_v26 = vpop.f32.mrb[138].mxu1  ;;  %v7289_v4 = vpop.f32.mrb[186].mxu0 }
 0x335   :  { %3904 = vst [vmem:[#allocation2 + $0x210] sm:$0xff] %v3401_v51  ;;  %v3404_v24 = vadd.f32 %v7289_v4, %v10480_v0  ;;  %v2821_v13 = vpop.f32.mrb[139].mxu1  ;;  %v3395_v39 = vpop.f32.mrb[187].mxu0  ;;  %v10486_v4 = vld [vmem:[#allocation28_spill] sm:$0xff] }
 0x336   :  { %3902 = vst [vmem:[#allocation2 + $0x200] sm:$0xff] %v3393_v12  ;;  %v3396_v17 = vadd.f32 %v3395_v39, %v10481_v53  ;;  %v8322_v12 = vld [vmem:[%s10433_s3 + $0x798] ss:$12 sps:$4 sm:$0xff]   ;;  %v8326_v13 = vld [vmem:[%s10433_s3 + $0x7b4] ss:$12 sps:$4 sm:$0xff]  }
 0x337   :  { %3905 = vst [vmem:[#allocation2 + $0x218] sm:$0xff] %v3404_v24  ;;  %3031 = vmatmul.mubr.bf16.gmra.mrb[244].mxu1 %v8314_v63  ;;  %7395 = vmatmul.mubr.bf16.gmra.mrb[36].mxu0 %v8343_v40 }
 0x338   :  { %3903 = vst [vmem:[#allocation2 + $0x208] sm:$0xff] %v3396_v17  ;;  %3038 = vmatprep.mubr.bf16.mxu1 %v8316_v56  ;;  %v10487_v17 = vld [vmem:[#allocation29_spill] sm:$0xff] }
 0x33a   :  { %v9863_v30 = vpop.f32.mrb[140].mxu1  ;;  %v7292_v36 = vpop.f32.mrb[188].mxu0 }
 0x33b   :  { %v3417_v50 = vadd.f32 %v7292_v36, %v10482_v61  ;;  %v2826_v18 = vpop.f32.mrb[141].mxu1  ;;  %v3408_v42 = vpop.f32.mrb[189].mxu0 }
 0x33c   :  { %v3409_v37 = vadd.f32 %v3408_v42, %v10483_v15  ;;  %v9870_v25 = vpop.f32.mrb[142].mxu1  ;;  %v7293_v3 = vpop.f32.mrb[190].mxu0 }
 0x33d   :  { %3908 = vst [vmem:[#allocation2 + $0x230] sm:$0xff] %v3417_v50  ;;  %v3420_v14 = vadd.f32 %v7293_v3, %v10484_v5  ;;  %v2829_v27 = vpop.f32.mrb[143].mxu1  ;;  %v3411_v23 = vpop.f32.mrb[191].mxu0 }
 0x33e   :  { %3906 = vst [vmem:[#allocation2 + $0x220] sm:$0xff] %v3409_v37  ;;  %v3412_v51 = vadd.f32 %v3411_v23, %v10485_v21 }
 0x33f   :  { %3909 = vst [vmem:[#allocation2 + $0x238] sm:$0xff] %v3420_v14  ;;  %3039 = vmatmul.mubr.bf16.gmra.mrb[248].mxu1 %v8319_v8 }
 0x340   :  { %3907 = vst [vmem:[#allocation2 + $0x228] sm:$0xff] %v3412_v51  ;;  %3046 = vmatprep.mubr.bf16.mxu1 %v8320_v32  ;;  %v8330_v32 = vld [vmem:[%s10433_s3 + $0x7cc] ss:$12 sps:$4 sm:$0xff]  }
 0x342   :  { %v9877_v62 = vpop.f32.mrb[144].mxu1  ;;  %v7296_v7 = vpop.f32.mrb[192].mxu0 }
 0x343   :  { %v3433_v63 = vadd.f32 %v7296_v7, %v9546_v60  ;;  %v2834_v40 = vpop.f32.mrb[145].mxu1  ;;  %v3424_v57 = vpop.f32.mrb[193].mxu0 }
 0x344   :  { %v3425_v56 = vadd.f32 %v3424_v57, %v10486_v4  ;;  %v9884_v0 = vpop.f32.mrb[146].mxu1  ;;  %v7297_v24 = vpop.f32.mrb[194].mxu0  ;;  %v8334_v57 = vld [vmem:[%s10433_s3 + $0x7e4] ss:$12 sps:$4 sm:$0xff]  }
 0x345   :  { %3912 = vst [vmem:[#allocation2 + $0x250] sm:$0xff] %v3433_v63  ;;  %v3436_v39 = vadd.f32 %v7297_v24, %v9556_v38  ;;  %v2837_v53 = vpop.f32.mrb[147].mxu1  ;;  %v3427_v60 = vpop.f32.mrb[195].mxu0  ;;  %v8324_v38 = vld [vmem:[%s10433_s3 + $0x7b0] ss:$12 sps:$4 sm:$0xff]  }
 0x346   :  { %3910 = vst [vmem:[#allocation2 + $0x240] sm:$0xff] %v3425_v56  ;;  %v3428_v36 = vadd.f32 %v3427_v60, %v10487_v17 }
 0x347   :  { %3913 = vst [vmem:[#allocation2 + $0x258] sm:$0xff] %v3436_v39  ;;  %3047 = vmatmul.mubr.bf16.gmra.mrb[252].mxu1 %v8322_v12 }
 0x348   :  { %3911 = vst [vmem:[#allocation2 + $0x248] sm:$0xff] %v3428_v36  ;;  %3054 = vmatprep.mubr.bf16.mxu1 %v8326_v13  ;;  %v8338_v36 = vld [vmem:[%s10433_s3 + $0x7fc] ss:$12 sps:$4 sm:$0xff]  }
 0x34a   :  { %v9891_v61 = vpop.f32.mrb[148].mxu1  ;;  %v7300_v50 = vpop.f32.mrb[196].mxu0 }
 0x34b   :  { %v3449_v18 = vadd.f32 %v7300_v50, %v9586_v44  ;;  %v2842_v42 = vpop.f32.mrb[149].mxu1  ;;  %v3440_v8 = vpop.f32.mrb[197].mxu0 }
 0x34c   :  { %v3441_v15 = vadd.f32 %v3440_v8, %v9566_v20  ;;  %v9898_v37 = vpop.f32.mrb[150].mxu1  ;;  %v7301_v3 = vpop.f32.mrb[198].mxu0 }
 0x34d   :  { %3916 = vst [vmem:[#allocation2 + $0x270] sm:$0xff] %v3449_v18  ;;  %v3452_v5 = vadd.f32 %v7301_v3, %v9596_v41  ;;  %v2845_v14 = vpop.f32.mrb[151].mxu1  ;;  %v3443_v44 = vpop.f32.mrb[199].mxu0  ;;  %v8328_v41 = vld [vmem:[%s10433_s3 + $0x7c8] ss:$12 sps:$4 sm:$0xff]  }
 0x34e   :  { %3914 = vst [vmem:[#allocation2 + $0x260] sm:$0xff] %v3441_v15  ;;  %v3444_v27 = vadd.f32 %v3443_v44, %v9576_v33  ;;  %v8342_v14 = vld [vmem:[%s10433_s3 + $0x814] ss:$12 sps:$4 sm:$0xff]  }
 0x34f   :  { %3917 = vst [vmem:[#allocation2 + $0x278] sm:$0xff] %v3452_v5  ;;  %3055 = vmatmul.mubr.bf16.gmra.mrb[0].mxu1 %v8324_v38 }
 0x350   :  { %3915 = vst [vmem:[#allocation2 + $0x268] sm:$0xff] %v3444_v27  ;;  %3062 = vmatprep.mubr.bf16.mxu1 %v8330_v32 }
 0x352   :  { %v9905_v20 = vpop.f32.mrb[152].mxu1  ;;  %v7304_v23 = vpop.f32.mrb[200].mxu0 }
 0x353   :  { %v3465_v21 = vadd.f32 %v7304_v23, %v9626_v46  ;;  %v2850_v51 = vpop.f32.mrb[153].mxu1  ;;  %v3456_v7 = vpop.f32.mrb[201].mxu0 }
 0x354   :  { %v3457_v63 = vadd.f32 %v3456_v7, %v9606_v10  ;;  %v9912_v40 = vpop.f32.mrb[154].mxu1  ;;  %v7305_v33 = vpop.f32.mrb[202].mxu0 }
 0x355   :  { %3920 = vst [vmem:[#allocation2 + $0x290] sm:$0xff] %v3465_v21  ;;  %v3468_v12 = vadd.f32 %v7305_v33, %v9636_v28  ;;  %v2853_v4 = vpop.f32.mrb[155].mxu1  ;;  %v3459_v46 = vpop.f32.mrb[203].mxu0  ;;  %v8332_v28 = vld [vmem:[%s10433_s3 + $0x7e0] ss:$12 sps:$4 sm:$0xff]  }
 0x356   :  { %3918 = vst [vmem:[#allocation2 + $0x280] sm:$0xff] %v3457_v63  ;;  %v3460_v56 = vadd.f32 %v3459_v46, %v9616_v31  ;;  %v8340_v63 = vld [vmem:[%s10433_s3 + $0x810] ss:$12 sps:$4 sm:$0xff]  }
 0x357   :  { %3921 = vst [vmem:[#allocation2 + $0x298] sm:$0xff] %v3468_v12  ;;  %3063 = vmatmul.mubr.bf16.gmra.mrb[4].mxu1 %v8328_v41 }
 0x358   :  { %3919 = vst [vmem:[#allocation2 + $0x288] sm:$0xff] %v3460_v56  ;;  %3070 = vmatprep.mubr.bf16.mxu1 %v8334_v57 }
 0x35a   :  { %v9919_v10 = vpop.f32.mrb[156].mxu1  ;;  %v7308_v24 = vpop.f32.mrb[204].mxu0 }
 0x35b   :  { %v3481_v13 = vadd.f32 %v7308_v24, %v9666_v34  ;;  %v2858_v39 = vpop.f32.mrb[157].mxu1  ;;  %v3472_v53 = vpop.f32.mrb[205].mxu0 }
 0x35c   :  { %v3473_v60 = vadd.f32 %v3472_v53, %v9646_v29  ;;  %v9926_v17 = vpop.f32.mrb[158].mxu1  ;;  %v7309_v31 = vpop.f32.mrb[206].mxu0 }
 0x35d   :  { %3924 = vst [vmem:[#allocation2 + $0x2b0] sm:$0xff] %v3481_v13  ;;  %v3484_v50 = vadd.f32 %v7309_v31, %v9676_v45  ;;  %v2861_v18 = vpop.f32.mrb[159].mxu1  ;;  %v3475_v34 = vpop.f32.mrb[207].mxu0  ;;  %v8336_v45 = vld [vmem:[%s10433_s3 + $0x7f8] ss:$12 sps:$4 sm:$0xff]  }
 0x35e   :  { %3922 = vst [vmem:[#allocation2 + $0x2a0] sm:$0xff] %v3473_v60  ;;  %v3476_v42 = vadd.f32 %v3475_v34, %v9656_v2 }
 0x35f   :  { %3925 = vst [vmem:[#allocation2 + $0x2b8] sm:$0xff] %v3484_v50  ;;  %3071 = vmatmul.mubr.bf16.gmra.mrb[8].mxu1 %v8332_v28 }
 0x360   :  { %3923 = vst [vmem:[#allocation2 + $0x2a8] sm:$0xff] %v3476_v42  ;;  %3078 = vmatprep.mubr.bf16.mxu1 %v8338_v36 }
 0x362   :  { %v9933_v29 = vpop.f32.mrb[160].mxu1  ;;  %v7312_v8 = vpop.f32.mrb[208].mxu0 }
 0x363   :  { %v3497_v38 = vadd.f32 %v7312_v8, %v9706_v11  ;;  %v2866_v15 = vpop.f32.mrb[161].mxu1  ;;  %v3488_v3 = vpop.f32.mrb[209].mxu0 }
 0x364   :  { %v3489_v32 = vadd.f32 %v3488_v3, %v9686_v47  ;;  %v9940_v5 = vpop.f32.mrb[162].mxu1  ;;  %v7313_v2 = vpop.f32.mrb[210].mxu0  ;;  %v961_v47 = vld [vmem:[%s10433_s3 + $0x828] sm:$0xff]  ;;  %s10038_s3 = smov 0  }
 0x365   :  { %3928 = vst [vmem:[#allocation2 + $0x2d0] sm:$0xff] %v3497_v38  ;;  %v3500_v44 = vadd.f32 %v7313_v2, %v9716_v58  ;;  %v2869_v27 = vpop.f32.mrb[163].mxu1  ;;  %v3491_v11 = vpop.f32.mrb[211].mxu0  ;;  %v6532_v12 = vcombine.high %v961_v47, %v961_v47  ;;  %v6531_v28 = vcombine.low %v961_v47, %v961_v47 }
 0x366   :  { %3926 = vst [vmem:[#allocation2 + $0x2c0] sm:$0xff] %v3489_v32  ;;  %v3492_v23 = vadd.f32 %v3491_v11, %v9696_v48 }
 0x367   :  { %3929 = vst [vmem:[#allocation2 + $0x2d8] sm:$0xff] %v3500_v44  ;;  %3079 = vmatmul.mubr.bf16.gmra.mrb[12].mxu1 %v8336_v45 }
 0x368   :  { %3927 = vst [vmem:[#allocation2 + $0x2c8] sm:$0xff] %v3492_v23  ;;  %3086 = vmatprep.mubr.bf16.mxu1 %v8342_v14 }
 0x36a   :  { %v9950_v21 = vpop.f32.mrb[164].mxu1  ;;  %v7316_v51 = vpop.f32.mrb[212].mxu0 }
 0x36b   :  { %v3513_v7 = vadd.f32 %v7316_v51, %v9746_v19  ;;  %v2874_v41 = vpop.f32.mrb[165].mxu1  ;;  %v3504_v58 = vpop.f32.mrb[213].mxu0 }
 0x36c   :  { %v3505_v48 = vadd.f32 %v3504_v58, %v9726_v59  ;;  %v9957_v33 = vpop.f32.mrb[166].mxu1  ;;  %v7317_v57 = vpop.f32.mrb[214].mxu0 }
 0x36d   :  { %3932 = vst [vmem:[#allocation2 + $0x2f0] sm:$0xff] %v3513_v7  ;;  %v3516_v4 = vadd.f32 %v7317_v57, %v9756_v52  ;;  %v2877_v46 = vpop.f32.mrb[167].mxu1  ;;  %v3507_v56 = vpop.f32.mrb[215].mxu0 }
 0x36e   :  { %3930 = vst [vmem:[#allocation2 + $0x2e0] sm:$0xff] %v3505_v48  ;;  %v3508_v19 = vadd.f32 %v3507_v56, %v9736_v22 }
 0x36f   :  { %3933 = vst [vmem:[#allocation2 + $0x2f8] sm:$0xff] %v3516_v4  ;;  %3087 = vmatmul.mubr.bf16.gmra.mrb[16].mxu1 %v8340_v63 }
 0x370   :  { %3931 = vst [vmem:[#allocation2 + $0x2e8] sm:$0xff] %v3508_v19  ;;  %3094 = vmatprep.mubr.bf16.mxu1 %v6532_v12 }
 0x372   :  { %v9961_v24 = vpop.f32.mrb[168].mxu1  ;;  %v7320_v13 = vpop.f32.mrb[216].mxu0 }
 0x373   :  { %v3529_v59 = vadd.f32 %v7320_v13, %v9786_v9  ;;  %v2882_v39 = vpop.f32.mrb[169].mxu1  ;;  %v3520_v53 = vpop.f32.mrb[217].mxu0 }
 0x374   :  { %v3521_v60 = vadd.f32 %v3520_v53, %v9766_v43  ;;  %v9965_v52 = vpop.f32.mrb[170].mxu1  ;;  %v7321_v31 = vpop.f32.mrb[218].mxu0 }
 0x375   :  { %3936 = vst [vmem:[#allocation2 + $0x310] sm:$0xff] %v3529_v59  ;;  %v3532_v22 = vadd.f32 %v7321_v31, %v9796_v35  ;;  %v2885_v36 = vpop.f32.mrb[171].mxu1  ;;  %v3523_v50 = vpop.f32.mrb[219].mxu0 }
 0x376   :  { %3934 = vst [vmem:[#allocation2 + $0x300] sm:$0xff] %v3521_v60  ;;  %v3524_v18 = vadd.f32 %v3523_v50, %v9776_v16 }
 0x377   :  { %3937 = vst [vmem:[#allocation2 + $0x318] sm:$0xff] %v3532_v22  ;;  %3095 = vmatmul.mubr.bf16.gmra.mrb[20].mxu1 %v6531_v28 }
 0x378   :  { %3935 = vst [vmem:[#allocation2 + $0x308] sm:$0xff] %v3524_v18 }
 0x37a   :  { %v9969_v9 = vpop.f32.mrb[172].mxu1  ;;  %v7324_v34 = vpop.f32.mrb[220].mxu0 }
 0x37b   :  { %v3545_v42 = vadd.f32 %v7324_v34, %v9826_v1  ;;  %v2890_v43 = vpop.f32.mrb[173].mxu1  ;;  %v3536_v8 = vpop.f32.mrb[221].mxu0 }
 0x37c   :  { %v3537_v38 = vadd.f32 %v3536_v8, %v9806_v55  ;;  %v9973_v15 = vpop.f32.mrb[174].mxu1  ;;  %v7325_v35 = vpop.f32.mrb[222].mxu0 }
 0x37d   :  { %3940 = vst [vmem:[#allocation2 + $0x330] sm:$0xff] %v3545_v42  ;;  %v3548_v3 = vadd.f32 %v7325_v35, %v9836_v54  ;;  %v2893_v45 = vpop.f32.mrb[175].mxu1  ;;  %v3539_v16 = vpop.f32.mrb[223].mxu0 }
 0x37e   :  { %3938 = vst [vmem:[#allocation2 + $0x320] sm:$0xff] %v3537_v38  ;;  %v3540_v32 = vadd.f32 %v3539_v16, %v9816_v49 }
 0x37f   :  { %3941 = vst [vmem:[#allocation2 + $0x338] sm:$0xff] %v3548_v3 }
 0x380   :  { %3939 = vst [vmem:[#allocation2 + $0x328] sm:$0xff] %v3540_v32 }
 0x382   :  { %v9977_v2 = vpop.f32.mrb[176].mxu1  ;;  %v7328_v1 = vpop.f32.mrb[224].mxu0 }
 0x383   :  { %v3561_v14 = vadd.f32 %v7328_v1, %v9863_v30  ;;  %v2898_v44 = vpop.f32.mrb[177].mxu1  ;;  %v3552_v55 = vpop.f32.mrb[225].mxu0 }
 0x384   :  { %v3553_v27 = vadd.f32 %v3552_v55, %v9846_v6  ;;  %v9981_v11 = vpop.f32.mrb[178].mxu1  ;;  %v7329_v23 = vpop.f32.mrb[226].mxu0 }
 0x385   :  { %3944 = vst [vmem:[#allocation2 + $0x350] sm:$0xff] %v3561_v14  ;;  %v3564_v54 = vadd.f32 %v7329_v23, %v9870_v25  ;;  %v2901_v47 = vpop.f32.mrb[179].mxu1  ;;  %v3555_v51 = vpop.f32.mrb[227].mxu0 }
 0x386   :  { %3942 = vst [vmem:[#allocation2 + $0x340] sm:$0xff] %v3553_v27  ;;  %v3556_v49 = vadd.f32 %v3555_v51, %v9856_v26 }
 0x387   :  { %3945 = vst [vmem:[#allocation2 + $0x358] sm:$0xff] %v3564_v54 }
 0x388   :  { %3943 = vst [vmem:[#allocation2 + $0x348] sm:$0xff] %v3556_v49 }
 0x38a   :  { %v9985_v7 = vpop.f32.mrb[180].mxu1  ;;  %v7332_v30 = vpop.f32.mrb[228].mxu0 }
 0x38b   :  { %v3577_v41 = vadd.f32 %v7332_v30, %v9891_v61  ;;  %v2906_v58 = vpop.f32.mrb[181].mxu1  ;;  %v3568_v6 = vpop.f32.mrb[229].mxu0 }
 0x38c   :  { %v3569_v63 = vadd.f32 %v3568_v6, %v9877_v62  ;;  %v9989_v48 = vpop.f32.mrb[182].mxu1  ;;  %v7333_v57 = vpop.f32.mrb[230].mxu0 }
 0x38d   :  { %3948 = vst [vmem:[#allocation2 + $0x370] sm:$0xff] %v3577_v41  ;;  %v3580_v25 = vadd.f32 %v7333_v57, %v9898_v37  ;;  %v2909_v12 = vpop.f32.mrb[183].mxu1  ;;  %v3571_v4 = vpop.f32.mrb[231].mxu0 }
 0x38e   :  { %3946 = vst [vmem:[#allocation2 + $0x360] sm:$0xff] %v3569_v63  ;;  %v3572_v26 = vadd.f32 %v3571_v4, %v9884_v0 }
 0x38f   :  { %3949 = vst [vmem:[#allocation2 + $0x378] sm:$0xff] %v3580_v25 }
 0x390   :  { %3947 = vst [vmem:[#allocation2 + $0x368] sm:$0xff] %v3572_v26 }
 0x392   :  { %v9993_v46 = vpop.f32.mrb[184].mxu1  ;;  %v7336_v61 = vpop.f32.mrb[232].mxu0 }
 0x393   :  { %v3593_v56 = vadd.f32 %v7336_v61, %v9919_v10  ;;  %v2914_v19 = vpop.f32.mrb[185].mxu1  ;;  %v3584_v62 = vpop.f32.mrb[233].mxu0 }
 0x394   :  { %v3585_v13 = vadd.f32 %v3584_v62, %v9905_v20  ;;  %v9997_v59 = vpop.f32.mrb[186].mxu1  ;;  %v7337_v39 = vpop.f32.mrb[234].mxu0 }
 0x395   :  { %3952 = vst [vmem:[#allocation2 + $0x390] sm:$0xff] %v3593_v56  ;;  %v3596_v37 = vadd.f32 %v7337_v39, %v9926_v17  ;;  %v2917_v53 = vpop.f32.mrb[187].mxu1  ;;  %v3587_v28 = vpop.f32.mrb[235].mxu0 }
 0x396   :  { %3950 = vst [vmem:[#allocation2 + $0x380] sm:$0xff] %v3585_v13  ;;  %v3588_v0 = vadd.f32 %v3587_v28, %v9912_v40 }
 0x397   :  { %3953 = vst [vmem:[#allocation2 + $0x398] sm:$0xff] %v3596_v37 }
 0x398   :  { %3951 = vst [vmem:[#allocation2 + $0x388] sm:$0xff] %v3588_v0 }
 0x39a   :  { %v2920_v60 = vpop.f32.mrb[188].mxu1  ;;  %v7340_v31 = vpop.f32.mrb[236].mxu0 }
 0x39b   :  { %v3609_v10 = vadd.f32 %v7340_v31, %v9950_v21  ;;  %v2922_v22 = vpop.f32.mrb[189].mxu1  ;;  %v3600_v36 = vpop.f32.mrb[237].mxu0 }
 0x39c   :  { %v3601_v20 = vadd.f32 %v3600_v36, %v9933_v29  ;;  %v2923_v50 = vpop.f32.mrb[190].mxu1  ;;  %v7341_v18 = vpop.f32.mrb[238].mxu0 }
 0x39d   :  { %3956 = vst [vmem:[#allocation2 + $0x3b0] sm:$0xff] %v3609_v10  ;;  %v3612_v17 = vadd.f32 %v7341_v18, %v9957_v33  ;;  %v2925_v34 = vpop.f32.mrb[191].mxu1  ;;  %v3603_v42 = vpop.f32.mrb[239].mxu0 }
 0x39e   :  { %3954 = vst [vmem:[#allocation2 + $0x3a0] sm:$0xff] %v3601_v20  ;;  %v3604_v40 = vadd.f32 %v3603_v42, %v9940_v5 }
 0x39f   :  { %3957 = vst [vmem:[#allocation2 + $0x3b8] sm:$0xff] %v3612_v17 }
 0x3a0   :  { %3955 = vst [vmem:[#allocation2 + $0x3a8] sm:$0xff] %v3604_v40 }
 0x3a2   :  { %v2928_v43 = vpop.f32.mrb[192].mxu1  ;;  %v7344_v8 = vpop.f32.mrb[240].mxu0 }
 0x3a3   :  { %v3625_v21 = vadd.f32 %v7344_v8, %v9969_v9  ;;  %v2930_v38 = vpop.f32.mrb[193].mxu1  ;;  %v3616_v35 = vpop.f32.mrb[241].mxu0 }
 0x3a4   :  { %v3617_v29 = vadd.f32 %v3616_v35, %v9961_v24  ;;  %v2931_v3 = vpop.f32.mrb[194].mxu1  ;;  %v7345_v45 = vpop.f32.mrb[242].mxu0 }
 0x3a5   :  { %3960 = vst [vmem:[#allocation2 + $0x3d0] sm:$0xff] %v3625_v21  ;;  %v3628_v33 = vadd.f32 %v7345_v45, %v9973_v15  ;;  %v2933_v16 = vpop.f32.mrb[195].mxu1  ;;  %v3619_v32 = vpop.f32.mrb[243].mxu0 }
 0x3a6   :  { %3958 = vst [vmem:[#allocation2 + $0x3c0] sm:$0xff] %v3617_v29  ;;  %v3620_v5 = vadd.f32 %v3619_v32, %v9965_v52 }
 0x3a7   :  { %3961 = vst [vmem:[#allocation2 + $0x3d8] sm:$0xff] %v3628_v33 }
 0x3a8   :  { %3959 = vst [vmem:[#allocation2 + $0x3c8] sm:$0xff] %v3620_v5 }
 0x3aa   :  { %v2936_v1 = vpop.f32.mrb[196].mxu1  ;;  %v7348_v14 = vpop.f32.mrb[244].mxu0 }
 0x3ab   :  { %v3641_v9 = vadd.f32 %v7348_v14, %v9985_v7  ;;  %v2938_v44 = vpop.f32.mrb[197].mxu1  ;;  %v3632_v55 = vpop.f32.mrb[245].mxu0 }
 0x3ac   :  { %v3633_v24 = vadd.f32 %v3632_v55, %v9977_v2  ;;  %v2939_v27 = vpop.f32.mrb[198].mxu1  ;;  %v7349_v23 = vpop.f32.mrb[246].mxu0 }
 0x3ad   :  { %3964 = vst [vmem:[#allocation2 + $0x3f0] sm:$0xff] %v3641_v9  ;;  %v3644_v15 = vadd.f32 %v7349_v23, %v9989_v48  ;;  %v2941_v54 = vpop.f32.mrb[199].mxu1  ;;  %v3635_v47 = vpop.f32.mrb[247].mxu0 }
 0x3ae   :  { %3962 = vst [vmem:[#allocation2 + $0x3e0] sm:$0xff] %v3633_v24  ;;  %v3636_v52 = vadd.f32 %v3635_v47, %v9981_v11 }
 0x3af   :  { %3965 = vst [vmem:[#allocation2 + $0x3f8] sm:$0xff] %v3644_v15 }
 0x3b0   :  { %3963 = vst [vmem:[#allocation2 + $0x3e8] sm:$0xff] %v3636_v52 }
 0x3b2   :  { %v2944_v51 = vpop.f32.mrb[200].mxu1  ;;  %v7352_v49 = vpop.f32.mrb[248].mxu0 }
 0x3b3   :  { %v3657_v30 = vadd.f32 %v7352_v49, %v2920_v60  ;;  %v2946_v7 = vpop.f32.mrb[201].mxu1  ;;  %v3648_v41 = vpop.f32.mrb[249].mxu0 }
 0x3b4   :  { %v3649_v58 = vadd.f32 %v3648_v41, %v9993_v46  ;;  %v2947_v2 = vpop.f32.mrb[202].mxu1  ;;  %v7353_v6 = vpop.f32.mrb[250].mxu0 }
 0x3b5   :  { %3968 = vst [vmem:[#allocation2 + $0x410] sm:$0xff] %v3657_v30  ;;  %v3660_v63 = vadd.f32 %v7353_v6, %v2923_v50  ;;  %v2949_v57 = vpop.f32.mrb[203].mxu1  ;;  %v3651_v48 = vpop.f32.mrb[251].mxu0 }
 0x3b6   :  { %3966 = vst [vmem:[#allocation2 + $0x400] sm:$0xff] %v3649_v58  ;;  %v3652_v25 = vadd.f32 %v3651_v48, %v9997_v59 }
 0x3b7   :  { %3969 = vst [vmem:[#allocation2 + $0x418] sm:$0xff] %v3660_v63 }
 0x3b8   :  { %3967 = vst [vmem:[#allocation2 + $0x408] sm:$0xff] %v3652_v25 }
 0x3ba   :  { %v2952_v11 = vpop.f32.mrb[204].mxu1  ;;  %v7356_v12 = vpop.f32.mrb[252].mxu0 }
 0x3bb   :  { %v3673_v4 = vadd.f32 %v7356_v12, %v2936_v1  ;;  %v2954_v26 = vpop.f32.mrb[205].mxu1  ;;  %v3664_v61 = vpop.f32.mrb[253].mxu0 }
 0x3bc   :  { %v3665_v56 = vadd.f32 %v3664_v61, %v2928_v43  ;;  %v2955_v19 = vpop.f32.mrb[206].mxu1  ;;  %v7357_v62 = vpop.f32.mrb[254].mxu0 }
 0x3bd   :  { %3972 = vst [vmem:[#allocation2 + $0x430] sm:$0xff] %v3673_v4  ;;  %v3676_v46 = vadd.f32 %v7357_v62, %v2939_v27  ;;  %v2957_v13 = vpop.f32.mrb[207].mxu1  ;;  %v3667_v39 = vpop.f32.mrb[255].mxu0 }
 0x3be   :  { %3970 = vst [vmem:[#allocation2 + $0x420] sm:$0xff] %v3665_v56  ;;  %v3668_v37 = vadd.f32 %v3667_v39, %v2931_v3 }
 0x3bf   :  { %3973 = vst [vmem:[#allocation2 + $0x438] sm:$0xff] %v3676_v46 }
 0x3c0   :  { %3971 = vst [vmem:[#allocation2 + $0x428] sm:$0xff] %v3668_v37 }
 0x3c2   :  { %v2960_v53 = vpop.f32.mrb[208].mxu1  ;;  %v7360_v59 = vpop.f32.mrb[0].mxu0 }
 0x3c3   :  { %v3689_v28 = vadd.f32 %v7360_v59, %v2952_v11  ;;  %v2962_v0 = vpop.f32.mrb[209].mxu1  ;;  %v3680_v60 = vpop.f32.mrb[1].mxu0 }
 0x3c4   :  { %v3681_v31 = vadd.f32 %v3680_v60, %v2944_v51  ;;  %v2963_v10 = vpop.f32.mrb[210].mxu1  ;;  %v7361_v22 = vpop.f32.mrb[2].mxu0 }
 0x3c5   :  { %3976 = vst [vmem:[#allocation2 + $0x450] sm:$0xff] %v3689_v28  ;;  %v3692_v36 = vadd.f32 %v7361_v22, %v2955_v19  ;;  %v2965_v20 = vpop.f32.mrb[211].mxu1  ;;  %v3683_v50 = vpop.f32.mrb[3].mxu0 }
 0x3c6   :  { %3974 = vst [vmem:[#allocation2 + $0x440] sm:$0xff] %v3681_v31  ;;  %v3684_v18 = vadd.f32 %v3683_v50, %v2947_v2 }
 0x3c7   :  { %3977 = vst [vmem:[#allocation2 + $0x458] sm:$0xff] %v3692_v36 }
 0x3c8   :  { %3975 = vst [vmem:[#allocation2 + $0x448] sm:$0xff] %v3684_v18 }
 0x3ca   :  { %v2968_v17 = vpop.f32.mrb[212].mxu1  ;;  %v7364_v34 = vpop.f32.mrb[4].mxu0 }
 0x3cb   :  { %v3705_v42 = vadd.f32 %v7364_v34, %v2968_v17  ;;  %v2970_v40 = vpop.f32.mrb[213].mxu1  ;;  %v3696_v43 = vpop.f32.mrb[5].mxu0 }
 0x3cc   :  { %v3697_v8 = vadd.f32 %v3696_v43, %v2960_v53  ;;  %v2971_v21 = vpop.f32.mrb[214].mxu1  ;;  %v7365_v38 = vpop.f32.mrb[6].mxu0 }
 0x3cd   :  { %3980 = vst [vmem:[#allocation2 + $0x470] sm:$0xff] %v3705_v42  ;;  %v3708_v35 = vadd.f32 %v7365_v38, %v2971_v21  ;;  %v2973_v29 = vpop.f32.mrb[215].mxu1  ;;  %v3699_v3 = vpop.f32.mrb[7].mxu0 }
 0x3ce   :  { %3978 = vst [vmem:[#allocation2 + $0x460] sm:$0xff] %v3697_v8  ;;  %v3700_v45 = vadd.f32 %v3699_v3, %v2963_v10 }
 0x3cf   :  { %3981 = vst [vmem:[#allocation2 + $0x478] sm:$0xff] %v3708_v35 }
 0x3d0   :  { %3979 = vst [vmem:[#allocation2 + $0x468] sm:$0xff] %v3700_v45 }
 0x3d2   :  { %v2976_v33 = vpop.f32.mrb[216].mxu1  ;;  %v7368_v16 = vpop.f32.mrb[8].mxu0 }
 0x3d3   :  { %v2978_v32 = vpop.f32.mrb[217].mxu1  ;;  %v3712_v5 = vpop.f32.mrb[9].mxu0 }
 0x3d4   :  { %v3713_v1 = vadd.f32 %v3712_v5, %v2976_v33  ;;  %v2979_v14 = vpop.f32.mrb[218].mxu1  ;;  %v7369_v9 = vpop.f32.mrb[10].mxu0 }
 0x3d5   :  { %v2981_v44 = vpop.f32.mrb[219].mxu1  ;;  %v3715_v55 = vpop.f32.mrb[11].mxu0 }
 0x3d6   :  { %3982 = vst [vmem:[#allocation2 + $0x480] sm:$0xff] %v3713_v1  ;;  %v3716_v24 = vadd.f32 %v3715_v55, %v2979_v14 }
 0x3d8   :  { %3983 = vst [vmem:[#allocation2 + $0x488] sm:$0xff] %v3716_v24 }
 0x3da   :  { %v2984_v27 = vpop.f32.mrb[220].mxu1  ;;  %v7372_v23 = vpop.f32.mrb[12].mxu0 }
 0x3db   :  { %v3721_v15 = vadd.f32 %v7368_v16, %v2984_v27  ;;  %v2986_v54 = vpop.f32.mrb[221].mxu1  ;;  %v3728_v47 = vpop.f32.mrb[13].mxu0 }
 0x3dc   :  { %v2987_v52 = vpop.f32.mrb[222].mxu1  ;;  %v7373_v51 = vpop.f32.mrb[14].mxu0 }
 0x3dd   :  { %3984 = vst [vmem:[#allocation2 + $0x490] sm:$0xff] %v3721_v15  ;;  %v3724_v49 = vadd.f32 %v7369_v9, %v2987_v52  ;;  %v2989_v30 = vpop.f32.mrb[223].mxu1  ;;  %v3731_v7 = vpop.f32.mrb[15].mxu0 }
 0x3df   :  { %3985 = vst [vmem:[#allocation2 + $0x498] sm:$0xff] %v3724_v49 }
 0x3e2   :  { %v2992_v41 = vpop.f32.mrb[224].mxu1  ;;  %v7376_v58 = vpop.f32.mrb[16].mxu0 }
 0x3e3   :  { %v3729_v2 = vadd.f32 %v3728_v47, %v2992_v41  ;;  %v2994_v6 = vpop.f32.mrb[225].mxu1  ;;  %v3744_v63 = vpop.f32.mrb[17].mxu0 }
 0x3e4   :  { %v2995_v57 = vpop.f32.mrb[226].mxu1  ;;  %v7377_v48 = vpop.f32.mrb[18].mxu0 }
 0x3e5   :  { %3986 = vst [vmem:[#allocation2 + $0x4a0] sm:$0xff] %v3729_v2  ;;  %v3732_v25 = vadd.f32 %v3731_v7, %v2995_v57  ;;  %v2997_v11 = vpop.f32.mrb[227].mxu1  ;;  %v3747_v12 = vpop.f32.mrb[19].mxu0 }
 0x3e7   :  { %3987 = vst [vmem:[#allocation2 + $0x4a8] sm:$0xff] %v3732_v25 }
 0x3ea   :  { %v3000_v4 = vpop.f32.mrb[228].mxu1  ;;  %v7380_v26 = vpop.f32.mrb[20].mxu0 }
 0x3eb   :  { %v3737_v61 = vadd.f32 %v7372_v23, %v3000_v4  ;;  %v3002_v56 = vpop.f32.mrb[229].mxu1  ;;  %v3760_v19 = vpop.f32.mrb[21].mxu0 }
 0x3ec   :  { %v3003_v62 = vpop.f32.mrb[230].mxu1  ;;  %v7381_v46 = vpop.f32.mrb[22].mxu0 }
 0x3ed   :  { %3988 = vst [vmem:[#allocation2 + $0x4b0] sm:$0xff] %v3737_v61  ;;  %v3740_v13 = vadd.f32 %v7373_v51, %v3003_v62  ;;  %v3005_v39 = vpop.f32.mrb[231].mxu1  ;;  %v3763_v37 = vpop.f32.mrb[23].mxu0 }
 0x3ef   :  { %3989 = vst [vmem:[#allocation2 + $0x4b8] sm:$0xff] %v3740_v13 }
 0x3f2   :  { %v3008_v53 = vpop.f32.mrb[232].mxu1  ;;  %v7384_v59 = vpop.f32.mrb[24].mxu0 }
 0x3f3   :  { %v3745_v28 = vadd.f32 %v3744_v63, %v3008_v53  ;;  %v3010_v0 = vpop.f32.mrb[233].mxu1  ;;  %v3776_v60 = vpop.f32.mrb[25].mxu0 }
 0x3f4   :  { %v3011_v31 = vpop.f32.mrb[234].mxu1  ;;  %v7385_v10 = vpop.f32.mrb[26].mxu0 }
 0x3f5   :  { %3990 = vst [vmem:[#allocation2 + $0x4c0] sm:$0xff] %v3745_v28  ;;  %v3748_v22 = vadd.f32 %v3747_v12, %v3011_v31  ;;  %v3013_v36 = vpop.f32.mrb[235].mxu1  ;;  %v3779_v20 = vpop.f32.mrb[27].mxu0 }
 0x3f7   :  { %3991 = vst [vmem:[#allocation2 + $0x4c8] sm:$0xff] %v3748_v22 }
 0x3fa   :  { %v3016_v50 = vpop.f32.mrb[236].mxu1  ;;  %v7388_v18 = vpop.f32.mrb[28].mxu0 }
 0x3fb   :  { %v3753_v17 = vadd.f32 %v7376_v58, %v3016_v50  ;;  %v3018_v34 = vpop.f32.mrb[237].mxu1  ;;  %v3792_v42 = vpop.f32.mrb[29].mxu0 }
 0x3fc   :  { %v3019_v40 = vpop.f32.mrb[238].mxu1  ;;  %v7389_v43 = vpop.f32.mrb[30].mxu0 }
 0x3fd   :  { %3992 = vst [vmem:[#allocation2 + $0x4d0] sm:$0xff] %v3753_v17  ;;  %v3756_v8 = vadd.f32 %v7377_v48, %v3019_v40  ;;  %v3021_v21 = vpop.f32.mrb[239].mxu1  ;;  %v3795_v38 = vpop.f32.mrb[31].mxu0 }
 0x3ff   :  { %3993 = vst [vmem:[#allocation2 + $0x4d8] sm:$0xff] %v3756_v8 }
 0x402   :  { %v3024_v35 = vpop.f32.mrb[240].mxu1  ;;  %v10015_v29 = vpop.f32.mrb[32].mxu0 }
 0x403   :  { %v3761_v3 = vadd.f32 %v3760_v19, %v3024_v35  ;;  %v3026_v45 = vpop.f32.mrb[241].mxu1  ;;  %v3808_v33 = vpop.f32.mrb[33].mxu0 }
 0x404   :  { %v3027_v16 = vpop.f32.mrb[242].mxu1  ;;  %v10017_v32 = vpop.f32.mrb[34].mxu0  ;;  %v10024_v45 = vmov 0.0  }
 0x405   :  { %3994 = vst [vmem:[#allocation2 + $0x4e0] sm:$0xff] %v3761_v3  ;;  %v3764_v5 = vadd.f32 %v3763_v37, %v3027_v16  ;;  %v3029_v1 = vpop.f32.mrb[243].mxu1  ;;  %v3811_v14 = vpop.f32.mrb[35].mxu0  ;;  %v10028_v16 = vmov 0.0  }
 0x406   :  { %v10034_v1 = vmov 0.0  }
 0x407   :  { %3995 = vst [vmem:[#allocation2 + $0x4e8] sm:$0xff] %v3764_v5  ;;  %v10032_v5 = vmov 0.0  }
 0x40a   :  { %v3032_v9 = vpop.f32.mrb[244].mxu1  ;;  %v10019_v44 = vpop.f32.mrb[36].mxu0 }
 0x40b   :  { %v3769_v55 = vadd.f32 %v7380_v26, %v3032_v9  ;;  %v3034_v24 = vpop.f32.mrb[245].mxu1  ;;  %v3824_v27 = vpop.f32.mrb[37].mxu0 }
 0x40c   :  { %v3035_v23 = vpop.f32.mrb[246].mxu1  ;;  %v7397_v15 = vpop.f32.mrb[38].mxu0 }
 0x40d   :  { %3996 = vst [vmem:[#allocation2 + $0x4f0] sm:$0xff] %v3769_v55  ;;  %v3772_v54 = vadd.f32 %v7381_v46, %v3035_v23  ;;  %v3037_v47 = vpop.f32.mrb[247].mxu1  ;;  %v3827_v52 = vpop.f32.mrb[39].mxu0 }
 0x40f   :  { %3997 = vst [vmem:[#allocation2 + $0x4f8] sm:$0xff] %v3772_v54 }
 0x412   :  { %v3040_v51 = vpop.f32.mrb[248].mxu1 }
 0x413   :  { %v3777_v49 = vadd.f32 %v3776_v60, %v3040_v51  ;;  %v3042_v30 = vpop.f32.mrb[249].mxu1 }
 0x414   :  { %v3043_v7 = vpop.f32.mrb[250].mxu1 }
 0x415   :  { %3998 = vst [vmem:[#allocation2 + $0x500] sm:$0xff] %v3777_v49  ;;  %v3780_v41 = vadd.f32 %v3779_v20, %v3043_v7  ;;  %v3045_v58 = vpop.f32.mrb[251].mxu1 }
 0x417   :  { %3999 = vst [vmem:[#allocation2 + $0x508] sm:$0xff] %v3780_v41 }
 0x41a   :  { %v3048_v2 = vpop.f32.mrb[252].mxu1 }
 0x41b   :  { %v3785_v6 = vadd.f32 %v7384_v59, %v3048_v2  ;;  %v3050_v63 = vpop.f32.mrb[253].mxu1 }
 0x41c   :  { %v3051_v57 = vpop.f32.mrb[254].mxu1 }
 0x41d   :  { %4000 = vst [vmem:[#allocation2 + $0x510] sm:$0xff] %v3785_v6  ;;  %v3788_v48 = vadd.f32 %v7385_v10, %v3051_v57  ;;  %v3053_v25 = vpop.f32.mrb[255].mxu1 }
 0x41f   :  { %4001 = vst [vmem:[#allocation2 + $0x518] sm:$0xff] %v3788_v48 }
 0x422   :  { %v3056_v11 = vpop.f32.mrb[0].mxu1 }
 0x423   :  { %v3793_v12 = vadd.f32 %v3792_v42, %v3056_v11  ;;  %v3058_v4 = vpop.f32.mrb[1].mxu1 }
 0x424   :  { %v3059_v26 = vpop.f32.mrb[2].mxu1 }
 0x425   :  { %4002 = vst [vmem:[#allocation2 + $0x520] sm:$0xff] %v3793_v12  ;;  %v3796_v61 = vadd.f32 %v3795_v38, %v3059_v26  ;;  %v3061_v56 = vpop.f32.mrb[3].mxu1 }
 0x427   :  { %4003 = vst [vmem:[#allocation2 + $0x528] sm:$0xff] %v3796_v61 }
 0x42a   :  { %v3064_v19 = vpop.f32.mrb[4].mxu1 }
 0x42b   :  { %v3801_v62 = vadd.f32 %v7388_v18, %v3064_v19  ;;  %v3066_v46 = vpop.f32.mrb[5].mxu1 }
 0x42c   :  { %v3067_v13 = vpop.f32.mrb[6].mxu1 }
 0x42d   :  { %4004 = vst [vmem:[#allocation2 + $0x530] sm:$0xff] %v3801_v62  ;;  %v3804_v39 = vadd.f32 %v7389_v43, %v3067_v13  ;;  %v3069_v37 = vpop.f32.mrb[7].mxu1 }
 0x42f   :  { %4005 = vst [vmem:[#allocation2 + $0x538] sm:$0xff] %v3804_v39 }
 0x432   :  { %v3072_v53 = vpop.f32.mrb[8].mxu1 }
 0x433   :  { %v3809_v59 = vadd.f32 %v3808_v33, %v3072_v53  ;;  %v3074_v28 = vpop.f32.mrb[9].mxu1  ;;  %v10026_v33 = vmov 0.0  }
 0x434   :  { %v3075_v0 = vpop.f32.mrb[10].mxu1 }
 0x435   :  { %4006 = vst [vmem:[#allocation2 + $0x540] sm:$0xff] %v3809_v59  ;;  %v3812_v60 = vadd.f32 %v3811_v14, %v3075_v0  ;;  %v3077_v31 = vpop.f32.mrb[11].mxu1  ;;  %v10036_v14 = vmov 0.0  }
 0x437   :  { %4007 = vst [vmem:[#allocation2 + $0x548] sm:$0xff] %v3812_v60 }
 0x43a   :  { %v3080_v10 = vpop.f32.mrb[12].mxu1 }
 0x43b   :  { %v3817_v22 = vadd.f32 %v10015_v29, %v3080_v10  ;;  %v3082_v36 = vpop.f32.mrb[13].mxu1 }
 0x43c   :  { %v3083_v20 = vpop.f32.mrb[14].mxu1 }
 0x43d   :  { %4008 = vst [vmem:[#allocation2 + $0x550] sm:$0xff] %v3817_v22  ;;  %v3820_v50 = vadd.f32 %v10017_v32, %v3083_v20  ;;  %v3085_v18 = vpop.f32.mrb[15].mxu1  ;;  %v10030_v32 = vmov 0.0  }
 0x43f   :  { %4009 = vst [vmem:[#allocation2 + $0x558] sm:$0xff] %v3820_v50 }
 0x442   :  { %v3088_v17 = vpop.f32.mrb[16].mxu1 }
 0x443   :  { %v3825_v34 = vadd.f32 %v3824_v27, %v3088_v17  ;;  %v3090_v42 = vpop.f32.mrb[17].mxu1 }
 0x444   :  { %v3091_v40 = vpop.f32.mrb[18].mxu1 }
 0x445   :  { %4010 = vst [vmem:[#allocation2 + $0x560] sm:$0xff] %v3825_v34  ;;  %v3828_v43 = vadd.f32 %v3827_v52, %v3091_v40  ;;  %v3093_v8 = vpop.f32.mrb[19].mxu1 }
 0x447   :  { %4011 = vst [vmem:[#allocation2 + $0x568] sm:$0xff] %v3828_v43 }
 0x44a   :  { %v3096_v21 = vpop.f32.mrb[20].mxu1 }
 0x44b   :  { %v3833_v38 = vadd.f32 %v10019_v44, %v3096_v21  ;;  %v3098_v35 = vpop.f32.mrb[21].mxu1 }
 0x44c   :  { %v3099_v29 = vpop.f32.mrb[22].mxu1 }
 0x44d   :  { %4012 = vst [vmem:[#allocation2 + $0x570] sm:$0xff] %v3833_v38  ;;  %v3100_v3 = vpop.f32.mrb[23].mxu1 }
 0x44e LB: > { %s6854_s13 = smul.u32 320, %s8565_s3  ;;  %s8565_s3 = sphi %s10038_s3, %s4018_s3   ;;  %v8561_v14 = vphi %v10036_v14, %v10494_v14   ;;  %v8557_v1 = vphi %v10034_v1, %v10493_v1   ;;  %v8553_v5 = vphi %v10032_v5, %v10492_v5   ;;  %v8549_v32 = vphi %v10030_v32, %v10491_v32   ;;  %v8545_v16 = vphi %v10028_v16, %v10490_v16   ;;  %v8541_v33 = vphi %v10026_v33, %v10489_v33   ;;  %v8537_v45 = vphi %v10024_v45, %v10488_v45  }
 0x44f   : > { %s4027_s17 = smul.u32 280, %s8565_s3  ;;  %s4018_s3 = sadd.s32 1, %s8565_s3  }
 0x450   : > { %s10068_s16 = scalar_lea.vmem %s10434_s4, %s6854_s13  ;;  %p4015_p8 = scmp.ge.s32.totalorder %s4018_s3, 5  }
 0x451   : > { %v8346_v9 = vld [vmem:[%s10068_s16] sm:$0xff]   ;;  %v8348_v55 = vld [vmem:[%s10068_s16 + $0x8] sm:$0xff]   ;;  %v8350_v27 = vld [vmem:[%s10068_s16 + $0x10] sm:$0xff]   ;;  %s10082_s1 = scalar_lea.vmem [#allocation2], %s4027_s17  ;;  %vm8580_vm0 = vmmov (%p4015_p8), 0   ;;  %vm4939_vm1 = vcmask (%p4015_p8), 1043456  }
 0x452   : > { %v8347_v44 = vld [vmem:[%s10068_s16 + $0x80] sm:$0xff]   ;;  %7398 = vmatprep.subr.bf16.mxu1 %v8346_v9  ;;  %v8349_v24 = vld [vmem:[%s10068_s16 + $0x88] sm:$0xff]   ;;  %v8351_v23 = vld [vmem:[%s10068_s16 + $0x90] sm:$0xff]   ;;  %vm4899_vm2 = vcmask (%p4015_p8), 457728  }
 0x453   : > { %7446 = vmatprep.subr.bf16.mxu0 %v8347_v44  ;;  %7399 = vmatpush3.bf16.msra.mxu1 %v8346_v9  ;;  %v8352_v15 = vld [vmem:[%s10068_s16 + $0x18] sm:$0xff]   ;;  %v8354_v47 = vld [vmem:[%s10068_s16 + $0x20] sm:$0xff]   ;;  %v8356_v51 = vld [vmem:[%s10068_s16 + $0x28] sm:$0xff]  }
 0x454   : > { %7447 = vmatpush3.bf16.msra.mxu0 %v8347_v44  ;;  %7400 = vmatprep.subr.bf16.mxu1 %v8348_v55  ;;  %v8353_v54 = vld [vmem:[%s10068_s16 + $0x98] sm:$0xff]   ;;  %v8355_v52 = vld [vmem:[%s10068_s16 + $0xa0] sm:$0xff]   ;;  %v4030_v30 = vld [vmem:[%s10082_s1 + $0x8] sm:$0xff] }
 0x455   : > { %7448 = vmatprep.subr.bf16.mxu0 %v8349_v24  ;;  %v4029_v49 = vld [vmem:[%s10082_s1] sm:$0xff]  ;;  %v8357_v7 = vld [vmem:[%s10068_s16 + $0xa8] sm:$0xff]   ;;  %v6578_v58 = vld [vmem:[%s10082_s1 + $0x70] sm:$0xff] }
 0x456   : > { %v4036_v41 = vpack.c.bf16 %v4030_v30, %v4029_v49  ;;  %v6579_v2 = vld [vmem:[%s10082_s1 + $0x78] sm:$0xff]  ;;  %v8358_v63 = vld [vmem:[%s10068_s16 + $0x30] sm:$0xff]   ;;  %v8362_v12 = vld [vmem:[%s10068_s16 + $0x40] sm:$0xff]  }
 0x457   : > { %7401 = vmatpush3.bf16.msra.mxu1 %v8348_v55  ;;  %v4340_v6 = vpack.c.bf16 %v6579_v2, %v6578_v58  ;;  %v8359_v57 = vld [vmem:[%s10068_s16 + $0xb0] sm:$0xff]   ;;  %v8360_v48 = vld [vmem:[%s10068_s16 + $0x38] sm:$0xff]   ;;  %v6580_v26 = vld [vmem:[%s10082_s1 + $0x80] sm:$0xff] }
 0x458   : > { %7449 = vmatpush3.bf16.msra.mxu0 %v8349_v24  ;;  %7402 = vmatprep.subr.bf16.mxu1 %v8350_v27  ;;  %v8361_v25 = vld [vmem:[%s10068_s16 + $0xb8] sm:$0xff]   ;;  %v4031_v11 = vld [vmem:[%s10082_s1 + $0x10] sm:$0xff]  ;;  %v6581_v61 = vld [vmem:[%s10082_s1 + $0x88] sm:$0xff] }
 0x459   : > { %7450 = vmatprep.subr.bf16.mxu0 %v8351_v23  ;;  %7414 = vmatprep.mubr.bf16.mxu1 %v4036_v41  ;;  %v4032_v4 = vld [vmem:[%s10082_s1 + $0x18] sm:$0xff]  ;;  %v8363_v56 = vld [vmem:[%s10068_s16 + $0xc0] sm:$0xff]   ;;  %v4341_v46 = vpack.c.bf16 %v6581_v61, %v6580_v26  ;;  %v4034_v13 = vld [vmem:[%s10082_s1 + $0x28] sm:$0xff] }
 0x45a   : > { %7462 = vmatprep.mubr.bf16.mxu0 %v4340_v6  ;;  %v4037_v19 = vpack.c.bf16 %v4032_v4, %v4031_v11  ;;  %v4033_v62 = vld [vmem:[%s10082_s1 + $0x20] sm:$0xff]  ;;  %v6582_v39 = vld [vmem:[%s10082_s1 + $0x90] sm:$0xff]  ;;  %v6583_v37 = vld [vmem:[%s10082_s1 + $0x98] sm:$0xff] }
 0x45b   : > { %7403 = vmatpush3.bf16.msra.mxu1 %v8350_v27  ;;  %v8364_v53 = vld [vmem:[%s10068_s16 + $0x48] sm:$0xff]   ;;  %v4038_v28 = vpack.c.bf16 %v4034_v13, %v4033_v62  ;;  %v4342_v0 = vpack.c.bf16 %v6583_v37, %v6582_v39  ;;  %v4035_v60 = vld [vmem:[%s10082_s1 + $0x30] sm:$0xff]  ;;  %v6584_v10 = vld [vmem:[%s10082_s1 + $0xa0] sm:$0xff] }
 0x45c   : > { %7451 = vmatpush3.bf16.msra.mxu0 %v8351_v23  ;;  %7404 = vmatprep.subr.bf16.mxu1 %v8352_v15  ;;  %v8365_v59 = vld [vmem:[%s10068_s16 + $0xc8] sm:$0xff]   ;;  %v8366_v31 = vld [vmem:[%s10068_s16 + $0x50] sm:$0xff]   ;;  %v4039_v36 = vpack.c.bf16 %v4035_v60, %v4035_v60  ;;  %v6545_v20 = vld [vmem:[%s10082_s1 + $0x38] sm:$0xff]  ;;  %v4343_v17 = vpack.c.bf16 %v6584_v10, %v6584_v10 }
 0x45d   : > { %7452 = vmatprep.subr.bf16.mxu0 %v8353_v54  ;;  %v8367_v22 = vld [vmem:[%s10068_s16 + $0xd0] sm:$0xff]   ;;  %v6546_v50 = vld [vmem:[%s10082_s1 + $0x40] sm:$0xff]  ;;  %v6611_v18 = vld [vmem:[%s10082_s1 + $0xa8] sm:$0xff] }
 0x45e   : > { %v6612_v34 = vld [vmem:[%s10082_s1 + $0xb0] sm:$0xff]  ;;  %v8368_v42 = vld [vmem:[%s10068_s16 + $0x58] sm:$0xff]   ;;  %v4188_v43 = vpack.c.bf16 %v6546_v50, %v6545_v20  ;;  %v8370_v21 = vld [vmem:[%s10068_s16 + $0x60] sm:$0xff]  }
 0x45f   : > { %7405 = vmatpush3.bf16.msra.mxu1 %v8352_v15  ;;  %v8369_v40 = vld [vmem:[%s10068_s16 + $0xd8] sm:$0xff]   ;;  %v4492_v8 = vpack.c.bf16 %v6612_v34, %v6611_v18  ;;  %v8371_v38 = vld [vmem:[%s10068_s16 + $0xe0] sm:$0xff]   ;;  %v8372_v35 = vld [vmem:[%s10068_s16 + $0x68] sm:$0xff]  }
 0x460   : > { %7453 = vmatpush3.bf16.msra.mxu0 %v8353_v54  ;;  %7406 = vmatprep.subr.bf16.mxu1 %v8354_v47  ;;  %v8373_v29 = vld [vmem:[%s10068_s16 + $0xe8] sm:$0xff]   ;;  %v8374_v3 = vld [vmem:[%s10068_s16 + $0x70] sm:$0xff]   ;;  %v8376_v44 = vld [vmem:[%s10068_s16 + $0x78] sm:$0xff]  }
 0x461   : > { %7454 = vmatprep.subr.bf16.mxu0 %v8355_v52  ;;  %v8375_v9 = vld [vmem:[%s10068_s16 + $0xf0] sm:$0xff]   ;;  %v8377_v55 = vld [vmem:[%s10068_s16 + $0xf8] sm:$0xff]   ;;  %v6547_v24 = vld [vmem:[%s10082_s1 + $0x48] sm:$0xff] }
 0x462   : > { %v6548_v27 = vld [vmem:[%s10082_s1 + $0x50] sm:$0xff]  ;;  %v6613_v23 = vld [vmem:[%s10082_s1 + $0xb8] sm:$0xff]  ;;  %v6614_v15 = vld [vmem:[%s10082_s1 + $0xc0] sm:$0xff] }
 0x463   : > { %7407 = vmatpush3.bf16.msra.mxu1 %v8354_v47  ;;  %v8378_v54 = vld [vmem:[%s10068_s16 + $0x100] sm:$0xff]   ;;  %v4189_v47 = vpack.c.bf16 %v6548_v27, %v6547_v24  ;;  %v4493_v49 = vpack.c.bf16 %v6614_v15, %v6613_v23  ;;  %v6615_v30 = vld [vmem:[%s10082_s1 + $0xc8] sm:$0xff]  ;;  %v8381_v61 = vld [vmem:[%s10068_s16 + $0x118] sm:$0xff]  }
 0x464   : > { %7455 = vmatpush3.bf16.msra.mxu0 %v8355_v52  ;;  %7408 = vmatprep.subr.bf16.mxu1 %v8356_v51  ;;  %v6549_v52 = vld [vmem:[%s10082_s1 + $0x58] sm:$0xff]  ;;  %v8379_v41 = vld [vmem:[%s10068_s16 + $0x108] sm:$0xff]   ;;  %v6648_v4 = vld [vmem:[%s10082_s1 + $0x100] sm:$0xff] }
 0x465   : > { %7456 = vmatprep.subr.bf16.mxu0 %v8357_v7  ;;  %v6551_v6 = vld [vmem:[%s10082_s1 + $0x68] sm:$0xff]  ;;  %v8382_v62 = vld [vmem:[%s10068_s16 + $0x120] sm:$0xff]   ;;  %v8384_v13 = vld [vmem:[%s10068_s16 + $0x130] sm:$0xff]  }
 0x466   : > { %v6645_v11 = vld [vmem:[%s10082_s1 + $0xe8] sm:$0xff]  ;;  %v8385_v39 = vld [vmem:[%s10068_s16 + $0x138] sm:$0xff]   ;;  %v6650_v37 = vld [vmem:[%s10082_s1 + $0x110] sm:$0xff] }
 0x467   : > { %7409 = vmatpush3.bf16.msra.mxu1 %v8356_v51  ;;  %v6550_v51 = vld [vmem:[%s10082_s1 + $0x60] sm:$0xff]  ;;  %v6649_v26 = vld [vmem:[%s10082_s1 + $0x108] sm:$0xff] }
 0x468   : > { %7457 = vmatpush3.bf16.msra.mxu0 %v8357_v7  ;;  %7410 = vmatprep.subr.bf16.mxu1 %v8358_v63  ;;  %v6616_v7 = vld [vmem:[%s10082_s1 + $0xd0] sm:$0xff]  ;;  %v4190_v58 = vpack.c.bf16 %v6550_v51, %v6549_v52 }
 0x469   : > { %7458 = vmatprep.subr.bf16.mxu0 %v8359_v57  ;;  %v4494_v2 = vpack.c.bf16 %v6616_v7, %v6615_v30 }
 0x46b   : > { %7411 = vmatpush3.bf16.msra.mxu1 %v8358_v63  ;;  %v6617_v63 = vld [vmem:[%s10082_s1 + $0xd8] sm:$0xff] }
 0x46c   : > { %7459 = vmatpush3.bf16.msra.mxu0 %v8359_v57  ;;  %7412 = vmatprep.subr.bf16.mxu1 %v8360_v48  ;;  %v8380_v57 = vld [vmem:[%s10068_s16 + $0x110] sm:$0xff]  }
 0x46d   : > { %7460 = vmatprep.subr.bf16.mxu0 %v8361_v25 }
 0x46f   : > { %7413 = vmatpush3.bf16.msra.mxu1 %v8360_v48  ;;  %v4191_v48 = vpack.c.bf16 %v6551_v6, %v6551_v6 }
 0x470   : > { %7461 = vmatpush3.bf16.msra.mxu0 %v8361_v25  ;;  %7422 = vmatprep.subr.bf16.mxu1 %v8362_v12  ;;  %v6644_v25 = vld [vmem:[%s10082_s1 + $0xe0] sm:$0xff] }
 0x471   : > { %7470 = vmatprep.subr.bf16.mxu0 %v8363_v56 }
 0x472   : > { %7415 = vmatmul.mubr.bf16.vlgmr.msra.gmra.mrb[0].mxu1 %v4037_v19  ;;  %v4646_v19 = vpack.c.bf16 %v6649_v26, %v6648_v4 }
 0x473   : > { %7423 = vmatpush3.bf16.msra.mxu1 %v8362_v12  ;;  %7463 = vmatmul.mubr.bf16.vlgmr.msra.gmra.mrb[0].mxu0 %v4341_v46  ;;  %v4495_v12 = vpack.c.bf16 %v6617_v63, %v6617_v63  ;;  %v8383_v46 = vld [vmem:[%s10068_s16 + $0x128] sm:$0xff]  }
 0x474   : > { %7471 = vmatpush3.bf16.msra.mxu0 %v8363_v56  ;;  %7424 = vmatprep.subr.bf16.mxu1 %v8364_v53  ;;  %v4644_v56 = vpack.c.bf16 %v6645_v11, %v6644_v25 }
 0x475   : > { %7472 = vmatprep.subr.bf16.mxu0 %v8365_v59  ;;  %7418 = vmatprep.mubr.bf16.mxu1 %v4038_v28  ;;  %v4647_v28 = vpack.c.bf16 %v6650_v37, %v6650_v37  ;;  %v8387_v37 = vld [vmem:[%s10436_s6 + $0x38] sm:$0xff] (%p4015_p8)  }
 0x476   : > { %7466 = vmatprep.mubr.bf16.mxu0 %v4342_v0 }
 0x477   : > { %7425 = vmatpush3.bf16.msra.mxu1 %v8364_v53  ;;  %v6646_v53 = vld [vmem:[%s10082_s1 + $0xf0] sm:$0xff] }
 0x478   : > { %7473 = vmatpush3.bf16.msra.mxu0 %v8365_v59  ;;  %7426 = vmatprep.subr.bf16.mxu1 %v8366_v31  ;;  %v6647_v59 = vld [vmem:[%s10082_s1 + $0xf8] sm:$0xff] }
 0x479   : > { %7474 = vmatprep.subr.bf16.mxu0 %v8367_v22  ;;  %v4645_v0 = vpack.c.bf16 %v6647_v59, %v6646_v53  ;;  %v8388_v53 = vld [vmem:[%s10436_s6 + $0x8] sm:$0xff] (%p4015_p8)   ;;  %v8389_v59 = vld [vmem:[%s10436_s6 + $0x40] sm:$0xff] (%p4015_p8)  }
 0x47a   : > { %7419 = vmatmul.mubr.bf16.gmra.mrb[4].mxu1 %v4039_v36 }
 0x47b   : > { %7427 = vmatpush3.bf16.msra.mxu1 %v8366_v31  ;;  %7467 = vmatmul.mubr.bf16.gmra.mrb[4].mxu0 %v4343_v17 }
 0x47c   : > { %7475 = vmatpush3.bf16.msra.mxu0 %v8367_v22  ;;  %7428 = vmatprep.subr.bf16.mxu1 %v8368_v42 }
 0x47d   : > { %7476 = vmatprep.subr.bf16.mxu0 %v8369_v40  ;;  %7438 = vmatprep.mubr.bf16.mxu1 %v4188_v43 }
 0x47e   : > { %7486 = vmatprep.mubr.bf16.mxu0 %v4492_v8 }
 0x47f   : > { %7429 = vmatpush3.bf16.msra.mxu1 %v8368_v42 }
 0x480   : > { %7477 = vmatpush3.bf16.msra.mxu0 %v8369_v40  ;;  %7430 = vmatprep.subr.bf16.mxu1 %v8370_v21 }
 0x481   : > { %7478 = vmatprep.subr.bf16.mxu0 %v8371_v38 }
 0x483   : > { %7431 = vmatpush3.bf16.msra.mxu1 %v8370_v21 }
 0x484   : > { %7479 = vmatpush3.bf16.msra.mxu0 %v8371_v38  ;;  %7432 = vmatprep.subr.bf16.mxu1 %v8372_v35 }
 0x485   : > { %7480 = vmatprep.subr.bf16.mxu0 %v8373_v29 }
 0x487   : > { %7433 = vmatpush3.bf16.msra.mxu1 %v8372_v35 }
 0x488   : > { %7481 = vmatpush3.bf16.msra.mxu0 %v8373_v29  ;;  %7434 = vmatprep.subr.bf16.mxu1 %v8374_v3 }
 0x489   : > { %7482 = vmatprep.subr.bf16.mxu0 %v8375_v9 }
 0x48b   : > { %7435 = vmatpush3.bf16.msra.mxu1 %v8374_v3 }
 0x48c   : > { %7483 = vmatpush3.bf16.msra.mxu0 %v8375_v9  ;;  %7436 = vmatprep.subr.bf16.mxu1 %v8376_v44 }
 0x48d   : > { %7484 = vmatprep.subr.bf16.mxu0 %v8377_v55 }
 0x48f   : > { %7437 = vmatpush3.bf16.msra.mxu1 %v8376_v44 }
 0x490   : > { %7485 = vmatpush3.bf16.msra.mxu0 %v8377_v55  ;;  %7790 = vmatprep.subr.bf16.mxu1 %v8378_v54 }
 0x491   : > { %7494 = vmatprep.subr.bf16.mxu0 %v8378_v54 }
 0x492   : > { %7439 = vmatmul.mubr.bf16.vlgmr.msra.gmra.mrb[0].mxu1 %v4189_v47 }
 0x493   : > { %7487 = vmatmul.mubr.bf16.vlgmr.msra.gmra.mrb[0].mxu0 %v4493_v49  ;;  %7798 = vmatpush3.bf16.msra.mxu1 %v8378_v54 }
 0x494   : > { %7495 = vmatpush3.bf16.msra.mxu0 %v8378_v54  ;;  %7791 = vmatprep.subr.bf16.mxu1 %v8379_v41 }
 0x495   : > { %7496 = vmatprep.subr.bf16.mxu0 %v8379_v41  ;;  %7442 = vmatprep.mubr.bf16.mxu1 %v4190_v58  ;;  %v8579_v58 = vmov (%p4015_p8), 0.0  }
 0x496   : > { %7490 = vmatprep.mubr.bf16.mxu0 %v4494_v2 }
 0x497   : > { %7799 = vmatpush3.bf16.msra.mxu1 %v8379_v41 }
 0x498   : > { %7497 = vmatpush3.bf16.msra.mxu0 %v8379_v41  ;;  %7792 = vmatprep.subr.bf16.mxu1 %v8380_v57 }
 0x499   : > { %7498 = vmatprep.subr.bf16.mxu0 %v8380_v57 }
 0x49a   : > { %7443 = vmatmul.mubr.bf16.gmra.mrb[4].mxu1 %v4191_v48 }
 0x49b   : > { %7491 = vmatmul.mubr.bf16.gmra.mrb[4].mxu0 %v4495_v12  ;;  %7800 = vmatpush3.bf16.msra.mxu1 %v8380_v57 }
 0x49c   : > { %7499 = vmatpush3.bf16.msra.mxu0 %v8380_v57  ;;  %7793 = vmatprep.subr.bf16.mxu1 %v8381_v61 }
 0x49d   : > { %7500 = vmatprep.subr.bf16.mxu0 %v8381_v61  ;;  %7510 = vmatprep.mubr.bf16.mxu0 %v4644_v56 }
 0x49e   : > { %7514 = vmatprep.mubr.bf16.mxu1 %v4646_v19 }
 0x49f   : > { %7801 = vmatpush3.bf16.msra.mxu1 %v8381_v61 }
 0x4a0   : > { %7501 = vmatpush3.bf16.msra.mxu0 %v8381_v61  ;;  %7794 = vmatprep.subr.bf16.mxu1 %v8382_v62 }
 0x4a1   : > { %7502 = vmatprep.subr.bf16.mxu0 %v8382_v62 }
 0x4a3   : > { %7802 = vmatpush3.bf16.msra.mxu1 %v8382_v62 }
 0x4a4   : > { %7503 = vmatpush3.bf16.msra.mxu0 %v8382_v62  ;;  %7795 = vmatprep.subr.bf16.mxu1 %v8383_v46 }
 0x4a5   : > { %7504 = vmatprep.subr.bf16.mxu0 %v8383_v46 }
 0x4a7   : > { %7803 = vmatpush3.bf16.msra.mxu1 %v8383_v46 }
 0x4a8   : > { %7505 = vmatpush3.bf16.msra.mxu0 %v8383_v46  ;;  %7796 = vmatprep.subr.bf16.mxu1 %v8384_v13 }
 0x4a9   : > { %7506 = vmatprep.subr.bf16.mxu0 %v8384_v13 }
 0x4ab   : > { %7804 = vmatpush3.bf16.msra.mxu1 %v8384_v13 }
 0x4ac   : > { %7507 = vmatpush3.bf16.msra.mxu0 %v8384_v13  ;;  %7797 = vmatprep.subr.bf16.mxu1 %v8385_v39 }
 0x4ad   : > { %7508 = vmatprep.subr.bf16.mxu0 %v8385_v39 }
 0x4af   : > { %7805 = vmatpush3.bf16.msra.mxu1 %v8385_v39 }
 0x4b0   : > { %7509 = vmatpush3.bf16.msra.mxu0 %v8385_v39  ;;  %7843 = vmatprep.subr.bf16.mxu1 (%p4015_p8), %v8579_v58  ;;  %v8386_v39 = vld [vmem:[%s10436_s6] sm:$0xff] (%p4015_p8)  }
 0x4b1   :  { %7518 = vmatprep.subr.bf16.mxu0 (%p4015_p8), %v8579_v58 }
 0x4b2   : > { %7515 = vmatmul.mubr.bf16.vlgmr.msra.gmra.mrb[8].mxu1 %v4647_v28  ;;  %v8390_v28 = vld [vmem:[%s10436_s6 + $0x10] sm:$0xff] (%p4015_p8)  }
 0x4b3   : > { %7511 = vmatmul.mubr.bf16.vlgmr.msra.gmra.mrb[0].mxu0 %v4645_v0  ;;  %7554 = vmatprep.mubr.msk.bf16.mxu1 (%p4015_p8), %vm8580_vm0, %v8579_v58  ;;  %v8391_v0 = vld [vmem:[%s10436_s6 + $0x48] sm:$0xff] (%p4015_p8)  }
 0x4b4   :  { %7526 = vmatprep.mubr.msk.bf16.mxu0 (%p4015_p8), %vm8580_vm0, %v8579_v58 }
 0x565   : > { %v7440_v60 = vpop.f32.mrb[0].mxu1 }
 0x566   : > { %v4293_v31 = vpop.f32.mrb[1].mxu1  ;;  %v7806_v3 = vadd.f32 %v8553_v5, %v7440_v60  ;;  %v8392_v60 = vld [vmem:[%s10436_s6 + $0x18] sm:$0xff] (%p4015_p8)  }
 0x567   : > { %v7441_v10 = vpop.f32.mrb[2].mxu1  ;;  %v7808_v44 = vadd.f32 %v8561_v14, %v4293_v31  ;;  %v8393_v31 = vld [vmem:[%s10436_s6 + $0x50] sm:$0xff] (%p4015_p8)  }
 0x568   : > { %v4296_v22 = vpop.f32.mrb[3].mxu1 }
 0x569   : > { %v7812_v47 = vadd.f32 %v8557_v1, %v4296_v22  ;;  %v8395_v22 = vld [vmem:[%s10436_s6 + $0x58] sm:$0xff] (%p4015_p8)  }
 0x56d   : > { %v7444_v36 = vpop.f32.mrb[4].mxu1 }
 0x56e   : > { %v7814_v20 = vadd.f32 %v8537_v45, %v7444_v36  ;;  %v7492_v50 = vpop.f32.mrb[4].mxu0  ;;  %v4309_v18 = vpop.f32.mrb[5].mxu1  ;;  %v8396_v36 = vld [vmem:[%s10436_s6 + $0x28] sm:$0xff] (%p4015_p8)  }
 0x56f   : > { %v7817_v17 = vadd.f32 %v8545_v16, %v4309_v18  ;;  %v4613_v34 = vpop.f32.mrb[5].mxu0  ;;  %v7445_v42 = vpop.f32.mrb[6].mxu1  ;;  %v7810_v16 = vadd.f32 %v8549_v32, %v7441_v10  ;;  %v8394_v10 = vld [vmem:[%s10436_s6 + $0x20] sm:$0xff] (%p4015_p8)  }
 0x570   : > { %v7815_v40 = vadd.f32 %v7814_v20, %v7492_v50  ;;  %v7493_v43 = vpop.f32.mrb[6].mxu0  ;;  %v4312_v8 = vpop.f32.mrb[7].mxu1  ;;  %v8397_v20 = vld [vmem:[%s10436_s6 + $0x60] ss:$0 sps:$4 sm:$0xff] (%p4015_p8)   ;;  %v8398_v50 = vld [vmem:[%s10436_s6 + $0x30] sm:$0xff] (%p4015_p8)   ;;  %s10263_s6 = smov (%p4015_p8), 0  }
 0x571   : > { %v7818_v21 = vadd.f32 %v7817_v17, %v4613_v34  ;;  %v7820_v38 = vadd.f32 %v8541_v33, %v4312_v8  ;;  %v4616_v35 = vpop.f32.mrb[7].mxu0 }
 0x573   : > { %v7821_v29 = vadd.f32 %v7820_v38, %v4616_v35 }
 0x585   : > { %v7516_v9 = vpop.f32.mrb[8].mxu1 }
 0x586   : > { %v7512_v45 = vpop.f32.mrb[0].mxu0  ;;  %v7816_v55 = vadd.f32 %v7815_v40, %v7516_v9   ;;  %v4765_v24 = vpop.f32.mrb[9].mxu1  ;;  %4017 = sbr.rel (!%p4015_p8) target bundleno = 1102 (0x44e), region = 105 }
 0x587   : > { %v7807_v27 = vadd.f32 %v7806_v3, %v7512_v45   ;;  %v4749_v23 = vpop.f32.mrb[1].mxu0  ;;  %v7819_v15 = vadd.f32 %v7818_v21, %v4765_v24   ;;  %v7517_v54 = vpop.f32.mrb[10].mxu1 }
 0x588   : > { %v7809_v52 = vadd.f32 %v7808_v44, %v4749_v23   ;;  %v7513_v33 = vpop.f32.mrb[2].mxu0  ;;  %v4768_v51 = vpop.f32.mrb[11].mxu1  ;;  %v10488_v45 = vmov %v7816_v55 }
 0x589   : > { %v7811_v49 = vadd.f32 %v7810_v16, %v7513_v33   ;;  %v4752_v30 = vpop.f32.mrb[3].mxu0  ;;  %v7822_v7 = vadd.f32 %v7821_v29, %v4768_v51   ;;  %v10490_v16 = vmov %v7819_v15  ;;  %v10492_v5 = vmov %v7807_v27 }
 0x58a   : > { %v7813_v41 = vadd.f32 %v7812_v47, %v4752_v30   ;;  %v10494_v14 = vmov %v7809_v52 }
 0x58b   : > { %v10489_v33 = vmov %v7822_v7  ;;  %v10491_v32 = vmov %v7811_v49  ;;  %v6676_v14 = vld [vmem:[%s10435_s5] ss:$0 sm:$0xff] (%p4015_p8) }
 0x58c   : > { %v10493_v1 = vmov %v7813_v41  ;;  %v4793_v2 = vadd.f32 (%p4015_p8), %v7809_v52, %v6676_v14  ;;  %v4794_v6 = vadd.f32 (%p4015_p8), %v7813_v41, %v6676_v14  ;;  %v4795_v63 = vadd.f32 (%p4015_p8), %v7807_v27, %v6676_v14 }
 0x58d   :  { %v4796_v57 = vadd.f32 %v7811_v49, %v6676_v14  ;;  %v4797_v48 = vadd.f32 %v7819_v15, %v6676_v14  ;;  %v4798_v5 = vadd.f32 %v7822_v7, %v6676_v14  ;;  %v4799_v12 = vadd.f32 %v7816_v55, %v6676_v14 }
 0x58e   :  { %v4800_v25 = vmax.f32 %v4793_v2, 0.0  ;;  %v4801_v11 = vmax.f32 %v4794_v6, 0.0  ;;  %v4802_v32 = vmax.f32 %v4795_v63, 0.0 }
 0x58f   :  { %v4803_v1 = vmax.f32 %v4796_v57, 0.0  ;;  %v4804_v61 = vmax.f32 %v4797_v48, 0.0  ;;  %v4805_v56 = vmax.f32 %v4798_v5, 0.0  ;;  %v4806_v19 = vmax.f32 %v4799_v12, 0.0 }
 0x590   :  { %v4807_v4 = vpack.c.bf16 %v4801_v11, %v4800_v25 }
 0x591   :  { %v4808_v26 = vpack.c.bf16 %v4803_v1, %v4802_v32  ;;  %v4809_v62 = vpack.c.bf16 %v4805_v56, %v4804_v61  ;;  %v4810_v46 = vpack.c.bf16 %v4806_v19, %v4806_v19 }
 0x592   :  { %7519 = vmatpush3.bf16.msra.mxu0 %v4807_v4  ;;  %7847 = vmatpush3.bf16.msra.mxu1 %v4807_v4 }
 0x593   :  { %7520 = vmatprep.subr.bf16.mxu0 %v8579_v58  ;;  %7844 = vmatprep.subr.bf16.mxu1 %v8579_v58  ;;  %v4941_v13 = vsel %vm4939_vm1, %v4810_v46, 0 }
 0x596   :  { %7521 = vmatpush3.bf16.msra.mxu0 %v4808_v26  ;;  %7848 = vmatpush3.bf16.msra.mxu1 %v4808_v26 }
 0x597   :  { %7522 = vmatprep.subr.bf16.mxu0 %v8579_v58  ;;  %7845 = vmatprep.subr.bf16.mxu1 %v8579_v58 }
 0x59a   :  { %7523 = vmatpush3.bf16.msra.mxu0 %v4809_v62  ;;  %7849 = vmatpush3.bf16.msra.mxu1 %v4809_v62 }
 0x59b   :  { %7524 = vmatprep.subr.bf16.mxu0 %v8579_v58  ;;  %7846 = vmatprep.subr.bf16.mxu1 %v8579_v58 }
 0x59e   :  { %7525 = vmatpush3.bf16.msra.mxu0 %v4941_v13  ;;  %7850 = vmatpush3.bf16.msra.mxu1 %v4941_v13 }
 0x5a1   :  { %7527 = vmatmul.mubr.msk.bf16.vlgmr.msra.gmra.mrb[0].mxu0 %vm4899_vm2, %v8386_v39  ;;  %7555 = vmatmul.mubr.msk.bf16.vlgmr.msra.gmra.mrb[0].mxu1 %vm4899_vm2, %v8387_v37 }
 0x5a2   :  { %7530 = vmatprep.mubr.msk.bf16.mxu0 %vm8580_vm0, %v8579_v58  ;;  %7558 = vmatprep.mubr.msk.bf16.mxu1 %vm8580_vm0, %v8579_v58 }
 0x5a9   :  { %7531 = vmatmul.mubr.msk.bf16.gmra.mrb[4].mxu0 %vm4899_vm2, %v8388_v53  ;;  %7559 = vmatmul.mubr.msk.bf16.gmra.mrb[4].mxu1 %vm4899_vm2, %v8389_v59  ;;  %v10261_v53 = vmov 0.0  }
 0x5aa   :  { %7534 = vmatprep.mubr.msk.bf16.mxu0 %vm8580_vm0, %v8579_v58  ;;  %7562 = vmatprep.mubr.msk.bf16.mxu1 %vm8580_vm0, %v8579_v58 }
 0x5b1   :  { %7535 = vmatmul.mubr.msk.bf16.gmra.mrb[8].mxu0 %vm4899_vm2, %v8390_v28  ;;  %7563 = vmatmul.mubr.msk.bf16.gmra.mrb[8].mxu1 %vm4899_vm2, %v8391_v0 }
 0x5b2   :  { %7538 = vmatprep.mubr.msk.bf16.mxu0 %vm8580_vm0, %v8579_v58  ;;  %7566 = vmatprep.mubr.msk.bf16.mxu1 %vm8580_vm0, %v8579_v58 }
 0x5b9   :  { %7539 = vmatmul.mubr.msk.bf16.gmra.mrb[12].mxu0 %vm4899_vm2, %v8392_v60  ;;  %7567 = vmatmul.mubr.msk.bf16.gmra.mrb[12].mxu1 %vm4899_vm2, %v8393_v31 }
 0x5ba   :  { %7542 = vmatprep.mubr.msk.bf16.mxu0 %vm8580_vm0, %v8579_v58  ;;  %7570 = vmatprep.mubr.msk.bf16.mxu1 %vm8580_vm0, %v8579_v58 }
 0x5c1   :  { %7543 = vmatmul.mubr.msk.bf16.gmra.mrb[16].mxu0 %vm4899_vm2, %v8394_v10  ;;  %7571 = vmatmul.mubr.msk.bf16.gmra.mrb[16].mxu1 %vm4899_vm2, %v8395_v22 }
 0x5c2   :  { %7546 = vmatprep.mubr.msk.bf16.mxu0 %vm8580_vm0, %v8579_v58  ;;  %7574 = vmatprep.mubr.msk.bf16.mxu1 %vm8580_vm0, %v8579_v58 }
 0x5c9   :  { %7547 = vmatmul.mubr.msk.bf16.gmra.mrb[20].mxu0 %vm4899_vm2, %v8396_v36  ;;  %7575 = vmatmul.mubr.msk.bf16.gmra.mrb[20].mxu1 %vm4899_vm2, %v8397_v20 }
 0x5ca   :  { %7550 = vmatprep.mubr.msk.bf16.mxu0 %vm8580_vm0, %v8579_v58 }
 0x5d1   :  { %7551 = vmatmul.mubr.msk.bf16.gmra.mrb[24].mxu0 %vm4899_vm2, %v8398_v50 }
 0x674   :  { %v4977_v18 = vpop.f32.mrb[0].mxu0  ;;  %v5033_v17 = vpop.f32.mrb[0].mxu1 }
 0x675   :  { %5079 = vst [vmem:[#allocation3] sm:$0xff] %v4977_v18  ;;  %v7528_v34 = vpop.f32.mrb[1].mxu0  ;;  %5093 = vst [vmem:[#allocation3 + $0x70] sm:$0xff] %v5033_v17  ;;  %v7556_v42 = vpop.f32.mrb[1].mxu1 }
 0x676   :  { %v4980_v40 = vpop.f32.mrb[2].mxu0  ;;  %v5036_v43 = vpop.f32.mrb[2].mxu1 }
 0x677   :  { %5080 = vst [vmem:[#allocation3 + $0x8] sm:$0xff] %v4980_v40  ;;  %v7529_v8 = vpop.f32.mrb[3].mxu0  ;;  %5094 = vst [vmem:[#allocation3 + $0x78] sm:$0xff] %v5036_v43  ;;  %v7557_v21 = vpop.f32.mrb[3].mxu1 }
 0x67c   :  { %v4985_v38 = vpop.f32.mrb[4].mxu0  ;;  %v5041_v35 = vpop.f32.mrb[4].mxu1 }
 0x67d   :  { %5081 = vst [vmem:[#allocation3 + $0x10] sm:$0xff] %v4985_v38  ;;  %v7532_v29 = vpop.f32.mrb[5].mxu0  ;;  %5095 = vst [vmem:[#allocation3 + $0x80] sm:$0xff] %v5041_v35  ;;  %v7560_v3 = vpop.f32.mrb[5].mxu1 }
 0x67e   :  { %v4988_v9 = vpop.f32.mrb[6].mxu0  ;;  %v5044_v44 = vpop.f32.mrb[6].mxu1 }
 0x67f   :  { %5082 = vst [vmem:[#allocation3 + $0x18] sm:$0xff] %v4988_v9  ;;  %v7533_v45 = vpop.f32.mrb[7].mxu0  ;;  %5096 = vst [vmem:[#allocation3 + $0x88] sm:$0xff] %v5044_v44  ;;  %v7561_v55 = vpop.f32.mrb[7].mxu1 }
 0x684   :  { %v4993_v24 = vpop.f32.mrb[8].mxu0  ;;  %v5049_v16 = vpop.f32.mrb[8].mxu1 }
 0x685   :  { %5083 = vst [vmem:[#allocation3 + $0x20] sm:$0xff] %v4993_v24  ;;  %v7536_v27 = vpop.f32.mrb[9].mxu0  ;;  %5097 = vst [vmem:[#allocation3 + $0x90] sm:$0xff] %v5049_v16  ;;  %v7564_v23 = vpop.f32.mrb[9].mxu1 }
 0x686   :  { %v4996_v15 = vpop.f32.mrb[10].mxu0  ;;  %v5052_v54 = vpop.f32.mrb[10].mxu1 }
 0x687   :  { %5084 = vst [vmem:[#allocation3 + $0x28] sm:$0xff] %v4996_v15  ;;  %v7537_v47 = vpop.f32.mrb[11].mxu0  ;;  %5098 = vst [vmem:[#allocation3 + $0x98] sm:$0xff] %v5052_v54  ;;  %v7565_v52 = vpop.f32.mrb[11].mxu1 }
 0x68c   :  { %v5001_v33 = vpop.f32.mrb[12].mxu0  ;;  %v5057_v51 = vpop.f32.mrb[12].mxu1 }
 0x68d   :  { %5085 = vst [vmem:[#allocation3 + $0x30] sm:$0xff] %v5001_v33  ;;  %v7540_v49 = vpop.f32.mrb[13].mxu0  ;;  %5099 = vst [vmem:[#allocation3 + $0xa0] sm:$0xff] %v5057_v51  ;;  %v7568_v30 = vpop.f32.mrb[13].mxu1 }
 0x68e   :  { %v5004_v7 = vpop.f32.mrb[14].mxu0  ;;  %v5060_v41 = vpop.f32.mrb[14].mxu1 }
 0x68f   :  { %5086 = vst [vmem:[#allocation3 + $0x38] sm:$0xff] %v5004_v7  ;;  %v7541_v14 = vpop.f32.mrb[15].mxu0  ;;  %5100 = vst [vmem:[#allocation3 + $0xa8] sm:$0xff] %v5060_v41  ;;  %v7569_v2 = vpop.f32.mrb[15].mxu1 }
 0x694   :  { %v5009_v6 = vpop.f32.mrb[16].mxu0  ;;  %v5065_v63 = vpop.f32.mrb[16].mxu1 }
 0x695   :  { %5087 = vst [vmem:[#allocation3 + $0x40] sm:$0xff] %v5009_v6  ;;  %v7544_v57 = vpop.f32.mrb[17].mxu0  ;;  %5101 = vst [vmem:[#allocation3 + $0xb0] sm:$0xff] %v5065_v63  ;;  %v7572_v48 = vpop.f32.mrb[17].mxu1 }
 0x696   :  { %v5012_v25 = vpop.f32.mrb[18].mxu0  ;;  %v5068_v11 = vpop.f32.mrb[18].mxu1 }
 0x697   :  { %5088 = vst [vmem:[#allocation3 + $0x48] sm:$0xff] %v5012_v25  ;;  %v7545_v32 = vpop.f32.mrb[19].mxu0  ;;  %5102 = vst [vmem:[#allocation3 + $0xb8] sm:$0xff] %v5068_v11  ;;  %v7573_v5 = vpop.f32.mrb[19].mxu1 }
 0x69c   :  { %v5017_v1 = vpop.f32.mrb[20].mxu0  ;;  %v5073_v12 = vpop.f32.mrb[20].mxu1 }
 0x69d   :  { %5089 = vst [vmem:[#allocation3 + $0x50] sm:$0xff] %v5017_v1  ;;  %v7548_v4 = vpop.f32.mrb[21].mxu0  ;;  %5103 = vst [vmem:[#allocation3 + $0xc0] sm:$0xff] %v5073_v12  ;;  %v7576_v26 = vpop.f32.mrb[21].mxu1 }
 0x69e   :  { %v5020_v61 = vpop.f32.mrb[22].mxu0  ;;  %v5076_v56 = vpop.f32.mrb[22].mxu1 }
 0x69f   :  { %5090 = vst [vmem:[#allocation3 + $0x58] sm:$0xff] %v5020_v61  ;;  %v7549_v19 = vpop.f32.mrb[23].mxu0  ;;  %v7577_v62 = vpop.f32.mrb[23].mxu1 }
 0x6a4   :  { %v5025_v46 = vpop.f32.mrb[24].mxu0 }
 0x6a5   :  { %5091 = vst [vmem:[#allocation3 + $0x60] sm:$0xff] %v5025_v46  ;;  %v7552_v13 = vpop.f32.mrb[25].mxu0 }
 0x6a6   :  { %v5028_v39 = vpop.f32.mrb[26].mxu0 }
 0x6a7   :  { %5092 = vst [vmem:[#allocation3 + $0x68] sm:$0xff] %v5028_v39  ;;  %v7553_v37 = vpop.f32.mrb[27].mxu0 }
 0x6a8 LB: > { %v8581_v59 = vmov 0.0   ;;  %s6855_s4 = smul.u32 320, %s8573_s6  ;;  %vm8582_vm3 = vmmov 0   ;;  %s8573_s6 = sphi %s10263_s6, %s5109_s6   ;;  %v8569_v53 = vphi %v10261_v53, %v10495_v53  }
 0x6a9   : > { %7578 = vmatprep.subr.bf16.mxu1 %v8581_v59  ;;  %7618 = vmatprep.subr.bf16.mxu0 %v8581_v59  ;;  %s5112_s18 = smul.u32 40, %s8573_s6  ;;  %s5109_s6 = sadd.s32 1, %s8573_s6  }
 0x6aa   : > { %7594 = vmatprep.mubr.msk.bf16.mxu1 %vm8582_vm3, %v8581_v59  ;;  %7634 = vmatprep.mubr.msk.bf16.mxu0 %vm8582_vm3, %v8581_v59  ;;  %s10281_s9 = scalar_lea.vmem %s10437_s7, %s6855_s4  ;;  %p5106_p9 = scmp.ge.s32.totalorder %s5109_s6, 5  }
 0x6ab   : > { %v8399_v28 = vld [vmem:[%s10281_s9] sm:$0xff]   ;;  %v8401_v60 = vld [vmem:[%s10281_s9 + $0x8] sm:$0xff]   ;;  %v8403_v10 = vld [vmem:[%s10281_s9 + $0x10] sm:$0xff]   ;;  %s10312_s20 = scalar_lea.vmem [#allocation3], %s5112_s18 }
 0x6ac   : > { %v8400_v0 = vld [vmem:[%s10281_s9 + $0x80] sm:$0xff]   ;;  %7579 = vmatpush3.bf16.msra.mxu1 %v8399_v28  ;;  %v8402_v31 = vld [vmem:[%s10281_s9 + $0x88] sm:$0xff]   ;;  %v8404_v22 = vld [vmem:[%s10281_s9 + $0x90] sm:$0xff]  }
 0x6ad   : > { %7619 = vmatpush3.bf16.msra.mxu0 %v8400_v0  ;;  %7580 = vmatprep.subr.bf16.mxu1 %v8581_v59  ;;  %v8405_v36 = vld [vmem:[%s10281_s9 + $0x18] sm:$0xff]   ;;  %v8407_v50 = vld [vmem:[%s10281_s9 + $0x20] sm:$0xff]   ;;  %v8409_v17 = vld [vmem:[%s10281_s9 + $0x28] sm:$0xff]  }
 0x6ae   : > { %7620 = vmatprep.subr.bf16.mxu0 %v8581_v59  ;;  %v8406_v20 = vld [vmem:[%s10281_s9 + $0x98] sm:$0xff]   ;;  %v8408_v18 = vld [vmem:[%s10281_s9 + $0xa0] sm:$0xff]   ;;  %v8410_v34 = vld [vmem:[%s10281_s9 + $0xa8] sm:$0xff]  }
 0x6af   : > { %v8411_v42 = vld [vmem:[%s10281_s9 + $0x30] sm:$0xff]   ;;  %v8413_v43 = vld [vmem:[%s10281_s9 + $0x38] sm:$0xff]   ;;  %v5114_v21 = vld [vmem:[%s10312_s20] sm:$0xff] }
 0x6b0   : > { %7581 = vmatpush3.bf16.msra.mxu1 %v8401_v60  ;;  %v8412_v40 = vld [vmem:[%s10281_s9 + $0xb0] sm:$0xff]   ;;  %v8414_v8 = vld [vmem:[%s10281_s9 + $0xb8] sm:$0xff]   ;;  %v5115_v35 = vpack.c.bf16 %v5114_v21, %v5114_v21  ;;  %v8415_v29 = vld [vmem:[%s10281_s9 + $0x40] sm:$0xff]  }
 0x6b1   : > { %7621 = vmatpush3.bf16.msra.mxu0 %v8402_v31  ;;  %7582 = vmatprep.subr.bf16.mxu1 %v8581_v59  ;;  %v6741_v38 = vld [vmem:[%s10312_s20 + $0x10] sm:$0xff]  ;;  %v8416_v9 = vld [vmem:[%s10281_s9 + $0xc0] sm:$0xff]   ;;  %v8417_v44 = vld [vmem:[%s10281_s9 + $0x48] sm:$0xff]  }
 0x6b2   : > { %7622 = vmatprep.subr.bf16.mxu0 %v8581_v59  ;;  %v5341_v3 = vpack.c.bf16 %v6741_v38, %v6741_v38  ;;  %v8418_v45 = vld [vmem:[%s10281_s9 + $0xc8] sm:$0xff]   ;;  %v8419_v55 = vld [vmem:[%s10281_s9 + $0x50] sm:$0xff]   ;;  %v8421_v16 = vld [vmem:[%s10281_s9 + $0x58] sm:$0xff]  }
 0x6b3   : > { %v8420_v24 = vld [vmem:[%s10281_s9 + $0xd0] sm:$0xff]   ;;  %v8422_v27 = vld [vmem:[%s10281_s9 + $0xd8] sm:$0xff]   ;;  %v8423_v23 = vld [vmem:[%s10281_s9 + $0x60] sm:$0xff]  }
 0x6b4   : > { %7583 = vmatpush3.bf16.msra.mxu1 %v8403_v10  ;;  %v8424_v15 = vld [vmem:[%s10281_s9 + $0xe0] sm:$0xff]   ;;  %v8425_v54 = vld [vmem:[%s10281_s9 + $0x68] sm:$0xff]   ;;  %v8427_v52 = vld [vmem:[%s10281_s9 + $0x70] sm:$0xff]  }
 0x6b5   : > { %7623 = vmatpush3.bf16.msra.mxu0 %v8404_v22  ;;  %7584 = vmatprep.subr.bf16.mxu1 %v8581_v59  ;;  %v8426_v47 = vld [vmem:[%s10281_s9 + $0xe8] sm:$0xff]   ;;  %v8428_v33 = vld [vmem:[%s10281_s9 + $0xf0] sm:$0xff]   ;;  %v8429_v51 = vld [vmem:[%s10281_s9 + $0x78] sm:$0xff]  }
 0x6b6   : > { %7624 = vmatprep.subr.bf16.mxu0 %v8581_v59  ;;  %v6714_v49 = vld [vmem:[%s10312_s20 + $0x8] sm:$0xff]  ;;  %v8430_v30 = vld [vmem:[%s10281_s9 + $0xf8] sm:$0xff]   ;;  %v8431_v2 = vld [vmem:[%s10281_s9 + $0x100] sm:$0xff]  }
 0x6b7   : > { %v6768_v7 = vld [vmem:[%s10312_s20 + $0x18] sm:$0xff]  ;;  %v5228_v41 = vpack.c.bf16 %v6714_v49, %v6714_v49  ;;  %v8432_v6 = vld [vmem:[%s10281_s9 + $0x108] sm:$0xff]   ;;  %v8433_v63 = vld [vmem:[%s10281_s9 + $0x110] sm:$0xff]  }
 0x6b8   : > { %7585 = vmatpush3.bf16.msra.mxu1 %v8405_v36  ;;  %v5454_v14 = vpack.c.bf16 %v6768_v7, %v6768_v7  ;;  %v8434_v57 = vld [vmem:[%s10281_s9 + $0x118] sm:$0xff]   ;;  %v8435_v48 = vld [vmem:[%s10281_s9 + $0x120] sm:$0xff]   ;;  %v8436_v25 = vld [vmem:[%s10281_s9 + $0x128] sm:$0xff]  }
 0x6b9   : > { %7625 = vmatpush3.bf16.msra.mxu0 %v8406_v20  ;;  %7586 = vmatprep.subr.bf16.mxu1 %v8581_v59  ;;  %v8437_v11 = vld [vmem:[%s10281_s9 + $0x130] sm:$0xff]   ;;  %v8438_v32 = vld [vmem:[%s10281_s9 + $0x138] sm:$0xff]   ;;  %v6795_v5 = vld [vmem:[%s10312_s20 + $0x20] sm:$0xff] }
 0x6ba   : > { %7626 = vmatprep.subr.bf16.mxu0 %v8581_v59  ;;  %v5567_v1 = vpack.c.bf16 %v6795_v5, %v6795_v5  ;;  %v8439_v37 = vld [vmem:[#allocation4] sm:$0xff] (%p5106_p9)   ;;  %v8442_v28 = vld [vmem:[#allocation4 + $0x88] sm:$0xff] (%p5106_p9)   ;;  %v8443_v0 = vld [vmem:[#allocation4 + $0x10] sm:$0xff] (%p5106_p9)  }
 0x6bb   :  { %v8444_v60 = vld [vmem:[#allocation4 + $0x90] sm:$0xff] (%p5106_p9)   ;;  %v8445_v31 = vld [vmem:[#allocation4 + $0x18] sm:$0xff] (%p5106_p9)   ;;  %v8447_v22 = vld [vmem:[#allocation4 + $0x20] sm:$0xff] (%p5106_p9)  }
 0x6bc   : > { %7587 = vmatpush3.bf16.msra.mxu1 %v8407_v50  ;;  %v8446_v10 = vld [vmem:[#allocation4 + $0x98] sm:$0xff] (%p5106_p9)   ;;  %v8448_v36 = vld [vmem:[#allocation4 + $0xa0] sm:$0xff] (%p5106_p9)   ;;  %v8449_v50 = vld [vmem:[#allocation4 + $0x28] sm:$0xff] (%p5106_p9)  }
 0x6bd   : > { %7627 = vmatpush3.bf16.msra.mxu0 %v8408_v18  ;;  %7588 = vmatprep.subr.bf16.mxu1 %v8581_v59  ;;  %v6821_v20 = vld [vmem:[%s10438_s8] ss:$0 sm:$0xff] (%p5106_p9)  ;;  %v8454_v21 = vld [vmem:[#allocation4 + $0xb8] sm:$0xff] (%p5106_p9)  }
 0x6be   : > { %7628 = vmatprep.subr.bf16.mxu0 %v8581_v59  ;;  %v8455_v38 = vld [vmem:[#allocation4 + $0x40] sm:$0xff] (%p5106_p9)  }
 0x6c0   : > { %7589 = vmatpush3.bf16.msra.mxu1 %v8409_v17  ;;  %v8450_v17 = vld [vmem:[#allocation4 + $0xa8] sm:$0xff] (%p5106_p9)  }
 0x6c1   : > { %7629 = vmatpush3.bf16.msra.mxu0 %v8410_v34  ;;  %7590 = vmatprep.subr.bf16.mxu1 %v8581_v59  ;;  %v8451_v34 = vld [vmem:[#allocation4 + $0x30] sm:$0xff] (%p5106_p9)  }
 0x6c2   : > { %7630 = vmatprep.subr.bf16.mxu0 %v8581_v59 }
 0x6c4   : > { %7591 = vmatpush3.bf16.msra.mxu1 %v8411_v42 }
 0x6c5   : > { %7631 = vmatpush3.bf16.msra.mxu0 %v8412_v40  ;;  %7592 = vmatprep.subr.bf16.mxu1 %v8581_v59  ;;  %v8452_v40 = vld [vmem:[#allocation4 + $0xb0] sm:$0xff] (%p5106_p9)  }
 0x6c6   : > { %7632 = vmatprep.subr.bf16.mxu0 %v8581_v59 }
 0x6c8   : > { %7593 = vmatpush3.bf16.msra.mxu1 %v8413_v43  ;;  %v8453_v43 = vld [vmem:[#allocation4 + $0x38] sm:$0xff] (%p5106_p9)  }
 0x6c9   : > { %7633 = vmatpush3.bf16.msra.mxu0 %v8414_v8  ;;  %7598 = vmatprep.subr.bf16.mxu1 %v8581_v59 }
 0x6ca   : > { %7638 = vmatprep.subr.bf16.mxu0 %v8581_v59 }
 0x6cb   : > { %7595 = vmatmul.mubr.bf16.vlgmr.msra.gmra.mrb[0].mxu1 %v5115_v35 }
 0x6cc   : > { %7599 = vmatpush3.bf16.msra.mxu1 %v8415_v29  ;;  %7635 = vmatmul.mubr.bf16.vlgmr.msra.gmra.mrb[0].mxu0 %v5341_v3  ;;  %v8456_v29 = vld [vmem:[#allocation4 + $0xc0] sm:$0xff] (%p5106_p9)   ;;  %v8457_v3 = vld [vmem:[#allocation4 + $0x48] sm:$0xff] (%p5106_p9)  }
 0x6cd   : > { %7639 = vmatpush3.bf16.msra.mxu0 %v8416_v9  ;;  %7600 = vmatprep.subr.bf16.mxu1 %v8581_v59  ;;  %v8458_v9 = vld [vmem:[#allocation4 + $0xc8] sm:$0xff] (%p5106_p9)  }
 0x6ce   : > { %7640 = vmatprep.subr.bf16.mxu0 %v8581_v59  ;;  %7614 = vmatprep.mubr.msk.bf16.mxu1 %vm8582_vm3, %v8581_v59 }
 0x6cf   : > { %7654 = vmatprep.mubr.msk.bf16.mxu0 %vm8582_vm3, %v8581_v59 }
 0x6d0   : > { %7601 = vmatpush3.bf16.msra.mxu1 %v8417_v44  ;;  %v8459_v44 = vld [vmem:[#allocation4 + $0x50] sm:$0xff] (%p5106_p9)  }
 0x6d1   : > { %7641 = vmatpush3.bf16.msra.mxu0 %v8418_v45  ;;  %7602 = vmatprep.subr.bf16.mxu1 %v8581_v59  ;;  %v8460_v45 = vld [vmem:[#allocation4 + $0xd0] sm:$0xff] (%p5106_p9)  }
 0x6d2   : > { %7642 = vmatprep.subr.bf16.mxu0 %v8581_v59 }
 0x6d4   : > { %7603 = vmatpush3.bf16.msra.mxu1 %v8419_v55  ;;  %v8461_v55 = vld [vmem:[#allocation4 + $0x58] sm:$0xff] (%p5106_p9)  }
 0x6d5   : > { %7643 = vmatpush3.bf16.msra.mxu0 %v8420_v24  ;;  %7604 = vmatprep.subr.bf16.mxu1 %v8581_v59  ;;  %v8462_v24 = vld [vmem:[#allocation4 + $0xd8] sm:$0xff] (%p5106_p9)  }
 0x6d6   : > { %7644 = vmatprep.subr.bf16.mxu0 %v8581_v59 }
 0x6d8   : > { %7605 = vmatpush3.bf16.msra.mxu1 %v8421_v16  ;;  %v8463_v16 = vld [vmem:[#allocation4 + $0x60] sm:$0xff] (%p5106_p9)  }
 0x6d9   : > { %7645 = vmatpush3.bf16.msra.mxu0 %v8422_v27  ;;  %7606 = vmatprep.subr.bf16.mxu1 %v8581_v59  ;;  %v8464_v27 = vld [vmem:[#allocation4 + $0xe0] sm:$0xff] (%p5106_p9)  }
 0x6da   : > { %7646 = vmatprep.subr.bf16.mxu0 %v8581_v59 }
 0x6dc   : > { %7607 = vmatpush3.bf16.msra.mxu1 %v8423_v23  ;;  %v8465_v23 = vld [vmem:[#allocation4 + $0x68] sm:$0xff] (%p5106_p9)  }
 0x6dd   : > { %7647 = vmatpush3.bf16.msra.mxu0 %v8424_v15  ;;  %7608 = vmatprep.subr.bf16.mxu1 %v8581_v59  ;;  %v8466_v15 = vld [vmem:[#allocation4 + $0xe8] sm:$0xff] (%p5106_p9)  }
 0x6de   : > { %7648 = vmatprep.subr.bf16.mxu0 %v8581_v59 }
 0x6e0   : > { %7609 = vmatpush3.bf16.msra.mxu1 %v8425_v54  ;;  %v8467_v54 = vld [vmem:[#allocation4 + $0x70] sm:$0xff] (%p5106_p9)  }
 0x6e1   : > { %7649 = vmatpush3.bf16.msra.mxu0 %v8426_v47  ;;  %7610 = vmatprep.subr.bf16.mxu1 %v8581_v59  ;;  %v8468_v47 = vld [vmem:[#allocation4 + $0xf0] sm:$0xff] (%p5106_p9)  }
 0x6e2   : > { %7650 = vmatprep.subr.bf16.mxu0 %v8581_v59 }
 0x6e4   : > { %7611 = vmatpush3.bf16.msra.mxu1 %v8427_v52  ;;  %v8469_v52 = vld [vmem:[#allocation4 + $0x78] sm:$0xff] (%p5106_p9)  }
 0x6e5   : > { %7651 = vmatpush3.bf16.msra.mxu0 %v8428_v33  ;;  %7612 = vmatprep.subr.bf16.mxu1 %v8581_v59 }
 0x6e6   : > { %7652 = vmatprep.subr.bf16.mxu0 %v8581_v59 }
 0x6e8   : > { %7613 = vmatpush3.bf16.msra.mxu1 %v8429_v51  ;;  %v8470_v51 = vld [vmem:[#allocation4 + $0xf8] sm:$0xff] (%p5106_p9)  }
 0x6e9   : > { %7653 = vmatpush3.bf16.msra.mxu0 %v8430_v30  ;;  %7678 = vmatprep.subr.bf16.mxu1 (%p5106_p9), %v8579_v58  ;;  %v6120_v30 = vlaneseq (%p5106_p9) }
 0x6ea   : > { %7658 = vmatprep.subr.bf16.mxu0 %v8581_v59 }
 0x6eb   : > { %7615 = vmatmul.mubr.bf16.vlgmr.msra.gmra.mrb[0].mxu1 %v5228_v41  ;;  %v6121_v7 = vshrl.u32 (%p5106_p9), %v6120_v30, 7  ;;  %v5685_v41 = vld [vmem:[%s10440_s10] sm:$0x1] (%p5106_p9) }
 0x6ec   : > { %7655 = vmatmul.mubr.bf16.vlgmr.msra.gmra.mrb[0].mxu0 %v5454_v14  ;;  %7694 = vmatprep.mubr.msk.bf16.mxu1 (%p5106_p9), %vm8580_vm0, %v8579_v58 }
 0x6ed   : > { %7659 = vmatpush3.bf16.msra.mxu0 %v8431_v2  ;;  %7674 = vmatprep.mubr.msk.bf16.mxu0 %vm8582_vm3, %v8581_v59 }
 0x6ee   : > { %7660 = vmatprep.subr.bf16.mxu0 %v8581_v59  ;;  %7679 = vmatpush3.bf16.msra.mxu1 (%p5106_p9), %v8439_v37 }
 0x6ef   :  { %7680 = vmatprep.subr.bf16.mxu1 (%p5106_p9), %v8579_v58 }
 0x6f1   : > { %7661 = vmatpush3.bf16.msra.mxu0 %v8432_v6 }
 0x6f2   : > { %7662 = vmatprep.subr.bf16.mxu0 %v8581_v59 }
 0x6f5   : > { %7663 = vmatpush3.bf16.msra.mxu0 %v8433_v63  ;;  %v6122_v63 = vsub.s32 (%p5106_p9), 0, %v6121_v7 }
 0x6f6   : > { %7664 = vmatprep.subr.bf16.mxu0 %v8581_v59 }
 0x6f9   : > { %7665 = vmatpush3.bf16.msra.mxu0 %v8434_v57 }
 0x6fa   : > { %7666 = vmatprep.subr.bf16.mxu0 %v8581_v59 }
 0x6fd   : > { %7667 = vmatpush3.bf16.msra.mxu0 %v8435_v48 }
 0x6fe   : > { %7668 = vmatprep.subr.bf16.mxu0 %v8581_v59 }
 0x701   : > { %7669 = vmatpush3.bf16.msra.mxu0 %v8436_v25 }
 0x702   : > { %7670 = vmatprep.subr.bf16.mxu0 %v8581_v59 }
 0x705   : > { %7671 = vmatpush3.bf16.msra.mxu0 %v8437_v11 }
 0x706   : > { %7672 = vmatprep.subr.bf16.mxu0 %v8581_v59  ;;  %v8440_v59 = vld [vmem:[#allocation4 + $0x80] sm:$0xff] (%p5106_p9)  }
 0x709   : > { %7673 = vmatpush3.bf16.msra.mxu0 %v8438_v32 }
 0x70a   :  { %7718 = vmatprep.subr.bf16.mxu0 (%p5106_p9), %v8579_v58 }
 0x70c   : > { %7675 = vmatmul.mubr.bf16.vlgmr.msra.gmra.mrb[0].mxu0 %v5567_v1 }
 0x70d   :  { %7734 = vmatprep.mubr.msk.bf16.mxu0 (%p5106_p9), %vm8580_vm0, %v8579_v58  ;;  %7719 = vmatpush3.bf16.msra.mxu0 (%p5106_p9), %v8440_v59 }
 0x70e   :  { %7720 = vmatprep.subr.bf16.mxu0 (%p5106_p9), %v8579_v58 }
 0x711   :  { %7721 = vmatpush3.bf16.msra.mxu0 (%p5106_p9), %v8442_v28 }
 0x712   :  { %7722 = vmatprep.subr.bf16.mxu0 (%p5106_p9), %v8579_v58 }
 0x715   :  { %7723 = vmatpush3.bf16.msra.mxu0 (%p5106_p9), %v8444_v60 }
 0x716   :  { %7724 = vmatprep.subr.bf16.mxu0 (%p5106_p9), %v8579_v58 }
 0x719   :  { %7725 = vmatpush3.bf16.msra.mxu0 (%p5106_p9), %v8446_v10 }
 0x71a   :  { %7726 = vmatprep.subr.bf16.mxu0 (%p5106_p9), %v8579_v58 }
 0x71d   :  { %7727 = vmatpush3.bf16.msra.mxu0 (%p5106_p9), %v8448_v36 }
 0x71e   :  { %7728 = vmatprep.subr.bf16.mxu0 (%p5106_p9), %v8579_v58 }
 0x721   :  { %7729 = vmatpush3.bf16.msra.mxu0 (%p5106_p9), %v8450_v17 }
 0x722   :  { %7730 = vmatprep.subr.bf16.mxu0 (%p5106_p9), %v8579_v58 }
 0x725   :  { %7731 = vmatpush3.bf16.msra.mxu0 (%p5106_p9), %v8452_v40 }
 0x726   :  { %7732 = vmatprep.subr.bf16.mxu0 (%p5106_p9), %v8579_v58 }
 0x729   :  { %7733 = vmatpush3.bf16.msra.mxu0 (%p5106_p9), %v8454_v21 }
 0x72a   :  { %7738 = vmatprep.subr.bf16.mxu0 (%p5106_p9), %v8579_v58 }
 0x7be   : > { %v5330_v12 = vpop.f32.mrb[0].mxu1 }
 0x7bf   : > { %v7616_v4 = vpop.f32.mrb[1].mxu1  ;;  %v7851_v56 = vadd.f32 %v8569_v53, %v5330_v12 }
 0x7c0   : > { %v5333_v26 = vpop.f32.mrb[2].mxu1 }
 0x7c1   : > { %v7617_v61 = vpop.f32.mrb[3].mxu1 }
 0x7dc   :  { %5108 = sbr.rel (!%p5106_p9) target bundleno = 1704 (0x6a8), region = 116 }
 0x7df   : > { %v5669_v19 = vpop.f32.mrb[0].mxu0 }
 0x7e0   : > { %v7852_v62 = vadd.f32 %v7851_v56, %v5669_v19   ;;  %v7676_v46 = vpop.f32.mrb[1].mxu0 }
 0x7e1   : > { %v5672_v13 = vpop.f32.mrb[2].mxu0 }
 0x7e2   : > { %v7677_v39 = vpop.f32.mrb[3].mxu0  ;;  %v10495_v53 = vmov %v7852_v62  ;;  %v5683_v18 = vadd.f32 (%p5106_p9), %v7852_v62, %v6821_v20 }
 0x7e3   :  { %v8441_v53 = vld [vmem:[#allocation4 + $0x8] sm:$0xff]  }
 0x7e4   :  { %7681 = vmatpush3.bf16.msra.mxu1 %v8441_v53  ;;  %v5684_v42 = vmax.f32 %v5683_v18, 0.0 }
 0x7e5   :  { %7682 = vmatprep.subr.bf16.mxu1 %v8579_v58 }
 0x7e6   :  { %v5686_v8 = vpack.c.bf16 %v5684_v42, %v5684_v42 }
 0x7e8   :  { %7683 = vmatpush3.bf16.msra.mxu1 %v8443_v0  ;;  %v5920_v35 = vrot.slane %v5686_v8, 1  ;;  %v5810_v33 = vshrl.u32 %v5686_v8, 16 }
 0x7e9   :  { %7684 = vmatprep.subr.bf16.mxu1 %v8579_v58 }
 0x7ea   :  { %7735 = vmatmul.mubr.bf16.vlgmr.msra.gmra.mrb[0].mxu0 %v5920_v35  ;;  %v6028_v49 = vrot.slane %v5810_v33, 1 }
 0x7eb   :  { %7739 = vmatpush3.bf16.msra.mxu0 %v8456_v29  ;;  %7754 = vmatprep.mubr.msk.bf16.mxu0 %vm8580_vm0, %v8579_v58 }
 0x7ec   :  { %7685 = vmatpush3.bf16.msra.mxu1 %v8445_v31  ;;  %7740 = vmatprep.subr.bf16.mxu0 %v8579_v58 }
 0x7ed   :  { %7686 = vmatprep.subr.bf16.mxu1 %v8579_v58 }
 0x7ef   :  { %7741 = vmatpush3.bf16.msra.mxu0 %v8458_v9 }
 0x7f0   :  { %7687 = vmatpush3.bf16.msra.mxu1 %v8447_v22  ;;  %7742 = vmatprep.subr.bf16.mxu0 %v8579_v58 }
 0x7f1   :  { %7688 = vmatprep.subr.bf16.mxu1 %v8579_v58 }
 0x7f3   :  { %7743 = vmatpush3.bf16.msra.mxu0 %v8460_v45 }
 0x7f4   :  { %7689 = vmatpush3.bf16.msra.mxu1 %v8449_v50  ;;  %7744 = vmatprep.subr.bf16.mxu0 %v8579_v58 }
 0x7f5   :  { %7690 = vmatprep.subr.bf16.mxu1 %v8579_v58 }
 0x7f7   :  { %7745 = vmatpush3.bf16.msra.mxu0 %v8462_v24 }
 0x7f8   :  { %7691 = vmatpush3.bf16.msra.mxu1 %v8451_v34  ;;  %7746 = vmatprep.subr.bf16.mxu0 %v8579_v58 }
 0x7f9   :  { %7692 = vmatprep.subr.bf16.mxu1 %v8579_v58 }
 0x7fb   :  { %7747 = vmatpush3.bf16.msra.mxu0 %v8464_v27 }
 0x7fc   :  { %7693 = vmatpush3.bf16.msra.mxu1 %v8453_v43  ;;  %7748 = vmatprep.subr.bf16.mxu0 %v8579_v58 }
 0x7fd   :  { %7698 = vmatprep.subr.bf16.mxu1 %v8579_v58 }
 0x7ff   :  { %7695 = vmatmul.mubr.bf16.vlgmr.msra.gmra.mrb[0].mxu1 %v5686_v8  ;;  %7749 = vmatpush3.bf16.msra.mxu0 %v8466_v15 }
 0x800   :  { %7699 = vmatpush3.bf16.msra.mxu1 %v8455_v38  ;;  %7714 = vmatprep.mubr.msk.bf16.mxu1 %vm8580_vm0, %v8579_v58 }
 0x801   :  { %7700 = vmatprep.subr.bf16.mxu1 %v8579_v58  ;;  %7750 = vmatprep.subr.bf16.mxu0 %v8579_v58 }
 0x803   :  { %7751 = vmatpush3.bf16.msra.mxu0 %v8468_v47 }
 0x804   :  { %7701 = vmatpush3.bf16.msra.mxu1 %v8457_v3  ;;  %7752 = vmatprep.subr.bf16.mxu0 %v8579_v58 }
 0x805   :  { %7702 = vmatprep.subr.bf16.mxu1 %v8579_v58 }
 0x807   :  { %7753 = vmatpush3.bf16.msra.mxu0 %v8470_v51 }
 0x808   :  { %7703 = vmatpush3.bf16.msra.mxu1 %v8459_v44 }
 0x809   :  { %7704 = vmatprep.subr.bf16.mxu1 %v8579_v58 }
 0x80a   :  { %7755 = vmatmul.mubr.bf16.vlgmr.msra.gmra.mrb[0].mxu0 %v6028_v49 }
 0x80c   :  { %7705 = vmatpush3.bf16.msra.mxu1 %v8461_v55 }
 0x80d   :  { %7706 = vmatprep.subr.bf16.mxu1 %v8579_v58 }
 0x810   :  { %7707 = vmatpush3.bf16.msra.mxu1 %v8463_v16 }
 0x811   :  { %7708 = vmatprep.subr.bf16.mxu1 %v8579_v58 }
 0x814   :  { %7709 = vmatpush3.bf16.msra.mxu1 %v8465_v23 }
 0x815   :  { %7710 = vmatprep.subr.bf16.mxu1 %v8579_v58 }
 0x818   :  { %7711 = vmatpush3.bf16.msra.mxu1 %v8467_v54 }
 0x819   :  { %7712 = vmatprep.subr.bf16.mxu1 %v8579_v58 }
 0x81c   :  { %7713 = vmatpush3.bf16.msra.mxu1 %v8469_v52 }
 0x81f   :  { %7715 = vmatmul.mubr.bf16.vlgmr.msra.gmra.mrb[0].mxu1 %v5810_v33 }
 0x8dd   :  { %v6112_v6 = vpop.f32.mrb[0].mxu0 }
 0x8de   :  { %v7756_v48 = vpop.f32.mrb[1].mxu0 }
 0x8df   :  { %v6115_v58 = vpop.f32.mrb[2].mxu0 }
 0x8e0   :  { %v7757_v5 = vpop.f32.mrb[3].mxu0 }
 0x8f2   :  { %v5895_v14 = vpop.f32.mrb[0].mxu1 }
 0x8f3   :  { %v7865_v2 = vadd.f32 %v5895_v14, %v5685_v41  ;;  %v7716_v57 = vpop.f32.mrb[1].mxu1 }
 0x8f4   :  { %v5898_v25 = vpop.f32.mrb[2].mxu1 }
 0x8f5   :  { %v7866_v11 = vadd.f32 %v7865_v2, %v6112_v6  ;;  %v7717_v32 = vpop.f32.mrb[3].mxu1 }
 0x8f7   :  { %v6123_v1 = vrot.slane %v7866_v11, %v6122_v63 }
 0x8f9   :  { %6125 = vst [vmem:[%s10441_s11] sm:$0xff] %v6123_v1 }
 0x8fa   :  { %6130 = vsyncpa [#allocation5], 1 }

</bundles_post_ra>
